<compile_context>
chip_gen: v5e
topology: v5e:2x2
jax: 0.10.0
libtpu: 0.0.40
codegen_flags: <defaults>
</compile_context>

<pallas_src>
import functools

import jax
import jax.numpy as jnp
from jax.experimental import pallas as pl
from jax.experimental.pallas import tpu as pltpu

BN_EPS = 1e-5
LEAKY_SLOPE = 0.01          # PyTorch nn.LeakyReLU default
_SUBLANE = 8                # batch is zero-padded to a multiple of this

_VMEM = pl.BlockSpec(memory_space=pltpu.MemorySpace.VMEM)

# Folded contraction widths (DuelCNN architecture constants):
#   conv1: 8x8 k, s=4, Cin=4  -> 2x2 block-shift taps x (4x4 phases x 4 ch) = 4*64 = 256
#   conv2: 4x4 k, s=2, Cin=32 -> 16 taps x 32 ch = 512
#   conv3: 3x3 k, s=1, Cin=64 ->  9 taps x 64 ch = 576
_K1, _K2, _K3 = 4 * 64, 16 * 32, 9 * 64


def _conv_size(v, k, s):
    return (v - (k - 1) - 1) // s + 1


# --------------------------------------------------------------------------- #
# In-kernel helpers + the single fused kernel
# --------------------------------------------------------------------------- #
def _bn_relu(y, gamma, beta, n_valid):
    """Training-mode BatchNorm (batch statistics) + ReLU on an (M, C) f32 activation.

    Rows belonging to zero-padded batch entries are exactly zero on entry (zero
    input, no conv bias), so plain column sums divided by the number of REAL rows
    give the correct statistics."""
    inv_n = 1.0 / float(n_valid)
    s1 = jnp.sum(y, axis=0, keepdims=True)
    s2 = jnp.sum(y * y, axis=0, keepdims=True)
    mean = s1 * inv_n
    var = jnp.maximum(s2 * inv_n - mean * mean, 0.0)   # one-pass, biased (as PyTorch)
    out = (y - mean) * jax.lax.rsqrt(var + BN_EPS) * gamma + beta
    return jnp.maximum(out, 0.0)


def _duelcnn_kernel(xp_ref,
                    w1_ref, g1_ref, be1_ref,
                    w2_ref, g2_ref, be2_ref,
                    w3_ref, g3_ref, be3_ref,
                    wh1_ref, bh1_ref, wh2_ref, bh2_ref,
                    q_ref,
                    slab1_ref, slab2_ref, slab3_ref,
                    *, n_real, n_pad, dims, out_size):
    (oh1, ow1), (oh2, ow2), (oh3, ow3) = dims
    f32, bf16 = jnp.float32, jnp.bfloat16

    # Precomputed 0/1 batch mask (built once, reused for conv1/conv2 outputs) so
    # padded rows cannot contaminate the next layer's batch statistics.
    if n_real < n_pad:
        bidx = jax.lax.broadcasted_iota(jnp.int32, (1, n_pad, 1), 1)
        batch_mask = (bidx < n_real).astype(f32)
    else:
        batch_mask = None

    def mask_rows(y):
        if batch_mask is None:
            return y
        m, c = y.shape
        return (y.reshape(m // n_pad, n_pad, c) * batch_mask).reshape(m, c)

    # ---- conv1: k=8, s=4, 4 -> 32 ch.  4 block-shift taps folded into K=256. ------
    # xp lanes pack (row-phase, col-phase, Cin) = 4*4*4 = 64 features; each tap slab
    # is copied once into the contiguous im2col scratch, then ONE matmul.
    m1 = oh1 * ow1 * n_pad
    for t, (bi, bj) in enumerate(((0, 0), (0, 1), (1, 0), (1, 1))):
        slab1_ref[:, :, :, 64 * t:64 * (t + 1)] = xp_ref[bi:bi + oh1, bj:bj + ow1, :, :]
    acc1 = jnp.dot(slab1_ref[...].reshape(m1, _K1).astype(bf16), w1_ref[...],
                   preferred_element_type=f32)
    a1 = mask_rows(_bn_relu(acc1, g1_ref[...], be1_ref[...],
                            n_valid=oh1 * ow1 * n_real))       # (m1, 32), rows=(oy,ox,n)

    # ---- conv2: k=4, s=2, 32 -> 64 ch.  16 taps folded into K=512. ----------------
    a1v = a1.reshape(oh1 // 2, 2, ow1 // 2, 2, n_pad, 32)      # split majors (relabel)
    m2 = oh2 * ow2 * n_pad
    for ky in range(4):
        bi, pi = divmod(ky, 2)
        for kx in range(4):
            bj, pj = divmod(kx, 2)
            t = ky * 4 + kx
            slab2_ref[:, :, :, 32 * t:32 * (t + 1)] = \
                a1v[bi:bi + oh2, pi, bj:bj + ow2, pj, :, :]
    acc2 = jnp.dot(slab2_ref[...].reshape(m2, _K2).astype(bf16), w2_ref[...],
                   preferred_element_type=f32)
    a2 = mask_rows(_bn_relu(acc2, g2_ref[...], be2_ref[...],
                            n_valid=oh2 * ow2 * n_real))       # (m2, 64)

    # ---- conv3: k=3, s=1, 64 -> 64 ch.  9 taps folded into K=576. -----------------
    a2v = a2.reshape(oh2, ow2, n_pad, 64)
    m3 = oh3 * ow3 * n_pad
    for ky in range(3):
        for kx in range(3):
            t = ky * 3 + kx
            slab3_ref[:, :, :, 64 * t:64 * (t + 1)] = a2v[ky:ky + oh3, kx:kx + ow3, :, :]
    acc3 = jnp.dot(slab3_ref[...].reshape(m3, _K3).astype(bf16), w3_ref[...],
                   preferred_element_type=f32)
    # No masking needed: padded rows are sliced away after the head.
    a3 = _bn_relu(acc3, g3_ref[...], be3_ref[...], n_valid=oh3 * ow3 * n_real)

    # ---- dueling head: A/V paths fused into two matmuls ---------------------------
    # wh1 = [Al1.T | Vl1.T] (64, 256);  wh2 = blockdiag(Al2.T, Vl2.T) (256, A+1).
    h = jnp.dot(a3.astype(bf16), wh1_ref[...], preferred_element_type=f32) + bh1_ref[...]
    h = jnp.where(h > 0, h, LEAKY_SLOPE * h)                   # LeakyReLU (f32)
    y = jnp.dot(h.astype(bf16), wh2_ref[...], preferred_element_type=f32) + bh2_ref[...]
    ax = y[:n_real, :out_size]                                 # advantage  (n_real, A)
    vx = y[:n_real, out_size:out_size + 1]                     # value      (n_real, 1)
    a_mean = jnp.sum(ax) * (1.0 / float(n_real * out_size))    # torch Ax.mean() (global)
    q_ref[...] = vx + (ax - a_mean)


# --------------------------------------------------------------------------- #
# One-time parameter layout preparation (hoisted out of the per-forward path)
# --------------------------------------------------------------------------- #
def prepare_params(params, compute_dtype=jnp.bfloat16):
    """Pre-lay-out PyTorch-shaped parameters for the fused kernel (runs once).

    Conv weights are folded along the tap axis into single (K, Cout) matrices and
    cast to bf16 (MXU-native); BN affine params and head biases stay f32.  Conv
    biases are intentionally not emitted: with training-mode BatchNorm the
    per-channel bias is exactly cancelled by the batch-mean subtraction."""

    def conv_taps_folded(w):               # (Cout, Cin, kh, kw) -> (kh*kw*Cin, Cout)
        co, ci, kh, kw = w.shape
        return jnp.transpose(w, (2, 3, 1, 0)).reshape(kh * kw * ci, co)

    # conv1: fold the 4x4 stride-phases + Cin into the per-tap 64-wide chunk, and
    # the 2x2 block shifts along K.  Row order = (bi, bj, pi, pj, c).
    w1 = jnp.transpose(params["conv1_w"], (2, 3, 1, 0))        # (ky, kx, c, co) = (8,8,4,32)
    w1 = w1.reshape(2, 4, 2, 4, 4, 32)                         # (bi, pi, bj, pj, c, co)
    w1 = jnp.transpose(w1, (0, 2, 1, 3, 4, 5)).reshape(_K1, 32)

    out_size = params["Al2_w"].shape[0]
    hid = params["Al1_w"].shape[0]
    wh1 = jnp.concatenate([params["Al1_w"].T, params["Vl1_w"].T], axis=1)   # (lin_in, 2*hid)
    bh1 = jnp.concatenate([params["Al1_b"], params["Vl1_b"]])[None, :]      # (1, 2*hid)
    wh2 = jnp.zeros((2 * hid, out_size + 1), jnp.float32)
    wh2 = wh2.at[:hid, :out_size].set(params["Al2_w"].T)
    wh2 = wh2.at[hid:, out_size:].set(params["Vl2_w"].T)
    bh2 = jnp.concatenate([params["Al2_b"], params["Vl2_b"]])[None, :]      # (1, out+1)

    cd = compute_dtype
    return {
        "w1": w1.astype(cd),
        "g1": params["bn1_g"][None, :], "be1": params["bn1_b"][None, :],
        "w2": conv_taps_folded(params["conv2_w"]).astype(cd),               # (512, 64)
        "g2": params["bn2_g"][None, :], "be2": params["bn2_b"][None, :],
        "w3": conv_taps_folded(params["conv3_w"]).astype(cd),               # (576, 64)
        "g3": params["bn3_g"][None, :], "be3": params["bn3_b"][None, :],
        "wh1": wh1.astype(cd), "bh1": bh1,
        "wh2": wh2.astype(cd), "bh2": bh2,
    }


# --------------------------------------------------------------------------- #
# Forward pass
# --------------------------------------------------------------------------- #
@functools.partial(jax.jit, static_argnames=("output_size",))
def duel_cnn_forward(x_nchw, prepped, *, output_size):
    """DuelCNN forward.  x_nchw: (N, 4, H, W) float32 -> (N, output_size)."""
    n, c, h, w = x_nchw.shape
    assert c == 4 and h % 4 == 0 and w % 4 == 0, "demo supports H, W multiples of 4"
    oh1, ow1 = _conv_size(h, 8, 4), _conv_size(w, 8, 4)
    oh2, ow2 = _conv_size(oh1, 4, 2), _conv_size(ow1, 4, 2)
    oh3, ow3 = _conv_size(oh2, 3, 1), _conv_size(ow2, 3, 1)
    assert oh1 % 2 == 0 and ow1 % 2 == 0
    # TODO(synk): general (channel-major) flatten for conv3 outputs larger than 1x1.
    assert oh3 == 1 and ow3 == 1, "fused head assumes a 1x1 conv3 output"

    n_pad = max(_SUBLANE, -(-n // _SUBLANE) * _SUBLANE)

    # The only per-forward non-Pallas work: one cheap layout transform of the input,
    # NCHW -> (H/4, W/4, n_pad, 64) with lanes packing (row-phase, col-phase, Cin).
    x = jnp.transpose(x_nchw, (0, 2, 3, 1)).astype(jnp.float32)          # (n, H, W, 4)
    x = jnp.pad(x, ((0, n_pad - n), (0, 0), (0, 0), (0, 0)))
    xp = x.reshape(n_pad, h // 4, 4, w // 4, 4, 4)
    xp = jnp.transpose(xp, (1, 3, 0, 2, 4, 5)).reshape(h // 4, w // 4, n_pad, 64)

    kernel = functools.partial(
        _duelcnn_kernel, n_real=n, n_pad=n_pad,
        dims=((oh1, ow1), (oh2, ow2), (oh3, ow3)), out_size=output_size)

    m1, m2, m3 = oh1 * ow1 * n_pad, oh2 * ow2 * n_pad, oh3 * ow3 * n_pad
    hid2 = prepped["wh1"].shape[1]
    flops = 2 * (m1 * _K1 * 32 + m2 * _K2 * 64 + m3 * _K3 * 64
                 + n_pad * 64 * hid2 + n_pad * hid2 * (output_size + 1))
    bytes_accessed = int(xp.size * xp.dtype.itemsize
                         + sum(v.size * v.dtype.itemsize for v in prepped.values())
                         + n * output_size * 4)

    return pl.pallas_call(
        kernel,
        out_shape=jax.ShapeDtypeStruct((n, output_size), jnp.float32),
        in_specs=[_VMEM] * 14,
        out_specs=_VMEM,
        scratch_shapes=[
            pltpu.VMEM((oh1, ow1, n_pad, _K1), jnp.float32),   # conv1 im2col slab
            pltpu.VMEM((oh2, ow2, n_pad, _K2), jnp.float32),   # conv2 im2col slab
            pltpu.VMEM((oh3, ow3, n_pad, _K3), jnp.float32),   # conv3 im2col slab
        ],
        cost_estimate=pl.CostEstimate(flops=flops, transcendentals=160,
                                      bytes_accessed=bytes_accessed),
    )(xp,
      prepped["w1"], prepped["g1"], prepped["be1"],
      prepped["w2"], prepped["g2"], prepped["be2"],
      prepped["w3"], prepped["g3"], prepped["be3"],
      prepped["wh1"], prepped["bh1"], prepped["wh2"], prepped["bh2"])


# --------------------------------------------------------------------------- #
# Synthetic parameters + pure-XLA reference (for an in-script correctness check)
# --------------------------------------------------------------------------- #
def init_params(key, h, w, output_size):
    """Deterministic synthetic parameters with DuelCNN.__init__'s shapes
    (PyTorch layouts: conv (Cout, Cin, kh, kw), linear (out, in))."""
    convw, convh = _conv_size(w, 8, 4), _conv_size(h, 8, 4)
    convw, convh = _conv_size(convw, 4, 2), _conv_size(convh, 4, 2)
    convw, convh = _conv_size(convw, 3, 1), _conv_size(convh, 3, 1)
    lin_in = convw * convh * 64

    keys = jax.random.split(key, 13)

    def nrm(k, shape, scale=0.05):
        return scale * jax.random.normal(k, shape, dtype=jnp.float32)

    params = {
        "conv1_w": nrm(keys[0], (32, 4, 8, 8)),   "conv1_b": nrm(keys[1], (32,)),
        "conv2_w": nrm(keys[2], (64, 32, 4, 4)),  "conv2_b": nrm(keys[3], (64,)),
        "conv3_w": nrm(keys[4], (64, 64, 3, 3)),  "conv3_b": nrm(keys[5], (64,)),
        "bn1_g": jnp.ones((32,), jnp.float32),  "bn1_b": jnp.zeros((32,), jnp.float32),
        "bn2_g": jnp.ones((64,), jnp.float32),  "bn2_b": jnp.zeros((64,), jnp.float32),
        "bn3_g": jnp.ones((64,), jnp.float32),  "bn3_b": jnp.zeros((64,), jnp.float32),
        "Al1_w": nrm(keys[6], (128, lin_in)),      "Al1_b": nrm(keys[7], (128,)),
        "Al2_w": nrm(keys[8], (output_size, 128)), "Al2_b": nrm(keys[9], (output_size,)),
        "Vl1_w": nrm(keys[10], (128, lin_in)),     "Vl1_b": nrm(keys[11], (128,)),
        "Vl2_w": nrm(keys[12], (1, 128)),          "Vl2_b": jnp.zeros((1,), jnp.float32),
    }
    return params, (convh, convw, lin_in)


def _reference_forward(x_nchw, params):
    """Pure-XLA reference of the PyTorch forward (training-mode BatchNorm)."""
    hi = jax.lax.Precision.HIGHEST

    def conv(x, w, b, stride):
        y = jax.lax.conv_general_dilated(
            x, w, window_strides=(stride, stride), padding="VALID",
            dimension_numbers=("NCHW", "OIHW", "NCHW"), precision=hi)
        return y + b[None, :, None, None]

    def bn_relu(y, gamma, beta):
        mean = jnp.mean(y, axis=(0, 2, 3), keepdims=True)
        var = jnp.mean(jnp.square(y - mean), axis=(0, 2, 3), keepdims=True)
        yh = (y - mean) * jax.lax.rsqrt(var + BN_EPS)
        return jnp.maximum(yh * gamma[None, :, None, None] + beta[None, :, None, None], 0.0)

    def leaky(v):
        return jnp.where(v > 0, v, LEAKY_SLOPE * v)

    x = bn_relu(conv(x_nchw, params["conv1_w"], params["conv1_b"], 4),
                params["bn1_g"], params["bn1_b"])
    x = bn_relu(conv(x, params["conv2_w"], params["conv2_b"], 2),
                params["bn2_g"], params["bn2_b"])
    x = bn_relu(conv(x, params["conv3_w"], params["conv3_b"], 1),
                params["bn3_g"], params["bn3_b"])
    feats = x.reshape(x.shape[0], -1)

    ax = leaky(jnp.dot(feats, params["Al1_w"].T, precision=hi) + params["Al1_b"])
    ax = jnp.dot(ax, params["Al2_w"].T, precision=hi) + params["Al2_b"]
    vx = leaky(jnp.dot(feats, params["Vl1_w"].T, precision=hi) + params["Vl1_b"])
    vx = jnp.dot(vx, params["Vl2_w"].T, precision=hi) + params["Vl2_b"]
    return vx + (ax - jnp.mean(ax))


if __name__ == "__main__":
    # Smallest spatial size that keeps all three convs valid: 36 -> 8 -> 3 -> 1.
    BATCH, CHANNELS, H, W = 2, 4, 36, 36
    OUTPUT_SIZE = 4

    key = jax.random.PRNGKey(0)
    k_x, k_p = jax.random.split(key)
    x = jax.random.normal(k_x, (BATCH, CHANNELS, H, W), dtype=jnp.float32)
    params, (convh, convw, lin_in) = init_params(k_p, H, W, OUTPUT_SIZE)
    assert (convh, convw, lin_in) == (1, 1, 64)

    prepped = prepare_params(params)                       # hoisted, one-time
    q = duel_cnn_forward(x, prepped, output_size=OUTPUT_SIZE)
    q = jax.block_until_ready(q)
    assert q.shape == (BATCH, OUTPUT_SIZE) and q.dtype == jnp.float32
    assert bool(jnp.all(jnp.isfinite(q)))

    # Tolerance accounts for bf16 MXU operands (accumulation and BN stay f32).
    q_ref = _reference_forward(x, params)
    max_err = float(jnp.max(jnp.abs(q - q_ref)))
    assert max_err < 2e-2, f"kernel/reference mismatch: max abs err = {max_err}"

    print("KERNEL_OK")
</pallas_src>

<mosaic_0001>
module attributes {stable_mosaic.version = 11 : i64} {
  func.func @_duelcnn_kernel(%arg0: memref<9x9x8x64xf32, #tpu.memory_space<vmem>>, %arg1: memref<256x32xbf16, #tpu.memory_space<vmem>>, %arg2: memref<1x32xf32, #tpu.memory_space<vmem>>, %arg3: memref<1x32xf32, #tpu.memory_space<vmem>>, %arg4: memref<512x64xbf16, #tpu.memory_space<vmem>>, %arg5: memref<1x64xf32, #tpu.memory_space<vmem>>, %arg6: memref<1x64xf32, #tpu.memory_space<vmem>>, %arg7: memref<576x64xbf16, #tpu.memory_space<vmem>>, %arg8: memref<1x64xf32, #tpu.memory_space<vmem>>, %arg9: memref<1x64xf32, #tpu.memory_space<vmem>>, %arg10: memref<64x256xbf16, #tpu.memory_space<vmem>>, %arg11: memref<1x256xf32, #tpu.memory_space<vmem>>, %arg12: memref<256x5xbf16, #tpu.memory_space<vmem>>, %arg13: memref<1x5xf32, #tpu.memory_space<vmem>>, %arg14: memref<2x4xf32, #tpu.memory_space<vmem>>, %arg15: memref<8x8x8x256xf32, #tpu.memory_space<vmem>>, %arg16: memref<3x3x8x512xf32, #tpu.memory_space<vmem>>, %arg17: memref<1x1x8x576xf32, #tpu.memory_space<vmem>>) attributes {dimension_semantics = [], scalar_prefetch = 0 : i64, scratch_operands = 3 : i64, tpu.core_type = #tpu.core_type<tc>} {
    %0 = tpu.iota {dimensions = array<i32: 1>} : vector<1x8x1xi32>
    %c2_i32 = arith.constant 2 : i32
    %1 = vector.broadcast %c2_i32 : i32 to vector<1x8x1xi32>
    %2 = arith.cmpi slt, %0, %1 : vector<1x8x1xi32>
    %3 = arith.extui %2 : vector<1x8x1xi1> to vector<1x8x1xi32>
    %4 = arith.sitofp %3 : vector<1x8x1xi32> to vector<1x8x1xf32>
    %c0 = arith.constant 0 : index
    %c0_0 = arith.constant 0 : index
    %c0_1 = arith.constant 0 : index
    %c0_2 = arith.constant 0 : index
    %5 = vector.load %arg0[%c0, %c0_0, %c0_1, %c0_2] : memref<9x9x8x64xf32, #tpu.memory_space<vmem>>, vector<8x8x8x64xf32>
    %c0_3 = arith.constant 0 : index
    %c0_4 = arith.constant 0 : index
    %c0_5 = arith.constant 0 : index
    %c0_6 = arith.constant 0 : index
    %6 = vector.load %arg15[%c0_3, %c0_4, %c0_5, %c0_6] : memref<8x8x8x256xf32, #tpu.memory_space<vmem>>, vector<8x8x8x64xf32>
    tpu.vector_store %arg15[%c0_3, %c0_4, %c0_5, %c0_6], %5 {strides = array<i32>} : memref<8x8x8x256xf32, #tpu.memory_space<vmem>>, vector<8x8x8x64xf32>,
    %c0_7 = arith.constant 0 : index
    %c1 = arith.constant 1 : index
    %c0_8 = arith.constant 0 : index
    %c0_9 = arith.constant 0 : index
    %7 = vector.load %arg0[%c0_7, %c1, %c0_8, %c0_9] : memref<9x9x8x64xf32, #tpu.memory_space<vmem>>, vector<8x8x8x64xf32>
    %c0_10 = arith.constant 0 : index
    %c0_11 = arith.constant 0 : index
    %c0_12 = arith.constant 0 : index
    %c64 = arith.constant 64 : index
    %8 = vector.load %arg15[%c0_10, %c0_11, %c0_12, %c64] : memref<8x8x8x256xf32, #tpu.memory_space<vmem>>, vector<8x8x8x64xf32>
    tpu.vector_store %arg15[%c0_10, %c0_11, %c0_12, %c64], %7 {strides = array<i32>} : memref<8x8x8x256xf32, #tpu.memory_space<vmem>>, vector<8x8x8x64xf32>,
    %c1_13 = arith.constant 1 : index
    %c0_14 = arith.constant 0 : index
    %c0_15 = arith.constant 0 : index
    %c0_16 = arith.constant 0 : index
    %9 = vector.load %arg0[%c1_13, %c0_14, %c0_15, %c0_16] : memref<9x9x8x64xf32, #tpu.memory_space<vmem>>, vector<8x8x8x64xf32>
    %c0_17 = arith.constant 0 : index
    %c0_18 = arith.constant 0 : index
    %c0_19 = arith.constant 0 : index
    %c128 = arith.constant 128 : index
    %10 = vector.load %arg15[%c0_17, %c0_18, %c0_19, %c128] : memref<8x8x8x256xf32, #tpu.memory_space<vmem>>, vector<8x8x8x64xf32>
    tpu.vector_store %arg15[%c0_17, %c0_18, %c0_19, %c128], %9 {strides = array<i32>} : memref<8x8x8x256xf32, #tpu.memory_space<vmem>>, vector<8x8x8x64xf32>,
    %c1_20 = arith.constant 1 : index
    %c1_21 = arith.constant 1 : index
    %c0_22 = arith.constant 0 : index
    %c0_23 = arith.constant 0 : index
    %11 = vector.load %arg0[%c1_20, %c1_21, %c0_22, %c0_23] : memref<9x9x8x64xf32, #tpu.memory_space<vmem>>, vector<8x8x8x64xf32>
    %c0_24 = arith.constant 0 : index
    %c0_25 = arith.constant 0 : index
    %c0_26 = arith.constant 0 : index
    %c192 = arith.constant 192 : index
    %12 = vector.load %arg15[%c0_24, %c0_25, %c0_26, %c192] : memref<8x8x8x256xf32, #tpu.memory_space<vmem>>, vector<8x8x8x64xf32>
    tpu.vector_store %arg15[%c0_24, %c0_25, %c0_26, %c192], %11 {strides = array<i32>} : memref<8x8x8x256xf32, #tpu.memory_space<vmem>>, vector<8x8x8x64xf32>,
    %c0_27 = arith.constant 0 : index
    %c0_28 = arith.constant 0 : index
    %c0_29 = arith.constant 0 : index
    %c0_30 = arith.constant 0 : index
    %13 = vector.load %arg15[%c0_27, %c0_28, %c0_29, %c0_30] : memref<8x8x8x256xf32, #tpu.memory_space<vmem>>, vector<8x8x8x256xf32>
    %14 = vector.shape_cast %13 : vector<8x8x8x256xf32> to vector<512x256xf32>
    %15 = arith.truncf %14 : vector<512x256xf32> to vector<512x256xbf16>
    %c0_31 = arith.constant 0 : index
    %c0_32 = arith.constant 0 : index
    %16 = vector.load %arg1[%c0_31, %c0_32] : memref<256x32xbf16, #tpu.memory_space<vmem>>, vector<256x32xbf16>
    %cst = arith.constant dense<0.000000e+00> : vector<512x32xf32>
    %17 = tpu.matmul %15, %16, %cst {dimension_numbers = #tpu.dot_dimension_numbers<[1], [0], [0], [1], [0, 0, 1, 1], [], []>} : vector<512x256xbf16>, vector<256x32xbf16>, vector<512x32xf32> -> vector<512x32xf32>
    %c0_33 = arith.constant 0 : index
    %c0_34 = arith.constant 0 : index
    %18 = vector.load %arg2[%c0_33, %c0_34] : memref<1x32xf32, #tpu.memory_space<vmem>>, vector<1x32xf32>
    %c0_35 = arith.constant 0 : index
    %c0_36 = arith.constant 0 : index
    %19 = vector.load %arg3[%c0_35, %c0_36] : memref<1x32xf32, #tpu.memory_space<vmem>>, vector<1x32xf32>
    %cst_37 = arith.constant dense<0.000000e+00> : vector<32xf32>
    %20 = vector.multi_reduction <add>, %17, %cst_37 [0] : vector<512x32xf32> to vector<32xf32>
    %21 = vector.shape_cast %20 : vector<32xf32> to vector<1x32xf32>
    %22 = arith.mulf %17, %17 : vector<512x32xf32>
    %cst_38 = arith.constant dense<0.000000e+00> : vector<32xf32>
    %23 = vector.multi_reduction <add>, %22, %cst_38 [0] : vector<512x32xf32> to vector<32xf32>
    %24 = vector.shape_cast %23 : vector<32xf32> to vector<1x32xf32>
    %cst_39 = arith.constant 7.812500e-03 : f32
    %25 = vector.broadcast %cst_39 : f32 to vector<1x32xf32>
    %26 = arith.mulf %21, %25 : vector<1x32xf32>
    %cst_40 = arith.constant 7.812500e-03 : f32
    %27 = vector.broadcast %cst_40 : f32 to vector<1x32xf32>
    %28 = arith.mulf %24, %27 : vector<1x32xf32>
    %29 = arith.mulf %26, %26 : vector<1x32xf32>
    %30 = arith.subf %28, %29 : vector<1x32xf32>
    %cst_41 = arith.constant 0.000000e+00 : f32
    %31 = vector.broadcast %cst_41 : f32 to vector<1x32xf32>
    %32 = arith.maximumf %30, %31 : vector<1x32xf32>
    %33 = vector.broadcast %26 : vector<1x32xf32> to vector<512x32xf32>
    %34 = arith.subf %17, %33 : vector<512x32xf32>
    %cst_42 = arith.constant 9.99999974E-6 : f32
    %35 = vector.broadcast %cst_42 : f32 to vector<1x32xf32>
    %36 = arith.addf %32, %35 : vector<1x32xf32>
    %37 = math.rsqrt %36 : vector<1x32xf32>
    %38 = vector.broadcast %37 : vector<1x32xf32> to vector<512x32xf32>
    %39 = arith.mulf %34, %38 : vector<512x32xf32>
    %40 = vector.broadcast %18 : vector<1x32xf32> to vector<512x32xf32>
    %41 = arith.mulf %39, %40 : vector<512x32xf32>
    %42 = vector.broadcast %19 : vector<1x32xf32> to vector<512x32xf32>
    %43 = arith.addf %41, %42 : vector<512x32xf32>
    %cst_43 = arith.constant 0.000000e+00 : f32
    %44 = vector.broadcast %cst_43 : f32 to vector<512x32xf32>
    %45 = arith.maximumf %43, %44 : vector<512x32xf32>
    %46 = vector.shape_cast %45 : vector<512x32xf32> to vector<64x8x32xf32>
    %47 = vector.broadcast %4 : vector<1x8x1xf32> to vector<64x8x32xf32>
    %48 = arith.mulf %46, %47 : vector<64x8x32xf32>
    %49 = vector.shape_cast %48 : vector<64x8x32xf32> to vector<512x32xf32>
    %50 = vector.shape_cast %49 : vector<512x32xf32> to vector<4x2x4x2x8x32xf32>
    %51 = vector.extract_strided_slice %50 {offsets = [0, 0, 0, 0, 0, 0], sizes = [3, 1, 3, 1, 8, 32], strides = [1, 1, 1, 1, 1, 1]} : vector<4x2x4x2x8x32xf32> to vector<3x1x3x1x8x32xf32>
    %52 = vector.shape_cast %51 : vector<3x1x3x1x8x32xf32> to vector<3x3x8x32xf32>
    %c0_44 = arith.constant 0 : index
    %c0_45 = arith.constant 0 : index
    %c0_46 = arith.constant 0 : index
    %c0_47 = arith.constant 0 : index
    %53 = vector.load %arg16[%c0_44, %c0_45, %c0_46, %c0_47] : memref<3x3x8x512xf32, #tpu.memory_space<vmem>>, vector<3x3x8x32xf32>
    tpu.vector_store %arg16[%c0_44, %c0_45, %c0_46, %c0_47], %52 {strides = array<i32>} : memref<3x3x8x512xf32, #tpu.memory_space<vmem>>, vector<3x3x8x32xf32>,
    %54 = vector.extract_strided_slice %50 {offsets = [0, 0, 0, 1, 0, 0], sizes = [3, 1, 3, 1, 8, 32], strides = [1, 1, 1, 1, 1, 1]} : vector<4x2x4x2x8x32xf32> to vector<3x1x3x1x8x32xf32>
    %55 = vector.shape_cast %54 : vector<3x1x3x1x8x32xf32> to vector<3x3x8x32xf32>
    %c0_48 = arith.constant 0 : index
    %c0_49 = arith.constant 0 : index
    %c0_50 = arith.constant 0 : index
    %c32 = arith.constant 32 : index
    %56 = vector.load %arg16[%c0_48, %c0_49, %c0_50, %c32] : memref<3x3x8x512xf32, #tpu.memory_space<vmem>>, vector<3x3x8x32xf32>
    tpu.vector_store %arg16[%c0_48, %c0_49, %c0_50, %c32], %55 {strides = array<i32>} : memref<3x3x8x512xf32, #tpu.memory_space<vmem>>, vector<3x3x8x32xf32>,
    %57 = vector.extract_strided_slice %50 {offsets = [0, 0, 1, 0, 0, 0], sizes = [3, 1, 3, 1, 8, 32], strides = [1, 1, 1, 1, 1, 1]} : vector<4x2x4x2x8x32xf32> to vector<3x1x3x1x8x32xf32>
    %58 = vector.shape_cast %57 : vector<3x1x3x1x8x32xf32> to vector<3x3x8x32xf32>
    %c0_51 = arith.constant 0 : index
    %c0_52 = arith.constant 0 : index
    %c0_53 = arith.constant 0 : index
    %c64_54 = arith.constant 64 : index
    %59 = vector.load %arg16[%c0_51, %c0_52, %c0_53, %c64_54] : memref<3x3x8x512xf32, #tpu.memory_space<vmem>>, vector<3x3x8x32xf32>
    tpu.vector_store %arg16[%c0_51, %c0_52, %c0_53, %c64_54], %58 {strides = array<i32>} : memref<3x3x8x512xf32, #tpu.memory_space<vmem>>, vector<3x3x8x32xf32>,
    %60 = vector.extract_strided_slice %50 {offsets = [0, 0, 1, 1, 0, 0], sizes = [3, 1, 3, 1, 8, 32], strides = [1, 1, 1, 1, 1, 1]} : vector<4x2x4x2x8x32xf32> to vector<3x1x3x1x8x32xf32>
    %61 = vector.shape_cast %60 : vector<3x1x3x1x8x32xf32> to vector<3x3x8x32xf32>
    %c0_55 = arith.constant 0 : index
    %c0_56 = arith.constant 0 : index
    %c0_57 = arith.constant 0 : index
    %c96 = arith.constant 96 : index
    %62 = vector.load %arg16[%c0_55, %c0_56, %c0_57, %c96] : memref<3x3x8x512xf32, #tpu.memory_space<vmem>>, vector<3x3x8x32xf32>
    tpu.vector_store %arg16[%c0_55, %c0_56, %c0_57, %c96], %61 {strides = array<i32>} : memref<3x3x8x512xf32, #tpu.memory_space<vmem>>, vector<3x3x8x32xf32>,
    %63 = vector.extract_strided_slice %50 {offsets = [0, 1, 0, 0, 0, 0], sizes = [3, 1, 3, 1, 8, 32], strides = [1, 1, 1, 1, 1, 1]} : vector<4x2x4x2x8x32xf32> to vector<3x1x3x1x8x32xf32>
    %64 = vector.shape_cast %63 : vector<3x1x3x1x8x32xf32> to vector<3x3x8x32xf32>
    %c0_58 = arith.constant 0 : index
    %c0_59 = arith.constant 0 : index
    %c0_60 = arith.constant 0 : index
    %c128_61 = arith.constant 128 : index
    %65 = vector.load %arg16[%c0_58, %c0_59, %c0_60, %c128_61] : memref<3x3x8x512xf32, #tpu.memory_space<vmem>>, vector<3x3x8x32xf32>
    tpu.vector_store %arg16[%c0_58, %c0_59, %c0_60, %c128_61], %64 {strides = array<i32>} : memref<3x3x8x512xf32, #tpu.memory_space<vmem>>, vector<3x3x8x32xf32>,
    %66 = vector.extract_strided_slice %50 {offsets = [0, 1, 0, 1, 0, 0], sizes = [3, 1, 3, 1, 8, 32], strides = [1, 1, 1, 1, 1, 1]} : vector<4x2x4x2x8x32xf32> to vector<3x1x3x1x8x32xf32>
    %67 = vector.shape_cast %66 : vector<3x1x3x1x8x32xf32> to vector<3x3x8x32xf32>
    %c0_62 = arith.constant 0 : index
    %c0_63 = arith.constant 0 : index
    %c0_64 = arith.constant 0 : index
    %c160 = arith.constant 160 : index
    %68 = vector.load %arg16[%c0_62, %c0_63, %c0_64, %c160] : memref<3x3x8x512xf32, #tpu.memory_space<vmem>>, vector<3x3x8x32xf32>
    tpu.vector_store %arg16[%c0_62, %c0_63, %c0_64, %c160], %67 {strides = array<i32>} : memref<3x3x8x512xf32, #tpu.memory_space<vmem>>, vector<3x3x8x32xf32>,
    %69 = vector.extract_strided_slice %50 {offsets = [0, 1, 1, 0, 0, 0], sizes = [3, 1, 3, 1, 8, 32], strides = [1, 1, 1, 1, 1, 1]} : vector<4x2x4x2x8x32xf32> to vector<3x1x3x1x8x32xf32>
    %70 = vector.shape_cast %69 : vector<3x1x3x1x8x32xf32> to vector<3x3x8x32xf32>
    %c0_65 = arith.constant 0 : index
    %c0_66 = arith.constant 0 : index
    %c0_67 = arith.constant 0 : index
    %c192_68 = arith.constant 192 : index
    %71 = vector.load %arg16[%c0_65, %c0_66, %c0_67, %c192_68] : memref<3x3x8x512xf32, #tpu.memory_space<vmem>>, vector<3x3x8x32xf32>
    tpu.vector_store %arg16[%c0_65, %c0_66, %c0_67, %c192_68], %70 {strides = array<i32>} : memref<3x3x8x512xf32, #tpu.memory_space<vmem>>, vector<3x3x8x32xf32>,
    %72 = vector.extract_strided_slice %50 {offsets = [0, 1, 1, 1, 0, 0], sizes = [3, 1, 3, 1, 8, 32], strides = [1, 1, 1, 1, 1, 1]} : vector<4x2x4x2x8x32xf32> to vector<3x1x3x1x8x32xf32>
    %73 = vector.shape_cast %72 : vector<3x1x3x1x8x32xf32> to vector<3x3x8x32xf32>
    %c0_69 = arith.constant 0 : index
    %c0_70 = arith.constant 0 : index
    %c0_71 = arith.constant 0 : index
    %c224 = arith.constant 224 : index
    %74 = vector.load %arg16[%c0_69, %c0_70, %c0_71, %c224] : memref<3x3x8x512xf32, #tpu.memory_space<vmem>>, vector<3x3x8x32xf32>
    tpu.vector_store %arg16[%c0_69, %c0_70, %c0_71, %c224], %73 {strides = array<i32>} : memref<3x3x8x512xf32, #tpu.memory_space<vmem>>, vector<3x3x8x32xf32>,
    %75 = vector.extract_strided_slice %50 {offsets = [1, 0, 0, 0, 0, 0], sizes = [3, 1, 3, 1, 8, 32], strides = [1, 1, 1, 1, 1, 1]} : vector<4x2x4x2x8x32xf32> to vector<3x1x3x1x8x32xf32>
    %76 = vector.shape_cast %75 : vector<3x1x3x1x8x32xf32> to vector<3x3x8x32xf32>
    %c0_72 = arith.constant 0 : index
    %c0_73 = arith.constant 0 : index
    %c0_74 = arith.constant 0 : index
    %c256 = arith.constant 256 : index
    %77 = vector.load %arg16[%c0_72, %c0_73, %c0_74, %c256] : memref<3x3x8x512xf32, #tpu.memory_space<vmem>>, vector<3x3x8x32xf32>
    tpu.vector_store %arg16[%c0_72, %c0_73, %c0_74, %c256], %76 {strides = array<i32>} : memref<3x3x8x512xf32, #tpu.memory_space<vmem>>, vector<3x3x8x32xf32>,
    %78 = vector.extract_strided_slice %50 {offsets = [1, 0, 0, 1, 0, 0], sizes = [3, 1, 3, 1, 8, 32], strides = [1, 1, 1, 1, 1, 1]} : vector<4x2x4x2x8x32xf32> to vector<3x1x3x1x8x32xf32>
    %79 = vector.shape_cast %78 : vector<3x1x3x1x8x32xf32> to vector<3x3x8x32xf32>
    %c0_75 = arith.constant 0 : index
    %c0_76 = arith.constant 0 : index
    %c0_77 = arith.constant 0 : index
    %c288 = arith.constant 288 : index
    %80 = vector.load %arg16[%c0_75, %c0_76, %c0_77, %c288] : memref<3x3x8x512xf32, #tpu.memory_space<vmem>>, vector<3x3x8x32xf32>
    tpu.vector_store %arg16[%c0_75, %c0_76, %c0_77, %c288], %79 {strides = array<i32>} : memref<3x3x8x512xf32, #tpu.memory_space<vmem>>, vector<3x3x8x32xf32>,
    %81 = vector.extract_strided_slice %50 {offsets = [1, 0, 1, 0, 0, 0], sizes = [3, 1, 3, 1, 8, 32], strides = [1, 1, 1, 1, 1, 1]} : vector<4x2x4x2x8x32xf32> to vector<3x1x3x1x8x32xf32>
    %82 = vector.shape_cast %81 : vector<3x1x3x1x8x32xf32> to vector<3x3x8x32xf32>
    %c0_78 = arith.constant 0 : index
    %c0_79 = arith.constant 0 : index
    %c0_80 = arith.constant 0 : index
    %c320 = arith.constant 320 : index
    %83 = vector.load %arg16[%c0_78, %c0_79, %c0_80, %c320] : memref<3x3x8x512xf32, #tpu.memory_space<vmem>>, vector<3x3x8x32xf32>
    tpu.vector_store %arg16[%c0_78, %c0_79, %c0_80, %c320], %82 {strides = array<i32>} : memref<3x3x8x512xf32, #tpu.memory_space<vmem>>, vector<3x3x8x32xf32>,
    %84 = vector.extract_strided_slice %50 {offsets = [1, 0, 1, 1, 0, 0], sizes = [3, 1, 3, 1, 8, 32], strides = [1, 1, 1, 1, 1, 1]} : vector<4x2x4x2x8x32xf32> to vector<3x1x3x1x8x32xf32>
    %85 = vector.shape_cast %84 : vector<3x1x3x1x8x32xf32> to vector<3x3x8x32xf32>
    %c0_81 = arith.constant 0 : index
    %c0_82 = arith.constant 0 : index
    %c0_83 = arith.constant 0 : index
    %c352 = arith.constant 352 : index
    %86 = vector.load %arg16[%c0_81, %c0_82, %c0_83, %c352] : memref<3x3x8x512xf32, #tpu.memory_space<vmem>>, vector<3x3x8x32xf32>
    tpu.vector_store %arg16[%c0_81, %c0_82, %c0_83, %c352], %85 {strides = array<i32>} : memref<3x3x8x512xf32, #tpu.memory_space<vmem>>, vector<3x3x8x32xf32>,
    %87 = vector.extract_strided_slice %50 {offsets = [1, 1, 0, 0, 0, 0], sizes = [3, 1, 3, 1, 8, 32], strides = [1, 1, 1, 1, 1, 1]} : vector<4x2x4x2x8x32xf32> to vector<3x1x3x1x8x32xf32>
    %88 = vector.shape_cast %87 : vector<3x1x3x1x8x32xf32> to vector<3x3x8x32xf32>
    %c0_84 = arith.constant 0 : index
    %c0_85 = arith.constant 0 : index
    %c0_86 = arith.constant 0 : index
    %c384 = arith.constant 384 : index
    %89 = vector.load %arg16[%c0_84, %c0_85, %c0_86, %c384] : memref<3x3x8x512xf32, #tpu.memory_space<vmem>>, vector<3x3x8x32xf32>
    tpu.vector_store %arg16[%c0_84, %c0_85, %c0_86, %c384], %88 {strides = array<i32>} : memref<3x3x8x512xf32, #tpu.memory_space<vmem>>, vector<3x3x8x32xf32>,
    %90 = vector.extract_strided_slice %50 {offsets = [1, 1, 0, 1, 0, 0], sizes = [3, 1, 3, 1, 8, 32], strides = [1, 1, 1, 1, 1, 1]} : vector<4x2x4x2x8x32xf32> to vector<3x1x3x1x8x32xf32>
    %91 = vector.shape_cast %90 : vector<3x1x3x1x8x32xf32> to vector<3x3x8x32xf32>
    %c0_87 = arith.constant 0 : index
    %c0_88 = arith.constant 0 : index
    %c0_89 = arith.constant 0 : index
    %c416 = arith.constant 416 : index
    %92 = vector.load %arg16[%c0_87, %c0_88, %c0_89, %c416] : memref<3x3x8x512xf32, #tpu.memory_space<vmem>>, vector<3x3x8x32xf32>
    tpu.vector_store %arg16[%c0_87, %c0_88, %c0_89, %c416], %91 {strides = array<i32>} : memref<3x3x8x512xf32, #tpu.memory_space<vmem>>, vector<3x3x8x32xf32>,
    %93 = vector.extract_strided_slice %50 {offsets = [1, 1, 1, 0, 0, 0], sizes = [3, 1, 3, 1, 8, 32], strides = [1, 1, 1, 1, 1, 1]} : vector<4x2x4x2x8x32xf32> to vector<3x1x3x1x8x32xf32>
    %94 = vector.shape_cast %93 : vector<3x1x3x1x8x32xf32> to vector<3x3x8x32xf32>
    %c0_90 = arith.constant 0 : index
    %c0_91 = arith.constant 0 : index
    %c0_92 = arith.constant 0 : index
    %c448 = arith.constant 448 : index
    %95 = vector.load %arg16[%c0_90, %c0_91, %c0_92, %c448] : memref<3x3x8x512xf32, #tpu.memory_space<vmem>>, vector<3x3x8x32xf32>
    tpu.vector_store %arg16[%c0_90, %c0_91, %c0_92, %c448], %94 {strides = array<i32>} : memref<3x3x8x512xf32, #tpu.memory_space<vmem>>, vector<3x3x8x32xf32>,
    %96 = vector.extract_strided_slice %50 {offsets = [1, 1, 1, 1, 0, 0], sizes = [3, 1, 3, 1, 8, 32], strides = [1, 1, 1, 1, 1, 1]} : vector<4x2x4x2x8x32xf32> to vector<3x1x3x1x8x32xf32>
    %97 = vector.shape_cast %96 : vector<3x1x3x1x8x32xf32> to vector<3x3x8x32xf32>
    %c0_93 = arith.constant 0 : index
    %c0_94 = arith.constant 0 : index
    %c0_95 = arith.constant 0 : index
    %c480 = arith.constant 480 : index
    %98 = vector.load %arg16[%c0_93, %c0_94, %c0_95, %c480] : memref<3x3x8x512xf32, #tpu.memory_space<vmem>>, vector<3x3x8x32xf32>
    tpu.vector_store %arg16[%c0_93, %c0_94, %c0_95, %c480], %97 {strides = array<i32>} : memref<3x3x8x512xf32, #tpu.memory_space<vmem>>, vector<3x3x8x32xf32>,
    %c0_96 = arith.constant 0 : index
    %c0_97 = arith.constant 0 : index
    %c0_98 = arith.constant 0 : index
    %c0_99 = arith.constant 0 : index
    %99 = vector.load %arg16[%c0_96, %c0_97, %c0_98, %c0_99] : memref<3x3x8x512xf32, #tpu.memory_space<vmem>>, vector<3x3x8x512xf32>
    %100 = vector.shape_cast %99 : vector<3x3x8x512xf32> to vector<72x512xf32>
    %101 = arith.truncf %100 : vector<72x512xf32> to vector<72x512xbf16>
    %c0_100 = arith.constant 0 : index
    %c0_101 = arith.constant 0 : index
    %102 = vector.load %arg4[%c0_100, %c0_101] : memref<512x64xbf16, #tpu.memory_space<vmem>>, vector<512x64xbf16>
    %cst_102 = arith.constant dense<0.000000e+00> : vector<72x64xf32>
    %103 = tpu.matmul %101, %102, %cst_102 {dimension_numbers = #tpu.dot_dimension_numbers<[1], [0], [0], [1], [0, 0, 1, 1], [], []>} : vector<72x512xbf16>, vector<512x64xbf16>, vector<72x64xf32> -> vector<72x64xf32>
    %c0_103 = arith.constant 0 : index
    %c0_104 = arith.constant 0 : index
    %104 = vector.load %arg5[%c0_103, %c0_104] : memref<1x64xf32, #tpu.memory_space<vmem>>, vector<1x64xf32>
    %c0_105 = arith.constant 0 : index
    %c0_106 = arith.constant 0 : index
    %105 = vector.load %arg6[%c0_105, %c0_106] : memref<1x64xf32, #tpu.memory_space<vmem>>, vector<1x64xf32>
    %cst_107 = arith.constant dense<0.000000e+00> : vector<64xf32>
    %106 = vector.multi_reduction <add>, %103, %cst_107 [0] : vector<72x64xf32> to vector<64xf32>
    %107 = vector.shape_cast %106 : vector<64xf32> to vector<1x64xf32>
    %108 = arith.mulf %103, %103 : vector<72x64xf32>
    %cst_108 = arith.constant dense<0.000000e+00> : vector<64xf32>
    %109 = vector.multi_reduction <add>, %108, %cst_108 [0] : vector<72x64xf32> to vector<64xf32>
    %110 = vector.shape_cast %109 : vector<64xf32> to vector<1x64xf32>
    %cst_109 = arith.constant 0.055555556 : f32
    %111 = vector.broadcast %cst_109 : f32 to vector<1x64xf32>
    %112 = arith.mulf %107, %111 : vector<1x64xf32>
    %cst_110 = arith.constant 0.055555556 : f32
    %113 = vector.broadcast %cst_110 : f32 to vector<1x64xf32>
    %114 = arith.mulf %110, %113 : vector<1x64xf32>
    %115 = arith.mulf %112, %112 : vector<1x64xf32>
    %116 = arith.subf %114, %115 : vector<1x64xf32>
    %cst_111 = arith.constant 0.000000e+00 : f32
    %117 = vector.broadcast %cst_111 : f32 to vector<1x64xf32>
    %118 = arith.maximumf %116, %117 : vector<1x64xf32>
    %119 = vector.broadcast %112 : vector<1x64xf32> to vector<72x64xf32>
    %120 = arith.subf %103, %119 : vector<72x64xf32>
    %cst_112 = arith.constant 9.99999974E-6 : f32
    %121 = vector.broadcast %cst_112 : f32 to vector<1x64xf32>
    %122 = arith.addf %118, %121 : vector<1x64xf32>
    %123 = math.rsqrt %122 : vector<1x64xf32>
    %124 = vector.broadcast %123 : vector<1x64xf32> to vector<72x64xf32>
    %125 = arith.mulf %120, %124 : vector<72x64xf32>
    %126 = vector.broadcast %104 : vector<1x64xf32> to vector<72x64xf32>
    %127 = arith.mulf %125, %126 : vector<72x64xf32>
    %128 = vector.broadcast %105 : vector<1x64xf32> to vector<72x64xf32>
    %129 = arith.addf %127, %128 : vector<72x64xf32>
    %cst_113 = arith.constant 0.000000e+00 : f32
    %130 = vector.broadcast %cst_113 : f32 to vector<72x64xf32>
    %131 = arith.maximumf %129, %130 : vector<72x64xf32>
    %132 = vector.shape_cast %131 : vector<72x64xf32> to vector<9x8x64xf32>
    %133 = vector.broadcast %4 : vector<1x8x1xf32> to vector<9x8x64xf32>
    %134 = arith.mulf %132, %133 : vector<9x8x64xf32>
    %135 = vector.shape_cast %134 : vector<9x8x64xf32> to vector<72x64xf32>
    %136 = vector.shape_cast %135 : vector<72x64xf32> to vector<3x3x8x64xf32>
    %137 = vector.extract_strided_slice %136 {offsets = [0, 0, 0, 0], sizes = [1, 1, 8, 64], strides = [1, 1, 1, 1]} : vector<3x3x8x64xf32> to vector<1x1x8x64xf32>
    %c0_114 = arith.constant 0 : index
    %c0_115 = arith.constant 0 : index
    %c0_116 = arith.constant 0 : index
    %c0_117 = arith.constant 0 : index
    %138 = vector.load %arg17[%c0_114, %c0_115, %c0_116, %c0_117] : memref<1x1x8x576xf32, #tpu.memory_space<vmem>>, vector<1x1x8x64xf32>
    tpu.vector_store %arg17[%c0_114, %c0_115, %c0_116, %c0_117], %137 {strides = array<i32>} : memref<1x1x8x576xf32, #tpu.memory_space<vmem>>, vector<1x1x8x64xf32>,
    %139 = vector.extract_strided_slice %136 {offsets = [0, 1, 0, 0], sizes = [1, 1, 8, 64], strides = [1, 1, 1, 1]} : vector<3x3x8x64xf32> to vector<1x1x8x64xf32>
    %c0_118 = arith.constant 0 : index
    %c0_119 = arith.constant 0 : index
    %c0_120 = arith.constant 0 : index
    %c64_121 = arith.constant 64 : index
    %140 = vector.load %arg17[%c0_118, %c0_119, %c0_120, %c64_121] : memref<1x1x8x576xf32, #tpu.memory_space<vmem>>, vector<1x1x8x64xf32>
    tpu.vector_store %arg17[%c0_118, %c0_119, %c0_120, %c64_121], %139 {strides = array<i32>} : memref<1x1x8x576xf32, #tpu.memory_space<vmem>>, vector<1x1x8x64xf32>,
    %141 = vector.extract_strided_slice %136 {offsets = [0, 2, 0, 0], sizes = [1, 1, 8, 64], strides = [1, 1, 1, 1]} : vector<3x3x8x64xf32> to vector<1x1x8x64xf32>
    %c0_122 = arith.constant 0 : index
    %c0_123 = arith.constant 0 : index
    %c0_124 = arith.constant 0 : index
    %c128_125 = arith.constant 128 : index
    %142 = vector.load %arg17[%c0_122, %c0_123, %c0_124, %c128_125] : memref<1x1x8x576xf32, #tpu.memory_space<vmem>>, vector<1x1x8x64xf32>
    tpu.vector_store %arg17[%c0_122, %c0_123, %c0_124, %c128_125], %141 {strides = array<i32>} : memref<1x1x8x576xf32, #tpu.memory_space<vmem>>, vector<1x1x8x64xf32>,
    %143 = vector.extract_strided_slice %136 {offsets = [1, 0, 0, 0], sizes = [1, 1, 8, 64], strides = [1, 1, 1, 1]} : vector<3x3x8x64xf32> to vector<1x1x8x64xf32>
    %c0_126 = arith.constant 0 : index
    %c0_127 = arith.constant 0 : index
    %c0_128 = arith.constant 0 : index
    %c192_129 = arith.constant 192 : index
    %144 = vector.load %arg17[%c0_126, %c0_127, %c0_128, %c192_129] : memref<1x1x8x576xf32, #tpu.memory_space<vmem>>, vector<1x1x8x64xf32>
    tpu.vector_store %arg17[%c0_126, %c0_127, %c0_128, %c192_129], %143 {strides = array<i32>} : memref<1x1x8x576xf32, #tpu.memory_space<vmem>>, vector<1x1x8x64xf32>,
    %145 = vector.extract_strided_slice %136 {offsets = [1, 1, 0, 0], sizes = [1, 1, 8, 64], strides = [1, 1, 1, 1]} : vector<3x3x8x64xf32> to vector<1x1x8x64xf32>
    %c0_130 = arith.constant 0 : index
    %c0_131 = arith.constant 0 : index
    %c0_132 = arith.constant 0 : index
    %c256_133 = arith.constant 256 : index
    %146 = vector.load %arg17[%c0_130, %c0_131, %c0_132, %c256_133] : memref<1x1x8x576xf32, #tpu.memory_space<vmem>>, vector<1x1x8x64xf32>
    tpu.vector_store %arg17[%c0_130, %c0_131, %c0_132, %c256_133], %145 {strides = array<i32>} : memref<1x1x8x576xf32, #tpu.memory_space<vmem>>, vector<1x1x8x64xf32>,
    %147 = vector.extract_strided_slice %136 {offsets = [1, 2, 0, 0], sizes = [1, 1, 8, 64], strides = [1, 1, 1, 1]} : vector<3x3x8x64xf32> to vector<1x1x8x64xf32>
    %c0_134 = arith.constant 0 : index
    %c0_135 = arith.constant 0 : index
    %c0_136 = arith.constant 0 : index
    %c320_137 = arith.constant 320 : index
    %148 = vector.load %arg17[%c0_134, %c0_135, %c0_136, %c320_137] : memref<1x1x8x576xf32, #tpu.memory_space<vmem>>, vector<1x1x8x64xf32>
    tpu.vector_store %arg17[%c0_134, %c0_135, %c0_136, %c320_137], %147 {strides = array<i32>} : memref<1x1x8x576xf32, #tpu.memory_space<vmem>>, vector<1x1x8x64xf32>,
    %149 = vector.extract_strided_slice %136 {offsets = [2, 0, 0, 0], sizes = [1, 1, 8, 64], strides = [1, 1, 1, 1]} : vector<3x3x8x64xf32> to vector<1x1x8x64xf32>
    %c0_138 = arith.constant 0 : index
    %c0_139 = arith.constant 0 : index
    %c0_140 = arith.constant 0 : index
    %c384_141 = arith.constant 384 : index
    %150 = vector.load %arg17[%c0_138, %c0_139, %c0_140, %c384_141] : memref<1x1x8x576xf32, #tpu.memory_space<vmem>>, vector<1x1x8x64xf32>
    tpu.vector_store %arg17[%c0_138, %c0_139, %c0_140, %c384_141], %149 {strides = array<i32>} : memref<1x1x8x576xf32, #tpu.memory_space<vmem>>, vector<1x1x8x64xf32>,
    %151 = vector.extract_strided_slice %136 {offsets = [2, 1, 0, 0], sizes = [1, 1, 8, 64], strides = [1, 1, 1, 1]} : vector<3x3x8x64xf32> to vector<1x1x8x64xf32>
    %c0_142 = arith.constant 0 : index
    %c0_143 = arith.constant 0 : index
    %c0_144 = arith.constant 0 : index
    %c448_145 = arith.constant 448 : index
    %152 = vector.load %arg17[%c0_142, %c0_143, %c0_144, %c448_145] : memref<1x1x8x576xf32, #tpu.memory_space<vmem>>, vector<1x1x8x64xf32>
    tpu.vector_store %arg17[%c0_142, %c0_143, %c0_144, %c448_145], %151 {strides = array<i32>} : memref<1x1x8x576xf32, #tpu.memory_space<vmem>>, vector<1x1x8x64xf32>,
    %153 = vector.extract_strided_slice %136 {offsets = [2, 2, 0, 0], sizes = [1, 1, 8, 64], strides = [1, 1, 1, 1]} : vector<3x3x8x64xf32> to vector<1x1x8x64xf32>
    %c0_146 = arith.constant 0 : index
    %c0_147 = arith.constant 0 : index
    %c0_148 = arith.constant 0 : index
    %c512 = arith.constant 512 : index
    %154 = vector.load %arg17[%c0_146, %c0_147, %c0_148, %c512] : memref<1x1x8x576xf32, #tpu.memory_space<vmem>>, vector<1x1x8x64xf32>
    tpu.vector_store %arg17[%c0_146, %c0_147, %c0_148, %c512], %153 {strides = array<i32>} : memref<1x1x8x576xf32, #tpu.memory_space<vmem>>, vector<1x1x8x64xf32>,
    %c0_149 = arith.constant 0 : index
    %c0_150 = arith.constant 0 : index
    %c0_151 = arith.constant 0 : index
    %c0_152 = arith.constant 0 : index
    %155 = vector.load %arg17[%c0_149, %c0_150, %c0_151, %c0_152] : memref<1x1x8x576xf32, #tpu.memory_space<vmem>>, vector<1x1x8x576xf32>
    %156 = vector.shape_cast %155 : vector<1x1x8x576xf32> to vector<8x576xf32>
    %157 = arith.truncf %156 : vector<8x576xf32> to vector<8x576xbf16>
    %c0_153 = arith.constant 0 : index
    %c0_154 = arith.constant 0 : index
    %158 = vector.load %arg7[%c0_153, %c0_154] : memref<576x64xbf16, #tpu.memory_space<vmem>>, vector<576x64xbf16>
    %cst_155 = arith.constant dense<0.000000e+00> : vector<8x64xf32>
    %159 = tpu.matmul %157, %158, %cst_155 {dimension_numbers = #tpu.dot_dimension_numbers<[1], [0], [0], [1], [0, 0, 1, 1], [], []>} : vector<8x576xbf16>, vector<576x64xbf16>, vector<8x64xf32> -> vector<8x64xf32>
    %c0_156 = arith.constant 0 : index
    %c0_157 = arith.constant 0 : index
    %160 = vector.load %arg8[%c0_156, %c0_157] : memref<1x64xf32, #tpu.memory_space<vmem>>, vector<1x64xf32>
    %c0_158 = arith.constant 0 : index
    %c0_159 = arith.constant 0 : index
    %161 = vector.load %arg9[%c0_158, %c0_159] : memref<1x64xf32, #tpu.memory_space<vmem>>, vector<1x64xf32>
    %cst_160 = arith.constant dense<0.000000e+00> : vector<64xf32>
    %162 = vector.multi_reduction <add>, %159, %cst_160 [0] : vector<8x64xf32> to vector<64xf32>
    %163 = vector.shape_cast %162 : vector<64xf32> to vector<1x64xf32>
    %164 = arith.mulf %159, %159 : vector<8x64xf32>
    %cst_161 = arith.constant dense<0.000000e+00> : vector<64xf32>
    %165 = vector.multi_reduction <add>, %164, %cst_161 [0] : vector<8x64xf32> to vector<64xf32>
    %166 = vector.shape_cast %165 : vector<64xf32> to vector<1x64xf32>
    %cst_162 = arith.constant 5.000000e-01 : f32
    %167 = vector.broadcast %cst_162 : f32 to vector<1x64xf32>
    %168 = arith.mulf %163, %167 : vector<1x64xf32>
    %cst_163 = arith.constant 5.000000e-01 : f32
    %169 = vector.broadcast %cst_163 : f32 to vector<1x64xf32>
    %170 = arith.mulf %166, %169 : vector<1x64xf32>
    %171 = arith.mulf %168, %168 : vector<1x64xf32>
    %172 = arith.subf %170, %171 : vector<1x64xf32>
    %cst_164 = arith.constant 0.000000e+00 : f32
    %173 = vector.broadcast %cst_164 : f32 to vector<1x64xf32>
    %174 = arith.maximumf %172, %173 : vector<1x64xf32>
    %175 = vector.broadcast %168 : vector<1x64xf32> to vector<8x64xf32>
    %176 = arith.subf %159, %175 : vector<8x64xf32>
    %cst_165 = arith.constant 9.99999974E-6 : f32
    %177 = vector.broadcast %cst_165 : f32 to vector<1x64xf32>
    %178 = arith.addf %174, %177 : vector<1x64xf32>
    %179 = math.rsqrt %178 : vector<1x64xf32>
    %180 = vector.broadcast %179 : vector<1x64xf32> to vector<8x64xf32>
    %181 = arith.mulf %176, %180 : vector<8x64xf32>
    %182 = vector.broadcast %160 : vector<1x64xf32> to vector<8x64xf32>
    %183 = arith.mulf %181, %182 : vector<8x64xf32>
    %184 = vector.broadcast %161 : vector<1x64xf32> to vector<8x64xf32>
    %185 = arith.addf %183, %184 : vector<8x64xf32>
    %cst_166 = arith.constant 0.000000e+00 : f32
    %186 = vector.broadcast %cst_166 : f32 to vector<8x64xf32>
    %187 = arith.maximumf %185, %186 : vector<8x64xf32>
    %188 = arith.truncf %187 : vector<8x64xf32> to vector<8x64xbf16>
    %c0_167 = arith.constant 0 : index
    %c0_168 = arith.constant 0 : index
    %189 = vector.load %arg10[%c0_167, %c0_168] : memref<64x256xbf16, #tpu.memory_space<vmem>>, vector<64x256xbf16>
    %cst_169 = arith.constant dense<0.000000e+00> : vector<8x256xf32>
    %190 = tpu.matmul %188, %189, %cst_169 {dimension_numbers = #tpu.dot_dimension_numbers<[1], [0], [0], [1], [0, 0, 1, 1], [], []>} : vector<8x64xbf16>, vector<64x256xbf16>, vector<8x256xf32> -> vector<8x256xf32>
    %c0_170 = arith.constant 0 : index
    %c0_171 = arith.constant 0 : index
    %191 = vector.load %arg11[%c0_170, %c0_171] : memref<1x256xf32, #tpu.memory_space<vmem>>, vector<1x256xf32>
    %192 = vector.broadcast %191 : vector<1x256xf32> to vector<8x256xf32>
    %193 = arith.addf %190, %192 : vector<8x256xf32>
    %cst_172 = arith.constant 0.000000e+00 : f32
    %194 = vector.broadcast %cst_172 : f32 to vector<8x256xf32>
    %195 = arith.cmpf ogt, %193, %194 : vector<8x256xf32>
    %cst_173 = arith.constant 0.00999999977 : f32
    %196 = vector.broadcast %cst_173 : f32 to vector<8x256xf32>
    %197 = arith.mulf %196, %193 : vector<8x256xf32>
    %198 = arith.select %195, %193, %197 : vector<8x256xi1>, vector<8x256xf32>
    %199 = arith.truncf %198 : vector<8x256xf32> to vector<8x256xbf16>
    %c0_174 = arith.constant 0 : index
    %c0_175 = arith.constant 0 : index
    %200 = vector.load %arg12[%c0_174, %c0_175] : memref<256x5xbf16, #tpu.memory_space<vmem>>, vector<256x5xbf16>
    %cst_176 = arith.constant dense<0.000000e+00> : vector<8x5xf32>
    %201 = tpu.matmul %199, %200, %cst_176 {dimension_numbers = #tpu.dot_dimension_numbers<[1], [0], [0], [1], [0, 0, 1, 1], [], []>} : vector<8x256xbf16>, vector<256x5xbf16>, vector<8x5xf32> -> vector<8x5xf32>
    %c0_177 = arith.constant 0 : index
    %c0_178 = arith.constant 0 : index
    %202 = vector.load %arg13[%c0_177, %c0_178] : memref<1x5xf32, #tpu.memory_space<vmem>>, vector<1x5xf32>
    %203 = vector.broadcast %202 : vector<1x5xf32> to vector<8x5xf32>
    %204 = arith.addf %201, %203 : vector<8x5xf32>
    %205 = vector.extract_strided_slice %204 {offsets = [0, 0], sizes = [2, 4], strides = [1, 1]} : vector<8x5xf32> to vector<2x4xf32>
    %206 = vector.extract_strided_slice %204 {offsets = [0, 4], sizes = [2, 1], strides = [1, 1]} : vector<8x5xf32> to vector<2x1xf32>
    %207 = vector.shape_cast %205 : vector<2x4xf32> to vector<1x2x4xf32>
    %cst_179 = arith.constant dense<0.000000e+00> : vector<1xf32>
    %208 = vector.multi_reduction <add>, %207, %cst_179 [1, 2] : vector<1x2x4xf32> to vector<1xf32>
    %209 = vector.shape_cast %208 : vector<1xf32> to vector<1x1x1xf32>
    %210 = vector.extract %209[0, 0, 0] : f32 from vector<1x1x1xf32>
    %cst_180 = arith.constant 1.250000e-01 : f32
    %211 = arith.mulf %210, %cst_180 : f32
    %212 = vector.broadcast %211 : f32 to vector<2x4xf32>
    %213 = arith.subf %205, %212 : vector<2x4xf32>
    %214 = vector.broadcast %206 : vector<2x1xf32> to vector<2x4xf32>
    %215 = arith.addf %214, %213 : vector<2x4xf32>
    %c0_181 = arith.constant 0 : index
    %c0_182 = arith.constant 0 : index
    %216 = vector.load %arg14[%c0_181, %c0_182] : memref<2x4xf32, #tpu.memory_space<vmem>>, vector<2x4xf32>
    tpu.vector_store %arg14[%c0_181, %c0_182], %215 {strides = array<i32>} : memref<2x4xf32, #tpu.memory_space<vmem>>, vector<2x4xf32>,
    return
  }
}

</mosaic_0001>

<bundles_post_ra>
// kernel: duel_cnn_forward.1
= control target key start
LH: loop header
LB: loop body
LE: loop exit
PB: predicated region body
PF: predicated region fallthrough
CT: control target
= control target key end

     0   :  { %s5000_s17 = smov 64   ;;  %s7931_s0 = inlined_call_operand.vmem [shape: f32[9,9,8,64], index: 0, kind: input, shape index: {}]   ;;  %s7932_s1 = inlined_call_operand.vmem [shape: bf16[256,32], index: 1, kind: input, shape index: {}]   ;;  %s7933_s2 = inlined_call_operand.vmem [shape: f32[1,32], index: 2, kind: input, shape index: {}]   ;;  %s7934_s3 = inlined_call_operand.vmem [shape: f32[1,32], index: 3, kind: input, shape index: {}]   ;;  %s7935_s4 = inlined_call_operand.vmem [shape: bf16[512,64], index: 4, kind: input, shape index: {}]   ;;  %s7936_s5 = inlined_call_operand.vmem [shape: f32[1,64], index: 5, kind: input, shape index: {}]   ;;  %s7937_s6 = inlined_call_operand.vmem [shape: f32[1,64], index: 6, kind: input, shape index: {}]   ;;  %s7938_s7 = inlined_call_operand.vmem [shape: bf16[576,64], index: 7, kind: input, shape index: {}]   ;;  %s7939_s8 = inlined_call_operand.vmem [shape: f32[1,64], index: 8, kind: input, shape index: {}]   ;;  %s7940_s9 = inlined_call_operand.vmem [shape: f32[1,64], index: 9, kind: input, shape index: {}]   ;;  %s7941_s10 = inlined_call_operand.vmem [shape: bf16[64,256], index: 10, kind: input, shape index: {}]   ;;  %s7942_s11 = inlined_call_operand.vmem [shape: f32[1,256], index: 11, kind: input, shape index: {}]   ;;  %s7943_s12 = inlined_call_operand.vmem [shape: bf16[256,5], index: 12, kind: input, shape index: {}]   ;;  %s7944_s13 = inlined_call_operand.vmem [shape: f32[1,5], index: 13, kind: input, shape index: {}]   ;;  %s7945_s14 = inlined_call_operand.hbm [shape: f32[2,4], index: 14, kind: output, shape index: {}]  }
   0x1   :  { %v5084_v0 = vld [vmem:[%s7931_s0 + $0x50] sm:$0xff]  ;;  %v5089_v1 = vld [vmem:[%s7931_s0 + $0x8] sm:$0xff]  ;;  %v5098_v2 = vld [vmem:[%s7931_s0 + $0x18] sm:$0xff] }
   0x2   :  { %827 = vrot.lane.b32.xlu1 %v5084_v0, %s5000_s17  ;;  %312 = vrot.lane.b32.xlu0 %v5089_v1, %s5000_s17  ;;  %v5105_v3 = vld [vmem:[%s7931_s0 + $0x58] sm:$0xff]  ;;  %v5110_v4 = vld [vmem:[%s7931_s0 + $0x10] sm:$0xff] }
   0x3   :  { %316 = vrot.lane.b32.xlu2 %v5098_v2, %s5000_s17 }
   0x4   :  { %19 = vsyncpa [#allocation6], 0  ;;  %v5115_v5 = vld [vmem:[%s7931_s0 + $0x20] sm:$0xff]  ;;  %v5126_v6 = vld [vmem:[%s7931_s0 + $0x68] sm:$0xff]  ;;  %vm118_vm0 = vcmask 523264   ;;  %vm504_vm1 = vcmask 1048064  }
   0x5   :  { %v5131_v7 = vld [vmem:[%s7931_s0 + $0x60] sm:$0xff]  ;;  %v5136_v8 = vld [vmem:[%s7931_s0 + $0x28] sm:$0xff]  ;;  %v5147_v9 = vld [vmem:[%s7931_s0 + $0x30] sm:$0xff]  ;;  %635 = vst.msk [vmem:[#allocation2 + $0x18] sm:$0xff] %vm118_vm0, %v5084_v0  ;;  %vm1743_vm2 = vcmask 261120   ;;  %s5002_s28 = smov 32  }
   0x6   :  { %v5152_v10 = vld [vmem:[%s7931_s0 + $0x70] sm:$0xff]  ;;  %v5157_v11 = vld [vmem:[%s7931_s0 + $0x78] sm:$0xff]  ;;  %v4206_v12 = vld [vmem:[%s7931_s0 + $0x40] sm:$0xff]  ;;  %121 = vst.msk [vmem:[#allocation2 + $0x20] sm:$0xff] %vm118_vm0, %v5110_v4  ;;  %s5003_s29 = smov 96   ;;  %vm2525_vm7 = vcmask 523520  }
   0x7   :  { %v5171_v13 = vld [vmem:[%s7931_s0 + $0x38] sm:$0xff]  ;;  %v5176_v14 = vld [vmem:[%s7931_s0 + $0x80] sm:$0xff]  ;;  %v5192_v17 = vld [vmem:[%s7931_s0 + $0x88] sm:$0xff]  ;;  %120 = vst.msk [vmem:[#allocation2 + $0x10] sm:$0xff] %vm118_vm0, %v5089_v1  ;;  %vm2571_vm8 = vcmask 785920   ;;  %vm2611_vm9 = vcmask 1048320  }
   0x8   :  { %v4833_v15 = vld [vmem:[%s7932_s1 + $0x38] sm:$0xff]  ;;  %v4832_v18 = vld [vmem:[%s7932_s1 + $0x30] sm:$0xff]  ;;  %v4831_v20 = vld [vmem:[%s7932_s1 + $0x28] sm:$0xff]  ;;  %122 = vst.msk [vmem:[#allocation2 + $0x30] sm:$0xff] %vm118_vm0, %v5098_v2  ;;  %s4189_s15 = sshll.u32 %s7945_s14, 4  ;;  %s4190_s15 = int_to_ptr.hbm [resolvable:$true] %s4189_s15 }
   0x9   :  { %v4841_v16 = vld [vmem:[%s7932_s1 + $0x78] sm:$0xff]  ;;  %1403 = vmatpush.bf16.msra.mxu0 %v4833_v15  ;;  %4934 = vmatpush.bf16.msra.mxu3 %v4833_v15  ;;  %v4840_v19 = vld [vmem:[%s7932_s1 + $0x70] sm:$0xff]  ;;  %v4839_v21 = vld [vmem:[%s7932_s1 + $0x68] sm:$0xff]  ;;  %637 = vst.msk [vmem:[#allocation2 + $0x38] sm:$0xff] %vm118_vm0, %v5131_v7 }
   0xa   :  { %829 = vrot.lane.b32.xlu1 %v5105_v3, %s5000_s17  ;;  %314 = vrot.lane.b32.xlu0 %v5110_v4, %s5000_s17  ;;  %v5215_v22 = vld [vmem:[%s7931_s0 + $0xa0] sm:$0xff]  ;;  %v5220_v23 = vld [vmem:[%s7931_s0 + $0x98] sm:$0xff]  ;;  %636 = vst.msk [vmem:[#allocation2 + $0x28] sm:$0xff] %vm118_vm0, %v5105_v3 }
   0xb   :  { %318 = vrot.lane.b32.xlu2 %v5115_v5, %s5000_s17  ;;  %1572 = vmatpush.bf16.msra.mxu1 %v4841_v16  ;;  %v4830_v24 = vld [vmem:[%s7932_s1 + $0x20] sm:$0xff]  ;;  %v5237_v26 = vld [vmem:[%s7931_s0 + $0xa8] sm:$0xff]  ;;  %v5242_v27 = vld [vmem:[%s7931_s0 + $0xb0] sm:$0xff]  ;;  %123 = vst.msk [vmem:[#allocation2 + $0x40] sm:$0xff] %vm118_vm0, %v5115_v5 }
   0xc   :  { %4942 = vmatpush.bf16.msra.mxu2 %v4841_v16  ;;  %v4838_v25 = vld [vmem:[%s7932_s1 + $0x60] sm:$0xff]  ;;  %v4263_v29 = vld [vmem:[%s7931_s0 + $0x48] sm:$0xff]  ;;  %v4829_v31 = vld [vmem:[%s7932_s1 + $0x18] sm:$0xff]  ;;  %124 = vst.msk [vmem:[#allocation2 + $0x50] sm:$0xff] %vm118_vm0, %v5136_v8 }
   0xd   :  { %1404 = vmatpush.bf16.msra.mxu0 %v4832_v18  ;;  %4935 = vmatpush.bf16.msra.mxu3 %v4832_v18  ;;  %v5257_v28 = vld [vmem:[%s7931_s0 + $0xc0] sm:$0xff]  ;;  %634 = vst.msk [vmem:[#allocation2 + $0x8] sm:$0xff] %vm118_vm0, %v4263_v29  ;;  %v4837_v32 = vld [vmem:[%s7932_s1 + $0x58] sm:$0xff]  ;;  %v5280_v33 = vld [vmem:[%s7931_s0 + $0xd0] sm:$0xff] }
   0xe   :  { %v54_v30 = vld [vmem:[%s7931_s0] sm:$0xff]  ;;  %v5289_v34 = vld [vmem:[%s7931_s0 + $0xc8] sm:$0xff]  ;;  %v4828_v35 = vld [vmem:[%s7932_s1 + $0x10] sm:$0xff]  ;;  %638 = vst.msk [vmem:[#allocation2 + $0x48] sm:$0xff] %vm118_vm0, %v5126_v6 }
   0xf   :  { %1573 = vmatpush.bf16.msra.mxu1 %v4840_v19  ;;  %119 = vst.msk [vmem:[#allocation2] sm:$0xff] %vm118_vm0, %v54_v30  ;;  %v4836_v36 = vld [vmem:[%s7932_s1 + $0x50] sm:$0xff]  ;;  %v4827_v38 = vld [vmem:[%s7932_s1 + $0x8] sm:$0xff]  ;;  %v5322_v40 = vld [vmem:[%s7931_s0 + $0xb8] sm:$0xff] }
  0x10   :  { %4943 = vmatpush.bf16.msra.mxu2 %v4840_v19  ;;  %v4835_v39 = vld [vmem:[%s7932_s1 + $0x48] sm:$0xff]  ;;  %v4826_v41 = vld [vmem:[%s7932_s1] sm:$0xff]  ;;  %639 = vst.msk [vmem:[#allocation2 + $0x58] sm:$0xff] %vm118_vm0, %v5152_v10  ;;  %v5398_v48 = vld [vmem:[%s7931_s0 + $0xf8] sm:$0xff] }
  0x11   :  { %1405 = vmatpush.bf16.msra.mxu0 %v4831_v20  ;;  %4936 = vmatpush.bf16.msra.mxu3 %v4831_v20  ;;  %v4834_v42 = vld [vmem:[%s7932_s1 + $0x40] sm:$0xff]  ;;  %126 = vst.msk [vmem:[#allocation2 + $0x70] sm:$0xff] %vm118_vm0, %v5171_v13  ;;  %v5403_v50 = vld [vmem:[%s7931_s0 + $0xe8] sm:$0xff] }
  0x12   :  { %833 = vrot.lane.b32.xlu1 %v5126_v6, %s5000_s17  ;;  %831 = vrot.lane.b32.xlu0 %v5131_v7, %s5000_s17  ;;  %125 = vst.msk [vmem:[#allocation2 + $0x60] sm:$0xff] %vm118_vm0, %v5147_v9  ;;  %v5356_v44 = vld [vmem:[%s7931_s0 + $0xe0] sm:$0xff]  ;;  %v5446_v62 = vld [vmem:[%s7931_s0 + $0x108] sm:$0xff] }
  0x13   :  { %320 = vrot.lane.b32.xlu2 %v5136_v8, %s5000_s17  ;;  %1574 = vmatpush.bf16.msra.mxu1 %v4839_v21  ;;  %640 = vst.msk [vmem:[#allocation2 + $0x68] sm:$0xff] %vm118_vm0, %v5157_v11  ;;  %v5441_v61 = vld [vmem:[%s7931_s0 + $0x100] sm:$0xff] }
  0x14   :  { %4944 = vmatpush.bf16.msra.mxu2 %v4839_v21  ;;  %641 = vst.msk [vmem:[#allocation2 + $0x78] sm:$0xff] %vm118_vm0, %v5176_v14 }
  0x15   :  { %1406 = vmatpush.bf16.msra.mxu0 %v4830_v24  ;;  %4937 = vmatpush.bf16.msra.mxu3 %v4830_v24  ;;  %127 = vst.msk [vmem:[#allocation2 + $0x80] sm:$0xff] %vm118_vm0, %v4263_v29  ;;  %v5539_v29 = vld [vmem:[%s7931_s0 + $0x140] sm:$0xff] }
  0x16   :  { %128 = vst.msk [vmem:[#allocation2 + $0x90] sm:$0xff] %vm118_vm0, %v5084_v0 }
  0x17   :  { %1575 = vmatpush.bf16.msra.mxu1 %v4838_v25  ;;  %643 = vst.msk [vmem:[#allocation2 + $0x98] sm:$0xff] %vm118_vm0, %v5220_v23 }
  0x18   :  { %4945 = vmatpush.bf16.msra.mxu2 %v4838_v25  ;;  %129 = vst.msk [vmem:[#allocation2 + $0xa0] sm:$0xff] %vm118_vm0, %v5105_v3 }
  0x19   :  { %1407 = vmatpush.bf16.msra.mxu0 %v4829_v31  ;;  %4938 = vmatpush.bf16.msra.mxu3 %v4829_v31  ;;  %130 = vst.msk [vmem:[#allocation2 + $0xb0] sm:$0xff] %vm118_vm0, %v5131_v7 }
  0x1a   :  { %322 = vrot.lane.b32.xlu0 %v5147_v9, %s5000_s17  ;;  %835 = vrot.lane.b32.xlu1 %v5152_v10, %s5000_s17  ;;  %644 = vst.msk [vmem:[#allocation2 + $0xa8] sm:$0xff] %vm118_vm0, %v5215_v22 }
  0x1b   :  { %837 = vrot.lane.b32.xlu2 %v5157_v11, %s5000_s17  ;;  %1576 = vmatpush.bf16.msra.mxu1 %v4837_v32  ;;  %645 = vst.msk [vmem:[#allocation2 + $0xb8] sm:$0xff] %vm118_vm0, %v5237_v26 }
  0x1c   :  { %4946 = vmatpush.bf16.msra.mxu2 %v4837_v32  ;;  %132 = vst.msk [vmem:[#allocation2 + $0xd0] sm:$0xff] %vm118_vm0, %v5152_v10 }
  0x1d   :  { %1408 = vmatpush.bf16.msra.mxu0 %v4828_v35  ;;  %4939 = vmatpush.bf16.msra.mxu3 %v4828_v35  ;;  %131 = vst.msk [vmem:[#allocation2 + $0xc0] sm:$0xff] %vm118_vm0, %v5126_v6 }
  0x1e   :  { %646 = vst.msk [vmem:[#allocation2 + $0xc8] sm:$0xff] %vm118_vm0, %v5242_v27 }
  0x1f   :  { %1577 = vmatpush.bf16.msra.mxu1 %v4836_v36  ;;  %647 = vst.msk [vmem:[#allocation2 + $0xd8] sm:$0xff] %vm118_vm0, %v5322_v40 }
  0x20   :  { %4947 = vmatpush.bf16.msra.mxu2 %v4836_v36  ;;  %133 = vst.msk [vmem:[#allocation2 + $0xe0] sm:$0xff] %vm118_vm0, %v5157_v11 }
  0x21   :  { %1409 = vmatpush.bf16.msra.mxu0 %v4827_v38  ;;  %4940 = vmatpush.bf16.msra.mxu3 %v4827_v38  ;;  %134 = vst.msk [vmem:[#allocation2 + $0xf0] sm:$0xff] %vm118_vm0, %v5176_v14 }
  0x22   :  { %326 = vrot.lane.b32.xlu1 %v4206_v12, %s5000_s17  ;;  %324 = vrot.lane.b32.xlu0 %v5171_v13, %s5000_s17  ;;  %649 = vst.msk [vmem:[#allocation2 + $0xf8] sm:$0xff] %vm118_vm0, %v5289_v34  ;;  %v5488_v12 = vld [vmem:[%s7931_s0 + $0x110] sm:$0xff] }
  0x23   :  { %839 = vrot.lane.b32.xlu2 %v5176_v14, %s5000_s17  ;;  %1578 = vmatpush.bf16.msra.mxu1 %v4835_v39  ;;  %648 = vst.msk [vmem:[#allocation2 + $0xe8] sm:$0xff] %vm118_vm0, %v5257_v28  ;;  %v4271_v13 = vld [vmem:[%s7931_s0 + $0x90] sm:$0xff] }
  0x24   :  { %4948 = vmatpush.bf16.msra.mxu2 %v4835_v39  ;;  %136 = vst.msk [vmem:[#allocation2 + $0x110] sm:$0xff] %vm118_vm0, %v5220_v23 }
  0x25   :  { %1410 = vmatpush.bf16.msra.mxu0 %v4826_v41  ;;  %4941 = vmatpush.bf16.msra.mxu3 %v4826_v41  ;;  %651 = vst.msk [vmem:[#allocation2 + $0x118] sm:$0xff] %vm118_vm0, %v5356_v44  ;;  %v4351_v41 = vld [vmem:[%s7931_s0 + $0x128] sm:$0xff] }
  0x26   :  { %138 = vst.msk [vmem:[#allocation2 + $0x130] sm:$0xff] %vm118_vm0, %v5237_v26 }
  0x27   :  { %1579 = vmatpush.bf16.msra.mxu1 %v4834_v42  ;;  %137 = vst.msk [vmem:[#allocation2 + $0x120] sm:$0xff] %vm118_vm0, %v5215_v22 }
  0x28   :  { %4949 = vmatpush.bf16.msra.mxu2 %v4834_v42  ;;  %652 = vst.msk [vmem:[#allocation2 + $0x128] sm:$0xff] %vm118_vm0, %v5403_v50 }
  0x29   :  { %139 = vst.msk [vmem:[#allocation2 + $0x140] sm:$0xff] %vm118_vm0, %v5242_v27 }
  0x2a   :  { %841 = vrot.lane.b32.xlu0 %v5192_v17, %s5000_s17  ;;  %328 = vrot.lane.b32.xlu1 %v5084_v0, %s5000_s17  ;;  %140 = vst.msk [vmem:[#allocation2 + $0x150] sm:$0xff] %vm118_vm0, %v5322_v40  ;;  %v5451_v0 = vld [vmem:[%s7931_s0 + $0xf0] sm:$0xff] }
  0x2b   :  { %330 = vrot.lane.b32.xlu2 %v5105_v3, %s5000_s17  ;;  %654 = vst.msk [vmem:[#allocation2 + $0x148] sm:$0xff] %vm118_vm0, %v5398_v48 }
  0x2c   :  { %141 = vst.msk [vmem:[#allocation2 + $0x160] sm:$0xff] %vm118_vm0, %v5257_v28 }
  0x2d   :  { %142 = vst.msk [vmem:[#allocation2 + $0x170] sm:$0xff] %vm118_vm0, %v5289_v34 }
  0x2e   :  { %144 = vst.msk [vmem:[#allocation2 + $0x190] sm:$0xff] %vm118_vm0, %v5356_v44 }
  0x2f   :  { %145 = vst.msk [vmem:[#allocation2 + $0x1a0] sm:$0xff] %vm118_vm0, %v5403_v50 }
  0x30   :  { %653 = vst.msk [vmem:[#allocation2 + $0x138] sm:$0xff] %vm118_vm0, %v5451_v0 }
  0x31   :  { %655 = vst.msk [vmem:[#allocation2 + $0x158] sm:$0xff] %vm118_vm0, %v5441_v61 }
  0x32   :  { %845 = vrot.lane.b32.xlu1 %v5215_v22, %s5000_s17  ;;  %843 = vrot.lane.b32.xlu0 %v5220_v23, %s5000_s17  ;;  %656 = vst.msk [vmem:[#allocation2 + $0x168] sm:$0xff] %vm118_vm0, %v5446_v62 }
  0x33   :  { %332 = vrot.lane.b32.xlu2 %v5131_v7, %s5000_s17  ;;  %146 = vst.msk [vmem:[#allocation2 + $0x1b0] sm:$0xff] %vm118_vm0, %v5451_v0 }
  0x34   :  { %147 = vst.msk [vmem:[#allocation2 + $0x1c0] sm:$0xff] %vm118_vm0, %v5398_v48 }
  0x35   :  { %148 = vst.msk [vmem:[#allocation2 + $0x1d0] sm:$0xff] %vm118_vm0, %v5441_v61 }
  0x36   :  { %149 = vst.msk [vmem:[#allocation2 + $0x1e0] sm:$0xff] %vm118_vm0, %v5446_v62 }
  0x37   :  { %642 = vst.msk [vmem:[#allocation2 + $0x88] sm:$0xff] %vm118_vm0, %v4271_v13 }
  0x38   :  { %135 = vst.msk [vmem:[#allocation2 + $0x100] sm:$0xff] %vm118_vm0, %v4271_v13 }
  0x39   :  { %657 = vst.msk [vmem:[#allocation2 + $0x178] sm:$0xff] %vm118_vm0, %v5488_v12 }
  0x3a   :  { %334 = vrot.lane.b32.xlu0 %v5126_v6, %s5000_s17  ;;  %847 = vrot.lane.b32.xlu1 %v5237_v26, %s5000_s17  ;;  %150 = vst.msk [vmem:[#allocation2 + $0x1f0] sm:$0xff] %vm118_vm0, %v5488_v12 }
  0x3b   :  { %849 = vrot.lane.b32.xlu2 %v5242_v27, %s5000_s17  ;;  %662 = vst.msk [vmem:[#allocation2 + $0x1c8] sm:$0xff] %vm118_vm0, %v5539_v29 }
  0x3c   :  { %155 = vst.msk [vmem:[#allocation2 + $0x240] sm:$0xff] %vm118_vm0, %v5539_v29 }
  0x3d   :  { %659 = vst.msk [vmem:[#allocation2 + $0x198] sm:$0xff] %vm118_vm0, %v4351_v41 }
  0x3e   :  { %152 = vst.msk [vmem:[#allocation2 + $0x210] sm:$0xff] %vm118_vm0, %v4351_v41 }
  0x42   :  { %338 = vrot.lane.b32.xlu1 %v5157_v11, %s5000_s17  ;;  %336 = vrot.lane.b32.xlu0 %v5152_v10, %s5000_s17 }
  0x43   :  { %851 = vrot.lane.b32.xlu2 %v5322_v40, %s5000_s17 }
  0x4a   :  { %853 = vrot.lane.b32.xlu0 %v5257_v28, %s5000_s17  ;;  %340 = vrot.lane.b32.xlu1 %v5176_v14, %s5000_s17 }
  0x4b   :  { %342 = vrot.lane.b32.xlu2 %v5192_v17, %s5000_s17  ;;  %v5509_v17 = vld [vmem:[%s7931_s0 + $0x130] sm:$0xff] }
  0x4c   :  { %660 = vst.msk [vmem:[#allocation2 + $0x1a8] sm:$0xff] %vm118_vm0, %v5509_v17 }
  0x4d   :  { %153 = vst.msk [vmem:[#allocation2 + $0x220] sm:$0xff] %vm118_vm0, %v5509_v17 }
  0x52   :  { %857 = vrot.lane.b32.xlu1 %v5280_v33, %s5000_s17  ;;  %855 = vrot.lane.b32.xlu0 %v5289_v34, %s5000_s17 }
  0x53   :  { %344 = vrot.lane.b32.xlu2 %v5220_v23, %s5000_s17 }
  0x5a   :  { %346 = vrot.lane.b32.xlu0 %v5215_v22, %s5000_s17  ;;  %859 = vrot.lane.b32.xlu1 %v5356_v44, %s5000_s17 }
  0x5b   :  { %861 = vrot.lane.b32.xlu2 %v5403_v50, %s5000_s17 }
  0x5d   :  { %v317_v37 = vpop.permute.xlu2 %316 }
  0x5e   :  { %507 = vst.msk [vmem:[#allocation2 + $0x20] sm:$0xff] %vm504_vm1, %v317_v37 }
  0x62   :  { %348 = vrot.lane.b32.xlu0 %v5237_v26, %s5000_s17  ;;  %350 = vrot.lane.b32.xlu1 %v5242_v27, %s5000_s17  ;;  %v5526_v26 = vld [vmem:[%s7931_s0 + $0x138] sm:$0xff] }
  0x63   :  { %863 = vrot.lane.b32.xlu2 %v5451_v0, %s5000_s17  ;;  %661 = vst.msk [vmem:[#allocation2 + $0x1b8] sm:$0xff] %vm118_vm0, %v5526_v26 }
  0x64   :  { %154 = vst.msk [vmem:[#allocation2 + $0x230] sm:$0xff] %vm118_vm0, %v5526_v26 }
  0x65   :  { %v319_v43 = vpop.permute.xlu2 %318  ;;  %v1087_v6 = vld [vmem:[#allocation2 + $0x20] sm:$0xff] }
  0x66   :  { %508 = vst.msk [vmem:[#allocation2 + $0x30] sm:$0xff] %vm504_vm1, %v319_v43 }
  0x6a   :  { %865 = vrot.lane.b32.xlu0 %v5398_v48, %s5000_s17  ;;  %352 = vrot.lane.b32.xlu1 %v5322_v40, %s5000_s17  ;;  %v5561_v40 = vld [vmem:[%s7931_s0 + $0x148] sm:$0xff] }
  0x6b   :  { %354 = vrot.lane.b32.xlu2 %v5257_v28, %s5000_s17  ;;  %v4350_v28 = vld [vmem:[%s7931_s0 + $0x118] sm:$0xff]  ;;  %663 = vst.msk [vmem:[#allocation2 + $0x1d8] sm:$0xff] %vm118_vm0, %v5561_v40 }
  0x6c   :  { %156 = vst.msk [vmem:[#allocation2 + $0x250] sm:$0xff] %vm118_vm0, %v5561_v40 }
  0x6d   :  { %v321_v45 = vpop.permute.xlu2 %320  ;;  %v1089_v7 = vld [vmem:[#allocation2 + $0x30] sm:$0xff] }
  0x6e   :  { %509 = vst.msk [vmem:[#allocation2 + $0x40] sm:$0xff] %vm504_vm1, %v321_v45  ;;  %v1213_v11 = vpack.c.bf16 %v1089_v7, %v1087_v6  ;;  %v5581_v45 = vld [vmem:[%s7931_s0 + $0x160] sm:$0xff] }
  0x72   :  { %867 = vrot.lane.b32.xlu0 %v5441_v61, %s5000_s17  ;;  %869 = vrot.lane.b32.xlu1 %v5446_v62, %s5000_s17 }
  0x73   :  { %356 = vrot.lane.b32.xlu2 %v5289_v34, %s5000_s17 }
  0x74   :  { %v828_v46 = vpop.permute.xlu1 %827  ;;  %v313_v47 = vpop.permute.xlu0 %312 }
  0x75   :  { %1019 = vst.msk [vmem:[#allocation2 + $0x8] sm:$0xff] %vm504_vm1, %v828_v46  ;;  %v838_v49 = vpop.permute.xlu2 %837  ;;  %v1091_v20 = vld [vmem:[#allocation2 + $0x40] sm:$0xff] }
  0x76   :  { %505 = vst.msk [vmem:[#allocation2] sm:$0xff] %vm504_vm1, %v313_v47 }
  0x77   :  { %1024 = vst.msk [vmem:[#allocation2 + $0x58] sm:$0xff] %vm504_vm1, %v838_v49 }
  0x7a   :  { %358 = vrot.lane.b32.xlu0 %v5280_v33, %s5000_s17  ;;  %871 = vrot.lane.b32.xlu1 %v5488_v12, %s5000_s17 }
  0x7b   :  { %873 = vrot.lane.b32.xlu2 %v4350_v28, %s5000_s17 }
  0x7c   :  { %v830_v51 = vpop.permute.xlu1 %829  ;;  %v315_v52 = vpop.permute.xlu0 %314  ;;  %v1084_v53 = vld [vmem:[#allocation2 + $0x8] sm:$0xff] }
  0x7d   :  { %1020 = vst.msk [vmem:[#allocation2 + $0x18] sm:$0xff] %vm504_vm1, %v830_v51  ;;  %v1083_v57 = vld [vmem:[#allocation2] sm:$0xff]  ;;  %v840_v63 = vpop.permute.xlu2 %839 }
  0x7e   :  { %506 = vst.msk [vmem:[#allocation2 + $0x10] sm:$0xff] %vm504_vm1, %v315_v52  ;;  %v1094_v19 = vld [vmem:[#allocation2 + $0x58] sm:$0xff] }
  0x7f   :  { %1025 = vst.msk [vmem:[#allocation2 + $0x68] sm:$0xff] %vm504_vm1, %v840_v63 }
  0x82   :  { %360 = vrot.lane.b32.xlu0 %v5356_v44, %s5000_s17  ;;  %362 = vrot.lane.b32.xlu1 %v5403_v50, %s5000_s17 }
  0x83   :  { %875 = vrot.lane.b32.xlu2 %v4351_v41, %s5000_s17 }
  0x84   :  { %v1086_v54 = vld [vmem:[#allocation2 + $0x18] sm:$0xff]  ;;  %v834_v55 = vpop.permute.xlu1 %833  ;;  %v832_v56 = vpop.permute.xlu0 %831 }
  0x85   :  { %v1085_v58 = vld [vmem:[#allocation2 + $0x10] sm:$0xff]  ;;  %v1212_v59 = vpack.c.bf16 %v1086_v54, %v1084_v53  ;;  %1022 = vst.msk [vmem:[#allocation2 + $0x38] sm:$0xff] %vm504_vm1, %v834_v55  ;;  %v331_v5 = vpop.permute.xlu2 %330 }
  0x86   :  { %v1211_v60 = vpack.c.bf16 %v1085_v58, %v1083_v57  ;;  %1021 = vst.msk [vmem:[#allocation2 + $0x28] sm:$0xff] %vm504_vm1, %v832_v56  ;;  %v1096_v32 = vld [vmem:[#allocation2 + $0x68] sm:$0xff]  ;;  %v5594_v54 = vld [vmem:[%s7931_s0 + $0x170] sm:$0xff]  ;;  %v5611_v58 = vld [vmem:[%s7931_s0 + $0x178] sm:$0xff] }
  0x87   :  { %1580 = vmatmul.bf16.vlgmr.msra.gmra.mxu1 %v1212_v59  ;;  %514 = vst.msk [vmem:[#allocation2 + $0x90] sm:$0xff] %vm504_vm1, %v331_v5 }
  0x88   :  { %1411 = vmatmul.bf16.vlgmr.msra.gmra.mxu0 %v1211_v60  ;;  %667 = vst.msk [vmem:[#allocation2 + $0x218] sm:$0xff] %vm118_vm0, %v5594_v54 }
  0x89   :  { %668 = vst.msk [vmem:[#allocation2 + $0x228] sm:$0xff] %vm118_vm0, %v5611_v58 }
  0x8a   :  { %877 = vrot.lane.b32.xlu0 %v5509_v17, %s5000_s17  ;;  %364 = vrot.lane.b32.xlu1 %v5451_v0, %s5000_s17 }
  0x8b   :  { %366 = vrot.lane.b32.xlu2 %v5398_v48, %s5000_s17  ;;  %v4356_v48 = vld [vmem:[%s7931_s0 + $0x150] sm:$0xff] }
  0x8c   :  { %v323_v1 = vpop.permute.xlu0 %322  ;;  %v836_v2 = vpop.permute.xlu1 %835  ;;  %v1090_v4 = vld [vmem:[#allocation2 + $0x38] sm:$0xff]  ;;  %664 = vst.msk [vmem:[#allocation2 + $0x1e8] sm:$0xff] %vm118_vm0, %v4356_v48 }
  0x8d   :  { %510 = vst.msk [vmem:[#allocation2 + $0x50] sm:$0xff] %vm504_vm1, %v323_v1  ;;  %v1088_v3 = vld [vmem:[#allocation2 + $0x28] sm:$0xff]  ;;  %v333_v14 = vpop.permute.xlu2 %332 }
  0x8e   :  { %1023 = vst.msk [vmem:[#allocation2 + $0x48] sm:$0xff] %vm504_vm1, %v836_v2  ;;  %v1214_v8 = vpack.c.bf16 %v1090_v4, %v1088_v3  ;;  %v1101_v51 = vld [vmem:[#allocation2 + $0x90] sm:$0xff]  ;;  %v5627_v2 = vld [vmem:[%s7931_s0 + $0x180] sm:$0xff]  ;;  %v4357_v3 = vld [vmem:[%s7931_s0 + $0x158] sm:$0xff] }
  0x8f   :  { %515 = vst.msk [vmem:[#allocation2 + $0xa0] sm:$0xff] %vm504_vm1, %v333_v14  ;;  %v4279_v4 = vld [vmem:[%s7931_s0 + $0xd8] sm:$0xff] }
  0x90   :  { %157 = vst.msk [vmem:[#allocation2 + $0x260] sm:$0xff] %vm118_vm0, %v4356_v48 }
  0x91   :  { %650 = vst.msk [vmem:[#allocation2 + $0x108] sm:$0xff] %vm118_vm0, %v4279_v4 }
  0x92   :  { %879 = vrot.lane.b32.xlu0 %v5526_v26, %s5000_s17  ;;  %881 = vrot.lane.b32.xlu1 %v5539_v29, %s5000_s17  ;;  %143 = vst.msk [vmem:[#allocation2 + $0x180] sm:$0xff] %vm118_vm0, %v4279_v4 }
  0x93   :  { %368 = vrot.lane.b32.xlu2 %v5441_v61, %s5000_s17  ;;  %665 = vst.msk [vmem:[#allocation2 + $0x1f8] sm:$0xff] %vm118_vm0, %v4357_v3 }
  0x94   :  { %v327_v9 = vpop.permute.xlu1 %326  ;;  %v325_v10 = vpop.permute.xlu0 %324  ;;  %v1093_v21 = vld [vmem:[#allocation2 + $0x50] sm:$0xff]  ;;  %669 = vst.msk [vmem:[#allocation2 + $0x238] sm:$0xff] %vm118_vm0, %v5627_v2 }
  0x95   :  { %512 = vst.msk [vmem:[#allocation2 + $0x70] sm:$0xff] %vm504_vm1, %v327_v9  ;;  %v1092_v18 = vld [vmem:[#allocation2 + $0x48] sm:$0xff]  ;;  %v1215_v25 = vpack.c.bf16 %v1093_v21, %v1091_v20  ;;  %v850_v27 = vpop.permute.xlu2 %849 }
  0x96   :  { %511 = vst.msk [vmem:[#allocation2 + $0x60] sm:$0xff] %vm504_vm1, %v325_v10  ;;  %v1216_v22 = vpack.c.bf16 %v1094_v19, %v1092_v18  ;;  %v1103_v61 = vld [vmem:[#allocation2 + $0xa0] sm:$0xff]  ;;  %v5679_v21 = vld [vmem:[%s7931_s0 + $0x1a8] sm:$0xff] }
  0x97   :  { %1585 = vmatmul.bf16.gmra.mxu1 %v1214_v8  ;;  %1030 = vst.msk [vmem:[#allocation2 + $0xb8] sm:$0xff] %vm504_vm1, %v850_v27  ;;  %v5649_v8 = vld [vmem:[%s7931_s0 + $0x198] sm:$0xff] }
  0x98   :  { %1416 = vmatmul.bf16.gmra.mxu0 %v1213_v11  ;;  %158 = vst.msk [vmem:[#allocation2 + $0x270] sm:$0xff] %vm118_vm0, %v4357_v3 }
  0x99   :  { %672 = vst.msk [vmem:[#allocation2 + $0x268] sm:$0xff] %vm118_vm0, %v5649_v8 }
  0x9a   :  { %370 = vrot.lane.b32.xlu0 %v5446_v62, %s5000_s17  ;;  %883 = vrot.lane.b32.xlu1 %v5561_v40, %s5000_s17 }
  0x9b   :  { %885 = vrot.lane.b32.xlu2 %v4356_v48, %s5000_s17 }
  0x9c   :  { %v842_v15 = vpop.permute.xlu0 %841  ;;  %v329_v16 = vpop.permute.xlu1 %328  ;;  %v1097_v35 = vld [vmem:[#allocation2 + $0x70] sm:$0xff] }
  0x9d   :  { %1026 = vst.msk [vmem:[#allocation2 + $0x78] sm:$0xff] %vm504_vm1, %v842_v15  ;;  %v1095_v34 = vld [vmem:[#allocation2 + $0x60] sm:$0xff]  ;;  %v852_v42 = vpop.permute.xlu2 %851 }
  0x9e   :  { %513 = vst.msk [vmem:[#allocation2 + $0x80] sm:$0xff] %vm504_vm1, %v329_v16  ;;  %v1217_v39 = vpack.c.bf16 %v1097_v35, %v1095_v34  ;;  %v1106_v60 = vld [vmem:[#allocation2 + $0xb8] sm:$0xff]  ;;  %v5665_v16 = vld [vmem:[%s7931_s0 + $0x1a0] sm:$0xff] }
  0x9f   :  { %1031 = vst.msk [vmem:[#allocation2 + $0xc8] sm:$0xff] %vm504_vm1, %v852_v42 }
  0xa0   :  { %673 = vst.msk [vmem:[#allocation2 + $0x278] sm:$0xff] %vm118_vm0, %v5665_v16 }
  0xa2   :  { %372 = vrot.lane.b32.xlu0 %v5488_v12, %s5000_s17  ;;  %374 = vrot.lane.b32.xlu1 %v4350_v28, %s5000_s17 }
  0xa3   :  { %887 = vrot.lane.b32.xlu2 %v4357_v3, %s5000_s17 }
  0xa4   :  { %v846_v23 = vpop.permute.xlu1 %845  ;;  %v844_v24 = vpop.permute.xlu0 %843  ;;  %v1098_v33 = vld [vmem:[#allocation2 + $0x78] sm:$0xff] }
  0xa5   :  { %1028 = vst.msk [vmem:[#allocation2 + $0x98] sm:$0xff] %vm504_vm1, %v846_v23  ;;  %v1218_v36 = vpack.c.bf16 %v1098_v33, %v1096_v32  ;;  %v343_v49 = vpop.permute.xlu2 %342  ;;  %v1099_v50 = vld [vmem:[#allocation2 + $0x80] sm:$0xff]  ;;  %v5689_v23 = vld [vmem:[%s7931_s0 + $0x1d0] sm:$0xff] }
  0xa6   :  { %1027 = vst.msk [vmem:[#allocation2 + $0x88] sm:$0xff] %vm504_vm1, %v844_v24  ;;  %v1219_v53 = vpack.c.bf16 %v1101_v51, %v1099_v50  ;;  %v1108_v9 = vld [vmem:[#allocation2 + $0xc8] sm:$0xff] }
  0xa7   :  { %1590 = vmatmul.bf16.gmra.mxu1 %v1216_v22  ;;  %520 = vst.msk [vmem:[#allocation2 + $0xf0] sm:$0xff] %vm504_vm1, %v343_v49  ;;  %v5684_v22 = vld [vmem:[%s7931_s0 + $0x188] sm:$0xff]  ;;  %v5751_v49 = vld [vmem:[%s7931_s0 + $0x220] sm:$0xff] }
  0xa8   :  { %1421 = vmatmul.bf16.gmra.mxu0 %v1215_v25  ;;  %670 = vst.msk [vmem:[#allocation2 + $0x248] sm:$0xff] %vm118_vm0, %v5684_v22 }
  0xa9   :  { %687 = vst.msk [vmem:[#allocation2 + $0x358] sm:$0xff] %vm118_vm0, %v5751_v49 }
  0xaa   :  { %889 = vrot.lane.b32.xlu0 %v5581_v45, %s5000_s17  ;;  %376 = vrot.lane.b32.xlu1 %v4351_v41, %s5000_s17 }
  0xab   :  { %378 = vrot.lane.b32.xlu2 %v5509_v17, %s5000_s17 }
  0xac   :  { %v335_v30 = vpop.permute.xlu0 %334  ;;  %v848_v31 = vpop.permute.xlu1 %847  ;;  %v1102_v47 = vld [vmem:[#allocation2 + $0x98] sm:$0xff] }
  0xad   :  { %516 = vst.msk [vmem:[#allocation2 + $0xb0] sm:$0xff] %vm504_vm1, %v335_v30  ;;  %v1100_v46 = vld [vmem:[#allocation2 + $0x88] sm:$0xff]  ;;  %v345_v56 = vpop.permute.xlu2 %344  ;;  %v5704_v30 = vld [vmem:[%s7931_s0 + $0x210] sm:$0xff] }
  0xae   :  { %1029 = vst.msk [vmem:[#allocation2 + $0xa8] sm:$0xff] %vm504_vm1, %v848_v31  ;;  %v1220_v52 = vpack.c.bf16 %v1102_v47, %v1100_v46  ;;  %v1113_v25 = vld [vmem:[#allocation2 + $0xf0] sm:$0xff]  ;;  %v5743_v46 = vld [vmem:[%s7931_s0 + $0x1d8] sm:$0xff]  ;;  %v4249_v47 = vld [vmem:[%s7931_s0 + $0x1c8] sm:$0xff] }
  0xaf   :  { %521 = vst.msk [vmem:[#allocation2 + $0x100] sm:$0xff] %vm504_vm1, %v345_v56  ;;  %v5709_v31 = vld [vmem:[%s7931_s0 + $0x190] sm:$0xff] }
  0xb0   :  { %671 = vst.msk [vmem:[#allocation2 + $0x258] sm:$0xff] %vm118_vm0, %v5709_v31 }
  0xb1   :  { %685 = vst.msk [vmem:[#allocation2 + $0x338] sm:$0xff] %vm118_vm0, %v5704_v30 }
  0xb2   :  { %891 = vrot.lane.b32.xlu0 %v5594_v54, %s5000_s17  ;;  %893 = vrot.lane.b32.xlu1 %v5611_v58, %s5000_s17  ;;  %170 = vst.msk [vmem:[#allocation2 + $0x330] sm:$0xff] %vm118_vm0, %v4249_v47 }
  0xb3   :  { %380 = vrot.lane.b32.xlu2 %v5526_v26, %s5000_s17  ;;  %172 = vst.msk [vmem:[#allocation2 + $0x350] sm:$0xff] %vm118_vm0, %v5743_v46 }
  0xb4   :  { %v339_v37 = vpop.permute.xlu1 %338  ;;  %v337_v38 = vpop.permute.xlu0 %336  ;;  %v1105_v62 = vld [vmem:[#allocation2 + $0xb0] sm:$0xff]  ;;  %677 = vst.msk [vmem:[#allocation2 + $0x2b8] sm:$0xff] %vm118_vm0, %v4249_v47 }
  0xb5   :  { %518 = vst.msk [vmem:[#allocation2 + $0xd0] sm:$0xff] %vm504_vm1, %v339_v37  ;;  %v1104_v59 = vld [vmem:[#allocation2 + $0xa8] sm:$0xff]  ;;  %v1221_v1 = vpack.c.bf16 %v1105_v62, %v1103_v61  ;;  %v862_v5 = vpop.permute.xlu2 %861 }
  0xb6   :  { %517 = vst.msk [vmem:[#allocation2 + $0xc0] sm:$0xff] %vm504_vm1, %v337_v38  ;;  %v1222_v63 = vpack.c.bf16 %v1106_v60, %v1104_v59  ;;  %v1115_v37 = vld [vmem:[#allocation2 + $0x100] sm:$0xff] }
  0xb7   :  { %1595 = vmatmul.bf16.gmra.mxu1 %v1218_v36  ;;  %1036 = vst.msk [vmem:[#allocation2 + $0x118] sm:$0xff] %vm504_vm1, %v862_v5  ;;  %v5726_v36 = vld [vmem:[%s7931_s0 + $0x1c0] sm:$0xff] }
  0xb8   :  { %1426 = vmatmul.bf16.gmra.mxu0 %v1217_v39  ;;  %169 = vst.msk [vmem:[#allocation2 + $0x320] sm:$0xff] %vm118_vm0, %v5726_v36 }
  0xba   :  { %382 = vrot.lane.b32.xlu0 %v5539_v29, %s5000_s17  ;;  %895 = vrot.lane.b32.xlu1 %v5627_v2, %s5000_s17 }
  0xbb   :  { %897 = vrot.lane.b32.xlu2 %v5684_v22, %s5000_s17 }
  0xbc   :  { %v854_v43 = vpop.permute.xlu0 %853  ;;  %v341_v44 = vpop.permute.xlu1 %340  ;;  %v1109_v12 = vld [vmem:[#allocation2 + $0xd0] sm:$0xff] }
  0xbd   :  { %1032 = vst.msk [vmem:[#allocation2 + $0xd8] sm:$0xff] %vm504_vm1, %v854_v43  ;;  %v1107_v11 = vld [vmem:[#allocation2 + $0xc0] sm:$0xff]  ;;  %v864_v17 = vpop.permute.xlu2 %863 }
  0xbe   :  { %519 = vst.msk [vmem:[#allocation2 + $0xe0] sm:$0xff] %vm504_vm1, %v341_v44  ;;  %v1223_v15 = vpack.c.bf16 %v1109_v12, %v1107_v11  ;;  %v1118_v35 = vld [vmem:[#allocation2 + $0x118] sm:$0xff] }
  0xbf   :  { %1037 = vst.msk [vmem:[#allocation2 + $0x128] sm:$0xff] %vm504_vm1, %v864_v17 }
  0xc2   :  { %384 = vrot.lane.b32.xlu0 %v5561_v40, %s5000_s17  ;;  %386 = vrot.lane.b32.xlu1 %v4356_v48, %s5000_s17 }
  0xc3   :  { %899 = vrot.lane.b32.xlu2 %v5709_v31, %s5000_s17 }
  0xc4   :  { %v858_v55 = vpop.permute.xlu1 %857  ;;  %v856_v57 = vpop.permute.xlu0 %855  ;;  %v1110_v10 = vld [vmem:[#allocation2 + $0xd8] sm:$0xff] }
  0xc5   :  { %1034 = vst.msk [vmem:[#allocation2 + $0xf8] sm:$0xff] %vm504_vm1, %v858_v55  ;;  %v1224_v13 = vpack.c.bf16 %v1110_v10, %v1108_v9  ;;  %v1111_v24 = vld [vmem:[#allocation2 + $0xe0] sm:$0xff]  ;;  %v355_v28 = vpop.permute.xlu2 %354  ;;  %v5806_v9 = vld [vmem:[%s7931_s0 + $0x1e8] sm:$0xff] }
  0xc6   :  { %1033 = vst.msk [vmem:[#allocation2 + $0xe8] sm:$0xff] %vm504_vm1, %v856_v57  ;;  %v1225_v29 = vpack.c.bf16 %v1113_v25, %v1111_v24  ;;  %v1120_v55 = vld [vmem:[#allocation2 + $0x128] sm:$0xff] }
  0xc7   :  { %1600 = vmatmul.bf16.gmra.mxu1 %v1220_v52  ;;  %526 = vst.msk [vmem:[#allocation2 + $0x150] sm:$0xff] %vm504_vm1, %v355_v28  ;;  %v5772_v57 = vld [vmem:[%s7931_s0 + $0x228] sm:$0xff] }
  0xc8   :  { %1431 = vmatmul.bf16.gmra.mxu0 %v1219_v53  ;;  %688 = vst.msk [vmem:[#allocation2 + $0x368] sm:$0xff] %vm118_vm0, %v5772_v57 }
  0xc9   :  { %174 = vst.msk [vmem:[#allocation2 + $0x370] sm:$0xff] %vm118_vm0, %v5806_v9 }
  0xca   :  { %901 = vrot.lane.b32.xlu0 %v5649_v8, %s5000_s17  ;;  %388 = vrot.lane.b32.xlu1 %v4357_v3, %s5000_s17 }
  0xcb   :  { %390 = vrot.lane.b32.xlu2 %v5581_v45, %s5000_s17 }
  0xcc   :  { %v347_v0 = vpop.permute.xlu0 %346  ;;  %v860_v6 = vpop.permute.xlu1 %859  ;;  %v1114_v20 = vld [vmem:[#allocation2 + $0xf8] sm:$0xff] }
  0xcd   :  { %522 = vst.msk [vmem:[#allocation2 + $0x110] sm:$0xff] %vm504_vm1, %v347_v0  ;;  %v1112_v19 = vld [vmem:[#allocation2 + $0xe8] sm:$0xff]  ;;  %v357_v40 = vpop.permute.xlu2 %356 }
  0xce   :  { %1035 = vst.msk [vmem:[#allocation2 + $0x108] sm:$0xff] %vm504_vm1, %v860_v6  ;;  %v1226_v26 = vpack.c.bf16 %v1114_v20, %v1112_v19  ;;  %v5826_v19 = vld [vmem:[%s7931_s0 + $0x1f0] sm:$0xff]  ;;  %v4252_v20 = vld [vmem:[%s7931_s0 + $0x1e0] sm:$0xff] }
  0xcf   :  { %527 = vst.msk [vmem:[#allocation2 + $0x160] sm:$0xff] %vm504_vm1, %v357_v40  ;;  %v1125_v25 = vld [vmem:[#allocation2 + $0x150] sm:$0xff] }
  0xd0   :  { %173 = vst.msk [vmem:[#allocation2 + $0x360] sm:$0xff] %vm118_vm0, %v4252_v20 }
  0xd2   :  { %903 = vrot.lane.b32.xlu0 %v5665_v16, %s5000_s17  ;;  %905 = vrot.lane.b32.xlu1 %v5679_v21, %s5000_s17 }
  0xd3   :  { %412 = vrot.lane.b32.xlu2 %v4249_v47, %s5000_s17 }
  0xd4   :  { %v349_v7 = vpop.permute.xlu0 %348  ;;  %v351_v14 = vpop.permute.xlu1 %350  ;;  %v1117_v38 = vld [vmem:[#allocation2 + $0x110] sm:$0xff] }
  0xd5   :  { %523 = vst.msk [vmem:[#allocation2 + $0x120] sm:$0xff] %vm504_vm1, %v349_v7  ;;  %v1116_v34 = vld [vmem:[#allocation2 + $0x108] sm:$0xff]  ;;  %v1227_v45 = vpack.c.bf16 %v1117_v38, %v1115_v37  ;;  %v874_v51 = vpop.permute.xlu2 %873  ;;  %v5801_v7 = vld [vmem:[%s7931_s0 + $0x1b8] sm:$0xff] }
  0xd6   :  { %524 = vst.msk [vmem:[#allocation2 + $0x130] sm:$0xff] %vm504_vm1, %v351_v14  ;;  %v1228_v39 = vpack.c.bf16 %v1118_v35, %v1116_v34 }
  0xd7   :  { %1605 = vmatmul.bf16.gmra.mxu1 %v1222_v63  ;;  %1042 = vst.msk [vmem:[#allocation2 + $0x178] sm:$0xff] %vm504_vm1, %v874_v51  ;;  %v4287_v63 = vld [vmem:[%s7931_s0 + $0x120] sm:$0xff] }
  0xd8   :  { %1436 = vmatmul.bf16.gmra.mxu0 %v1221_v1  ;;  %658 = vst.msk [vmem:[#allocation2 + $0x188] sm:$0xff] %vm118_vm0, %v4287_v63 }
  0xd9   :  { %151 = vst.msk [vmem:[#allocation2 + $0x200] sm:$0xff] %vm118_vm0, %v4287_v63 }
  0xda   :  { %414 = vrot.lane.b32.xlu0 %v5689_v23, %s5000_s17  ;;  %927 = vrot.lane.b32.xlu1 %v5704_v30, %s5000_s17  ;;  %675 = vst.msk [vmem:[#allocation2 + $0x298] sm:$0xff] %vm118_vm0, %v5801_v7 }
  0xdc   :  { %v866_v18 = vpop.permute.xlu0 %865  ;;  %v353_v27 = vpop.permute.xlu1 %352  ;;  %v1119_v59 = vld [vmem:[#allocation2 + $0x120] sm:$0xff] }
  0xdd   :  { %1038 = vst.msk [vmem:[#allocation2 + $0x138] sm:$0xff] %vm504_vm1, %v866_v18  ;;  %v1121_v60 = vld [vmem:[#allocation2 + $0x130] sm:$0xff]  ;;  %v876_v0 = vpop.permute.xlu2 %875 }
  0xde   :  { %525 = vst.msk [vmem:[#allocation2 + $0x140] sm:$0xff] %vm504_vm1, %v353_v27  ;;  %v1229_v6 = vpack.c.bf16 %v1121_v60, %v1119_v59  ;;  %v5881_v59 = vld [vmem:[%s7931_s0 + $0x230] sm:$0xff] }
  0xdf   :  { %1043 = vst.msk [vmem:[#allocation2 + $0x188] sm:$0xff] %vm504_vm1, %v876_v0 }
  0xe0   :  { %689 = vst.msk [vmem:[#allocation2 + $0x378] sm:$0xff] %vm118_vm0, %v5881_v59 }
  0xe2   :  { %392 = vrot.lane.b32.xlu0 %v5594_v54, %s5000_s17  ;;  %394 = vrot.lane.b32.xlu1 %v5611_v58, %s5000_s17  ;;  %v5777_v58 = vld [vmem:[%s7931_s0 + $0x218] sm:$0xff] }
  0xe3   :  { %929 = vrot.lane.b32.xlu2 %v5777_v58, %s5000_s17  ;;  %686 = vst.msk [vmem:[#allocation2 + $0x348] sm:$0xff] %vm118_vm0, %v5777_v58 }
  0xe4   :  { %v868_v32 = vpop.permute.xlu0 %867  ;;  %v870_v33 = vpop.permute.xlu1 %869  ;;  %v1122_v56 = vld [vmem:[#allocation2 + $0x138] sm:$0xff] }
  0xe5   :  { %1039 = vst.msk [vmem:[#allocation2 + $0x148] sm:$0xff] %vm504_vm1, %v868_v32  ;;  %v1230_v61 = vpack.c.bf16 %v1122_v56, %v1120_v55  ;;  %v367_v11 = vpop.permute.xlu2 %366  ;;  %v1123_v24 = vld [vmem:[#allocation2 + $0x140] sm:$0xff]  ;;  %v4383_v56 = vld [vmem:[%s7931_s0 + $0x248] sm:$0xff] }
  0xe6   :  { %1040 = vst.msk [vmem:[#allocation2 + $0x158] sm:$0xff] %vm504_vm1, %v870_v33  ;;  %v1231_v35 = vpack.c.bf16 %v1125_v25, %v1123_v24 }
  0xe7   :  { %1610 = vmatmul.bf16.gmra.mxu1 %v1224_v13  ;;  %532 = vst.msk [vmem:[#allocation2 + $0x1b0] sm:$0xff] %vm504_vm1, %v367_v11 }
  0xe8   :  { %1441 = vmatmul.bf16.gmra.mxu0 %v1223_v15  ;;  %691 = vst.msk [vmem:[#allocation2 + $0x398] sm:$0xff] %vm118_vm0, %v4383_v56 }
  0xea   :  { %909 = vrot.lane.b32.xlu0 %v5726_v36, %s5000_s17  ;;  %416 = vrot.lane.b32.xlu1 %v5743_v46, %s5000_s17 }
  0xeb   :  { %907 = vrot.lane.b32.xlu2 %v5801_v7, %s5000_s17 }
  0xec   :  { %v359_v41 = vpop.permute.xlu0 %358  ;;  %v872_v50 = vpop.permute.xlu1 %871  ;;  %v1124_v17 = vld [vmem:[#allocation2 + $0x148] sm:$0xff] }
  0xed   :  { %528 = vst.msk [vmem:[#allocation2 + $0x170] sm:$0xff] %vm504_vm1, %v359_v41  ;;  %v1126_v18 = vld [vmem:[#allocation2 + $0x158] sm:$0xff]  ;;  %v369_v28 = vpop.permute.xlu2 %368 }
  0xee   :  { %1041 = vst.msk [vmem:[#allocation2 + $0x168] sm:$0xff] %vm504_vm1, %v872_v50 }
  0xef   :  { %533 = vst.msk [vmem:[#allocation2 + $0x1c0] sm:$0xff] %vm504_vm1, %v369_v28 }
  0xf2   :  { %931 = vrot.lane.b32.xlu0 %v5751_v49, %s5000_s17  ;;  %933 = vrot.lane.b32.xlu1 %v5772_v57, %s5000_s17 }
  0xf3   :  { %418 = vrot.lane.b32.xlu2 %v4252_v20, %s5000_s17 }
  0xf4   :  { %v361_v53 = vpop.permute.xlu0 %360  ;;  %v363_v62 = vpop.permute.xlu1 %362 }
  0xf5   :  { %529 = vst.msk [vmem:[#allocation2 + $0x180] sm:$0xff] %vm504_vm1, %v361_v53  ;;  %v886_v38 = vpop.permute.xlu2 %885 }
  0xf6   :  { %530 = vst.msk [vmem:[#allocation2 + $0x190] sm:$0xff] %vm504_vm1, %v363_v62  ;;  %v4295_v62 = vld [vmem:[%s7931_s0 + $0x168] sm:$0xff] }
  0xf7   :  { %1615 = vmatmul.bf16.gmra.mxu1 %v1226_v26  ;;  %v1232_v26 = vpack.c.bf16 %v1126_v18, %v1124_v17  ;;  %1048 = vst.msk [vmem:[#allocation2 + $0x1d8] sm:$0xff] %vm504_vm1, %v886_v38  ;;  %v1137_v38 = vld [vmem:[#allocation2 + $0x1b0] sm:$0xff] }
  0xf8   :  { %1446 = vmatmul.bf16.gmra.mxu0 %v1225_v29  ;;  %666 = vst.msk [vmem:[#allocation2 + $0x208] sm:$0xff] %vm118_vm0, %v4295_v62 }
  0xf9   :  { %159 = vst.msk [vmem:[#allocation2 + $0x280] sm:$0xff] %vm118_vm0, %v4295_v62 }
  0xfa   :  { %398 = vrot.lane.b32.xlu0 %v5684_v22, %s5000_s17  ;;  %911 = vrot.lane.b32.xlu1 %v4249_v47, %s5000_s17  ;;  %v5834_v22 = vld [vmem:[%s7931_s0 + $0x238] sm:$0xff] }
  0xfb   :  { %396 = vrot.lane.b32.xlu2 %v5627_v2, %s5000_s17  ;;  %v5861_v2 = vld [vmem:[%s7931_s0 + $0x208] sm:$0xff] }
  0xfc   :  { %v878_v3 = vpop.permute.xlu0 %877  ;;  %v365_v10 = vpop.permute.xlu1 %364  ;;  %684 = vst.msk [vmem:[#allocation2 + $0x328] sm:$0xff] %vm118_vm0, %v5861_v2 }
  0xfd   :  { %1044 = vst.msk [vmem:[#allocation2 + $0x198] sm:$0xff] %vm504_vm1, %v878_v3  ;;  %v888_v51 = vpop.permute.xlu2 %887 }
  0xfe   :  { %531 = vst.msk [vmem:[#allocation2 + $0x1a0] sm:$0xff] %vm504_vm1, %v365_v10  ;;  %v1133_v10 = vld [vmem:[#allocation2 + $0x190] sm:$0xff] }
  0xff   :  { %1049 = vst.msk [vmem:[#allocation2 + $0x1e8] sm:$0xff] %vm504_vm1, %v888_v51 }
 0x102   :  { %420 = vrot.lane.b32.xlu0 %v5806_v9, %s5000_s17  ;;  %422 = vrot.lane.b32.xlu1 %v5826_v19, %s5000_s17 }
 0x103   :  { %913 = vrot.lane.b32.xlu2 %v5689_v23, %s5000_s17 }
 0x104   :  { %v1581_v42 = vpop.f32.mrf.mxu1  ;;  %v880_v13 = vpop.permute.xlu0 %879 }
 0x105   :  { %v1412_v43 = vpop.f32.mrf.mxu0  ;;  %1045 = vst.msk [vmem:[#allocation2 + $0x1a8] sm:$0xff] %vm504_vm1, %v880_v13  ;;  %v882_v27 = vpop.permute.xlu1 %881 }
 0x106   :  { %v5738_v44 = vadd.f32 %v1581_v42, %v1412_v43  ;;  %1046 = vst.msk [vmem:[#allocation2 + $0x1b8] sm:$0xff] %vm504_vm1, %v882_v27  ;;  %v1130_v43 = vld [vmem:[#allocation2 + $0x178] sm:$0xff] }
 0x107   :  { %1620 = vmatmul.bf16.gmra.mxu1 %v1228_v39 }
 0x108   :  { %1451 = vmatmul.bf16.gmra.mxu0 %v1227_v45  ;;  %v1127_v45 = vld [vmem:[#allocation2 + $0x160] sm:$0xff] }
 0x10a   :  { %937 = vrot.lane.b32.xlu0 %v5834_v22, %s5000_s17  ;;  %400 = vrot.lane.b32.xlu1 %v5709_v31, %s5000_s17  ;;  %v1128_v31 = vld [vmem:[#allocation2 + $0x168] sm:$0xff] }
 0x10b   :  { %v1234_v47 = vpack.c.bf16 %v1130_v43, %v1128_v31  ;;  %935 = vrot.lane.b32.xlu2 %v5881_v59, %s5000_s17 }
 0x10c   :  { %v1583_v52 = vpop.f32.mrf.mxu1  ;;  %v371_v32 = vpop.permute.xlu0 %370 }
 0x10d   :  { %v1414_v54 = vpop.f32.mrf.mxu0  ;;  %534 = vst.msk [vmem:[#allocation2 + $0x1d0] sm:$0xff] %vm504_vm1, %v371_v32  ;;  %v884_v37 = vpop.permute.xlu1 %883  ;;  %v4384_v32 = vld [vmem:[%s7931_s0 + $0x250] sm:$0xff] }
 0x10e   :  { %v5765_v48 = vadd.f32 %v1583_v52, %v1414_v54  ;;  %1047 = vst.msk [vmem:[#allocation2 + $0x1c8] sm:$0xff] %vm504_vm1, %v884_v37  ;;  %v1135_v37 = vld [vmem:[#allocation2 + $0x1a0] sm:$0xff] }
 0x10f   :  { %692 = vst.msk [vmem:[#allocation2 + $0x3a8] sm:$0xff] %vm118_vm0, %v4384_v32 }
 0x112   :  { %915 = vrot.lane.b32.xlu0 %v5743_v46, %s5000_s17  ;;  %917 = vrot.lane.b32.xlu1 %v4252_v20, %s5000_s17  ;;  %v1129_v46 = vld [vmem:[#allocation2 + $0x170] sm:$0xff] }
 0x113   :  { %v1233_v23 = vpack.c.bf16 %v1129_v46, %v1127_v45  ;;  %402 = vrot.lane.b32.xlu2 %v5649_v8, %s5000_s17  ;;  %v4255_v8 = vld [vmem:[%s7931_s0 + $0x200] sm:$0xff] }
 0x114   :  { %v1586_v1 = vpop.f32.mrf.mxu1  ;;  %v373_v40 = vpop.permute.xlu0 %372  ;;  %176 = vst.msk [vmem:[#allocation2 + $0x390] sm:$0xff] %vm118_vm0, %v4255_v8 }
 0x115   :  { %v1417_v4 = vpop.f32.mrf.mxu0  ;;  %535 = vst.msk [vmem:[#allocation2 + $0x1e0] sm:$0xff] %vm504_vm1, %v373_v40  ;;  %v375_v50 = vpop.permute.xlu1 %374 }
 0x116   :  { %v5794_v5 = vadd.f32 %v1586_v1, %v1417_v4  ;;  %536 = vst.msk [vmem:[#allocation2 + $0x1f0] sm:$0xff] %vm504_vm1, %v375_v50  ;;  %v1134_v4 = vld [vmem:[#allocation2 + $0x198] sm:$0xff] }
 0x117   :  { %1625 = vmatmul.bf16.gmra.mxu1 %v1230_v61  ;;  %v379_v61 = vpop.permute.xlu2 %378  ;;  %683 = vst.msk [vmem:[#allocation2 + $0x318] sm:$0xff] %vm118_vm0, %v4255_v8 }
 0x118   :  { %1456 = vmatmul.bf16.gmra.mxu0 %v1229_v6  ;;  %538 = vst.msk [vmem:[#allocation2 + $0x210] sm:$0xff] %vm504_vm1, %v379_v61  ;;  %v1131_v6 = vld [vmem:[#allocation2 + $0x180] sm:$0xff] }
 0x11a   :  { %426 = vrot.lane.b32.xlu0 %v5861_v2, %s5000_s17  ;;  %939 = vrot.lane.b32.xlu1 %v4383_v56, %s5000_s17  ;;  %v1139_v56 = vld [vmem:[#allocation2 + $0x1c0] sm:$0xff] }
 0x11b   :  { %424 = vrot.lane.b32.xlu2 %v4255_v8, %s5000_s17 }
 0x11c   :  { %v1588_v12 = vpop.f32.mrf.mxu1  ;;  %v890_v53 = vpop.permute.xlu0 %889 }
 0x11d   :  { %v1419_v14 = vpop.f32.mrf.mxu0  ;;  %1050 = vst.msk [vmem:[#allocation2 + $0x1f8] sm:$0xff] %vm504_vm1, %v890_v53  ;;  %v377_v60 = vpop.permute.xlu1 %376 }
 0x11e   :  { %v5820_v15 = vadd.f32 %v1588_v12, %v1419_v14  ;;  %537 = vst.msk [vmem:[#allocation2 + $0x200] sm:$0xff] %vm504_vm1, %v377_v60  ;;  %v1141_v60 = vld [vmem:[#allocation2 + $0x1d0] sm:$0xff] }
 0x11f   :  { %v381_v13 = vpop.permute.xlu2 %380 }
 0x120   :  { %539 = vst.msk [vmem:[#allocation2 + $0x220] sm:$0xff] %vm504_vm1, %v381_v13 }
 0x122   :  { %404 = vrot.lane.b32.xlu0 %v5665_v16, %s5000_s17  ;;  %v1132_v16 = vld [vmem:[#allocation2 + $0x188] sm:$0xff]  ;;  %406 = vrot.lane.b32.xlu1 %v5679_v21, %s5000_s17  ;;  %v1235_v21 = vpack.c.bf16 %v1133_v10, %v1131_v6 }
 0x123   :  { %v1236_v11 = vpack.c.bf16 %v1134_v4, %v1132_v16  ;;  %941 = vrot.lane.b32.xlu2 %v4384_v32, %s5000_s17 }
 0x124   :  { %v1591_v29 = vpop.f32.mrf.mxu1  ;;  %v892_v0 = vpop.permute.xlu0 %891 }
 0x125   :  { %v1422_v33 = vpop.f32.mrf.mxu0  ;;  %1051 = vst.msk [vmem:[#allocation2 + $0x208] sm:$0xff] %vm504_vm1, %v892_v0  ;;  %v894_v12 = vpop.permute.xlu1 %893 }
 0x126   :  { %v5844_v34 = vadd.f32 %v1591_v29, %v1422_v33  ;;  %1052 = vst.msk [vmem:[#allocation2 + $0x218] sm:$0xff] %vm504_vm1, %v894_v12  ;;  %v4386_v29 = vld [vmem:[%s7931_s0 + $0x260] sm:$0xff]  ;;  %v1136_v33 = vld [vmem:[#allocation2 + $0x1a8] sm:$0xff] }
 0x127   :  { %1630 = vmatmul.bf16.gmra.mxu1 %v1232_v26  ;;  %v898_v25 = vpop.permute.xlu2 %897  ;;  %694 = vst.msk [vmem:[#allocation2 + $0x3c8] sm:$0xff] %vm118_vm0, %v4386_v29 }
 0x128   :  { %1461 = vmatmul.bf16.gmra.mxu0 %v1231_v35  ;;  %1054 = vst.msk [vmem:[#allocation2 + $0x238] sm:$0xff] %vm504_vm1, %v898_v25  ;;  %v1138_v35 = vld [vmem:[#allocation2 + $0x1b8] sm:$0xff] }
 0x129   :  { %v1238_v45 = vpack.c.bf16 %v1138_v35, %v1136_v33 }
 0x12a   :  { %921 = vrot.lane.b32.xlu0 %v5826_v19, %s5000_s17  ;;  %v4385_v19 = vld [vmem:[%s7931_s0 + $0x258] sm:$0xff]  ;;  %428 = vrot.lane.b32.xlu1 %v5704_v30, %s5000_s17 }
 0x12b   :  { %693 = vst.msk [vmem:[#allocation2 + $0x3b8] sm:$0xff] %vm118_vm0, %v4385_v19  ;;  %919 = vrot.lane.b32.xlu2 %v5806_v9, %s5000_s17  ;;  %v4388_v9 = vld [vmem:[%s7931_s0 + $0x270] sm:$0xff] }
 0x12c   :  { %v1593_v39 = vpop.f32.mrf.mxu1  ;;  %v383_v17 = vpop.permute.xlu0 %382  ;;  %696 = vst.msk [vmem:[#allocation2 + $0x3e8] sm:$0xff] %vm118_vm0, %v4388_v9 }
 0x12d   :  { %v1424_v41 = vpop.f32.mrf.mxu0  ;;  %540 = vst.msk [vmem:[#allocation2 + $0x230] sm:$0xff] %vm504_vm1, %v383_v17  ;;  %v896_v24 = vpop.permute.xlu1 %895  ;;  %v1145_v17 = vld [vmem:[#allocation2 + $0x1f0] sm:$0xff] }
 0x12e   :  { %v5855_v42 = vadd.f32 %v1593_v39, %v1424_v41  ;;  %1053 = vst.msk [vmem:[#allocation2 + $0x228] sm:$0xff] %vm504_vm1, %v896_v24  ;;  %v4303_v24 = vld [vmem:[%s7931_s0 + $0x1b0] sm:$0xff] }
 0x12f   :  { %v900_v40 = vpop.permute.xlu2 %899  ;;  %674 = vst.msk [vmem:[#allocation2 + $0x288] sm:$0xff] %vm118_vm0, %v4303_v24 }
 0x130   :  { %1055 = vst.msk [vmem:[#allocation2 + $0x248] sm:$0xff] %vm504_vm1, %v900_v40 }
 0x131   :  { %167 = vst.msk [vmem:[#allocation2 + $0x300] sm:$0xff] %vm118_vm0, %v4303_v24  ;;  %v1154_v24 = vld [vmem:[#allocation2 + $0x238] sm:$0xff] }
 0x132   :  { %943 = vrot.lane.b32.xlu0 %v4385_v19, %s5000_s17  ;;  %945 = vrot.lane.b32.xlu1 %v4386_v29, %s5000_s17  ;;  %v95_v19 = vld [vmem:[%s7931_s0 + $0x170] sm:$0xff] }
 0x133   :  { %430 = vrot.lane.b32.xlu2 %v5777_v58, %s5000_s17  ;;  %v1239_v58 = vpack.c.bf16 %v1141_v60, %v1139_v56  ;;  %160 = vst.msk [vmem:[#allocation2 + $0x290] sm:$0xff] %vm118_vm0, %v95_v19  ;;  %v96_v60 = vld [vmem:[%s7931_s0 + $0x178] sm:$0xff] }
 0x134   :  { %v1596_v52 = vpop.f32.mrf.mxu1  ;;  %v385_v27 = vpop.permute.xlu0 %384  ;;  %161 = vst.msk [vmem:[#allocation2 + $0x2a0] sm:$0xff] %vm118_vm0, %v96_v60 }
 0x135   :  { %v1427_v54 = vpop.f32.mrf.mxu0  ;;  %541 = vst.msk [vmem:[#allocation2 + $0x240] sm:$0xff] %vm504_vm1, %v385_v27  ;;  %v387_v39 = vpop.permute.xlu1 %386  ;;  %v1152_v19 = vld [vmem:[#allocation2 + $0x228] sm:$0xff] }
 0x136   :  { %v5872_v55 = vadd.f32 %v1596_v52, %v1427_v54  ;;  %542 = vst.msk [vmem:[#allocation2 + $0x250] sm:$0xff] %vm504_vm1, %v387_v39 }
 0x137   :  { %1635 = vmatmul.bf16.gmra.mxu1 %v1234_v47  ;;  %v1237_v47 = vpack.c.bf16 %v1137_v38, %v1135_v37  ;;  %v391_v50 = vpop.permute.xlu2 %390  ;;  %v1156_v60 = vld [vmem:[#allocation2 + $0x248] sm:$0xff] }
 0x138   :  { %1466 = vmatmul.bf16.gmra.mxu0 %v1233_v23  ;;  %544 = vst.msk [vmem:[#allocation2 + $0x270] sm:$0xff] %vm504_vm1, %v391_v50  ;;  %v1142_v23 = vld [vmem:[#allocation2 + $0x1d8] sm:$0xff] }
 0x13a   :  { %410 = vrot.lane.b32.xlu0 %v5726_v36, %s5000_s17  ;;  %923 = vrot.lane.b32.xlu1 %v4255_v8, %s5000_s17 }
 0x13b   :  { %408 = vrot.lane.b32.xlu2 %v5801_v7, %s5000_s17  ;;  %v4389_v7 = vld [vmem:[%s7931_s0 + $0x278] sm:$0xff] }
 0x13c   :  { %v1598_v63 = vpop.f32.mrf.mxu1  ;;  %v902_v31 = vpop.permute.xlu0 %901  ;;  %697 = vst.msk [vmem:[#allocation2 + $0x3f8] sm:$0xff] %vm118_vm0, %v4389_v7 }
 0x13d   :  { %v1429_v1 = vpop.f32.mrf.mxu0  ;;  %1056 = vst.msk [vmem:[#allocation2 + $0x258] sm:$0xff] %vm504_vm1, %v902_v31  ;;  %v389_v36 = vpop.permute.xlu1 %388 }
 0x13e   :  { %v5896_v3 = vadd.f32 %v1598_v63, %v1429_v1  ;;  %543 = vst.msk [vmem:[#allocation2 + $0x260] sm:$0xff] %vm504_vm1, %v389_v36 }
 0x13f   :  { %v413_v62 = vpop.permute.xlu2 %412 }
 0x140   :  { %555 = vst.msk [vmem:[#allocation2 + $0x320] sm:$0xff] %vm504_vm1, %v413_v62 }
 0x142   :  { %432 = vrot.lane.b32.xlu0 %v5751_v49, %s5000_s17  ;;  %434 = vrot.lane.b32.xlu1 %v5772_v57, %s5000_s17  ;;  %v1140_v49 = vld [vmem:[#allocation2 + $0x1c8] sm:$0xff] }
 0x143   :  { %v1240_v16 = vpack.c.bf16 %v1142_v23, %v1140_v49  ;;  %925 = vrot.lane.b32.xlu2 %v5861_v2, %s5000_s17  ;;  %v1149_v49 = vld [vmem:[#allocation2 + $0x210] sm:$0xff] }
 0x144   :  { %v1601_v14 = vpop.f32.mrf.mxu1  ;;  %v904_v52 = vpop.permute.xlu0 %903 }
 0x145   :  { %v1432_v18 = vpop.f32.mrf.mxu0  ;;  %1057 = vst.msk [vmem:[#allocation2 + $0x268] sm:$0xff] %vm504_vm1, %v904_v52  ;;  %v906_v61 = vpop.permute.xlu1 %905  ;;  %v1148_v52 = vld [vmem:[#allocation2 + $0x208] sm:$0xff] }
 0x146   :  { %v5909_v20 = vadd.f32 %v1601_v14, %v1432_v18  ;;  %1058 = vst.msk [vmem:[#allocation2 + $0x278] sm:$0xff] %vm504_vm1, %v906_v61  ;;  %v1143_v14 = vld [vmem:[#allocation2 + $0x1e0] sm:$0xff]  ;;  %v1144_v18 = vld [vmem:[#allocation2 + $0x1e8] sm:$0xff] }
 0x147   :  { %1640 = vmatmul.bf16.gmra.mxu1 %v1236_v11  ;;  %v930_v6 = vpop.permute.xlu2 %929  ;;  %v1241_v40 = vpack.c.bf16 %v1145_v17, %v1143_v14 }
 0x148   :  { %7974 = vst [vmem:[#allocation8_spill] sm:$0xff] %v5909_v20  ;;  %1471 = vmatmul.bf16.gmra.mxu0 %v1235_v21  ;;  %v1146_v21 = vld [vmem:[#allocation2 + $0x1f8] sm:$0xff] }
 0x149   :  { %1070 = vst.msk [vmem:[#allocation2 + $0x338] sm:$0xff] %vm504_vm1, %v930_v6  ;;  %v1242_v35 = vpack.c.bf16 %v1146_v21, %v1144_v18 }
 0x14a   :  { %949 = vrot.lane.b32.xlu0 %v4388_v9, %s5000_s17  ;;  %436 = vrot.lane.b32.xlu1 %v5881_v59, %s5000_s17  ;;  %v4390_v59 = vld [vmem:[%s7931_s0 + $0x280] sm:$0xff] }
 0x14b   :  { %v1147_v9 = vld [vmem:[#allocation2 + $0x200] sm:$0xff] }
 0x14c   :  { %v1603_v26 = vpop.f32.mrf.mxu1  ;;  %v415_v0 = vpop.permute.xlu0 %414 }
 0x14d   :  { %v1434_v28 = vpop.f32.mrf.mxu0  ;;  %556 = vst.msk [vmem:[#allocation2 + $0x330] sm:$0xff] %vm504_vm1, %v415_v0  ;;  %v928_v4 = vpop.permute.xlu1 %927 }
 0x14e   :  { %v5927_v30 = vadd.f32 %v1603_v26, %v1434_v28  ;;  %1069 = vst.msk [vmem:[#allocation2 + $0x328] sm:$0xff] %vm504_vm1, %v928_v4  ;;  %v1183_v26 = vld [vmem:[#allocation2 + $0x320] sm:$0xff] }
 0x14f   :  { %v908_v25 = vpop.permute.xlu2 %907 }
 0x150   :  { %7975 = vst [vmem:[#allocation9_spill] sm:$0xff] %v5927_v30  ;;  %v1186_v32 = vld [vmem:[#allocation2 + $0x338] sm:$0xff] }
 0x151   :  { %1059 = vst.msk [vmem:[#allocation2 + $0x288] sm:$0xff] %vm504_vm1, %v908_v25  ;;  %v1151_v25 = vld [vmem:[#allocation2 + $0x220] sm:$0xff] }
 0x152   :  { %953 = vrot.lane.b32.xlu1 %v4390_v59, %s5000_s17  ;;  %951 = vrot.lane.b32.xlu0 %v4389_v7, %s5000_s17 }
 0x154   :  { %v1606_v41 = vpop.f32.mrf.mxu1  ;;  %v393_v11 = vpop.permute.xlu0 %392  ;;  %v1185_v28 = vld [vmem:[#allocation2 + $0x330] sm:$0xff] }
 0x155   :  { %v1437_v43 = vpop.f32.mrf.mxu0  ;;  %545 = vst.msk [vmem:[#allocation2 + $0x280] sm:$0xff] %vm504_vm1, %v393_v11  ;;  %v395_v8 = vpop.permute.xlu1 %394  ;;  %v1184_v29 = vld [vmem:[#allocation2 + $0x328] sm:$0xff]  ;;  %v1261_v37 = vpack.c.bf16 %v1185_v28, %v1183_v26  ;;  %v1153_v26 = vld [vmem:[#allocation2 + $0x230] sm:$0xff] }
 0x156   :  { %v5944_v46 = vadd.f32 %v1606_v41, %v1437_v43  ;;  %546 = vst.msk [vmem:[#allocation2 + $0x290] sm:$0xff] %vm504_vm1, %v395_v8  ;;  %v1262_v38 = vpack.c.bf16 %v1186_v32, %v1184_v29  ;;  %v4387_v41 = vld [vmem:[%s7931_s0 + $0x268] sm:$0xff]  ;;  %v106_v43 = vld [vmem:[%s7931_s0 + $0x1d0] sm:$0xff] }
 0x157   :  { %1645 = vmatmul.bf16.gmra.mxu1 %v1238_v45  ;;  %1536 = vmatmul.bf16.vlgmr.msra.gmra.mxu3 %v1261_v37  ;;  %695 = vst.msk [vmem:[#allocation2 + $0x3d8] sm:$0xff] %vm118_vm0, %v4387_v41  ;;  %v419_v45 = vpop.permute.xlu2 %418  ;;  %v1245_v37 = vpack.c.bf16 %v1153_v26, %v1151_v25  ;;  %v1159_v25 = vld [vmem:[#allocation2 + $0x260] sm:$0xff]  ;;  %v1160_v26 = vld [vmem:[#allocation2 + $0x268] sm:$0xff] }
 0x158   :  { %7976 = vst [vmem:[#allocation10_spill] sm:$0xff] %v5944_v46  ;;  %1476 = vmatmul.bf16.gmra.mxu0 %v1237_v47  ;;  %1705 = vmatmul.bf16.vlgmr.msra.gmra.mxu2 %v1262_v38 }
 0x159   :  { %947 = vrot.lane.b32.xlu2 %v4387_v41, %s5000_s17  ;;  %171 = vst.msk [vmem:[#allocation2 + $0x340] sm:$0xff] %vm118_vm0, %v106_v43 }
 0x15a   :  { %558 = vst.msk [vmem:[#allocation2 + $0x350] sm:$0xff] %vm504_vm1, %v419_v45 }
 0x15b   :  { %678 = vst.msk [vmem:[#allocation2 + $0x2c8] sm:$0xff] %vm118_vm0, %v106_v43 }
 0x15c   :  { %v1608_v51 = vpop.f32.mrf.mxu1  ;;  %v910_v2 = vpop.permute.xlu0 %909 }
 0x15d   :  { %v1439_v53 = vpop.f32.mrf.mxu0  ;;  %1060 = vst.msk [vmem:[#allocation2 + $0x298] sm:$0xff] %vm504_vm1, %v910_v2  ;;  %v417_v31 = vpop.permute.xlu1 %416 }
 0x15e   :  { %v5954_v54 = vadd.f32 %v1608_v51, %v1439_v53  ;;  %557 = vst.msk [vmem:[#allocation2 + $0x340] sm:$0xff] %vm504_vm1, %v417_v31  ;;  %v1150_v53 = vld [vmem:[#allocation2 + $0x218] sm:$0xff]  ;;  %v99_v31 = vld [vmem:[%s7931_s0 + $0x190] sm:$0xff] }
 0x15f   :  { %v397_v56 = vpop.permute.xlu2 %396  ;;  %164 = vst.msk [vmem:[#allocation2 + $0x2d0] sm:$0xff] %vm118_vm0, %v99_v31 }
 0x160   :  { %7977 = vst [vmem:[#allocation11_spill] sm:$0xff] %v5954_v54 }
 0x161   :  { %438 = vrot.lane.b32.xlu2 %v5834_v22, %s5000_s17  ;;  %v1244_v22 = vpack.c.bf16 %v1150_v53, %v1148_v52  ;;  %547 = vst.msk [vmem:[#allocation2 + $0x2a0] sm:$0xff] %vm504_vm1, %v397_v56  ;;  %v1189_v11 = vld [vmem:[#allocation2 + $0x350] sm:$0xff]  ;;  %v1155_v56 = vld [vmem:[#allocation2 + $0x240] sm:$0xff] }
 0x164   :  { %v1611_v63 = vpop.f32.mrf.mxu1  ;;  %v932_v36 = vpop.permute.xlu0 %931 }
 0x165   :  { %v1442_v1 = vpop.f32.mrf.mxu0  ;;  %1071 = vst.msk [vmem:[#allocation2 + $0x348] sm:$0xff] %vm504_vm1, %v932_v36  ;;  %v934_v23 = vpop.permute.xlu1 %933 }
 0x166   :  { %v5968_v57 = vadd.f32 %v1611_v63, %v1442_v1  ;;  %1072 = vst.msk [vmem:[#allocation2 + $0x358] sm:$0xff] %vm504_vm1, %v934_v23  ;;  %v97_v63 = vld [vmem:[%s7931_s0 + $0x180] sm:$0xff] }
 0x167   :  { %1650 = vmatmul.bf16.gmra.mxu1 %v1240_v16  ;;  %v1243_v16 = vpack.c.bf16 %v1149_v49, %v1147_v9  ;;  %162 = vst.msk [vmem:[#allocation2 + $0x2b0] sm:$0xff] %vm118_vm0, %v97_v63  ;;  %v914_v6 = vpop.permute.xlu2 %913  ;;  %v4308_v63 = vld [vmem:[%s7931_s0 + $0x1d8] sm:$0xff] }
 0x168   :  { %7978 = vst [vmem:[#allocation12_spill] sm:$0xff] %v5968_v57  ;;  %1481 = vmatmul.bf16.gmra.mxu0 %v1239_v58  ;;  %v4305_v58 = vld [vmem:[%s7931_s0 + $0x1c0] sm:$0xff] }
 0x169   :  { %676 = vst.msk [vmem:[#allocation2 + $0x2a8] sm:$0xff] %vm118_vm0, %v4305_v58 }
 0x16a   :  { %1062 = vst.msk [vmem:[#allocation2 + $0x2b8] sm:$0xff] %vm504_vm1, %v914_v6 }
 0x16b   :  { %679 = vst.msk [vmem:[#allocation2 + $0x2d8] sm:$0xff] %vm118_vm0, %v4308_v63 }
 0x16c   :  { %v1613_v10 = vpop.f32.mrf.mxu1  ;;  %v399_v62 = vpop.permute.xlu0 %398  ;;  %v1188_v14 = vld [vmem:[#allocation2 + $0x348] sm:$0xff] }
 0x16d   :  { %v1444_v12 = vpop.f32.mrf.mxu0  ;;  %548 = vst.msk [vmem:[#allocation2 + $0x2b0] sm:$0xff] %vm504_vm1, %v399_v62  ;;  %v912_v4 = vpop.permute.xlu1 %911  ;;  %v1190_v17 = vld [vmem:[#allocation2 + $0x358] sm:$0xff]  ;;  %v1157_v62 = vld [vmem:[#allocation2 + $0x250] sm:$0xff] }
 0x16e   :  { %v5977_v13 = vadd.f32 %v1613_v10, %v1444_v12  ;;  %v1187_v10 = vld [vmem:[#allocation2 + $0x340] sm:$0xff]  ;;  %1061 = vst.msk [vmem:[#allocation2 + $0x2a8] sm:$0xff] %vm504_vm1, %v912_v4  ;;  %v1264_v21 = vpack.c.bf16 %v1190_v17, %v1188_v14  ;;  %v100_v17 = vld [vmem:[%s7931_s0 + $0x198] sm:$0xff] }
 0x16f   :  { %v1263_v7 = vpack.c.bf16 %v1189_v11, %v1187_v10  ;;  %v936_v2 = vpop.permute.xlu2 %935  ;;  %165 = vst.msk [vmem:[#allocation2 + $0x2e0] sm:$0xff] %vm118_vm0, %v100_v17 }
 0x170   :  { %7979 = vst [vmem:[#allocation13_spill] sm:$0xff] %v5977_v13  ;;  %1710 = vmatmul.bf16.gmra.mxu2 %v1264_v21 }
 0x171   :  { %1541 = vmatmul.bf16.gmra.mxu3 %v1263_v7  ;;  %1073 = vst.msk [vmem:[#allocation2 + $0x368] sm:$0xff] %vm504_vm1, %v936_v2  ;;  %v1161_v2 = vld [vmem:[#allocation2 + $0x270] sm:$0xff] }
 0x174   :  { %v1616_v27 = vpop.f32.mrf.mxu1  ;;  %v421_v59 = vpop.permute.xlu0 %420 }
 0x175   :  { %v1447_v33 = vpop.f32.mrf.mxu0  ;;  %559 = vst.msk [vmem:[#allocation2 + $0x360] sm:$0xff] %vm504_vm1, %v421_v59  ;;  %v4319_v59 = vld [vmem:[%s7931_s0 + $0x240] sm:$0xff] }
 0x176   :  { %v5999_v39 = vadd.f32 %v1616_v27, %v1447_v33  ;;  %v423_v27 = vpop.permute.xlu1 %422  ;;  %v1246_v33 = vpack.c.bf16 %v1154_v24, %v1152_v19  ;;  %690 = vst.msk [vmem:[#allocation2 + $0x388] sm:$0xff] %vm118_vm0, %v4319_v59  ;;  %v103_v59 = vld [vmem:[%s7931_s0 + $0x1b8] sm:$0xff] }
 0x177   :  { %1655 = vmatmul.bf16.gmra.mxu1 %v1242_v35  ;;  %560 = vst.msk [vmem:[#allocation2 + $0x370] sm:$0xff] %vm504_vm1, %v423_v27  ;;  %v403_v41 = vpop.permute.xlu2 %402  ;;  %v1162_v27 = vld [vmem:[#allocation2 + $0x278] sm:$0xff] }
 0x178   :  { %1486 = vmatmul.bf16.gmra.mxu0 %v1241_v40  ;;  %v98_v40 = vld [vmem:[%s7931_s0 + $0x188] sm:$0xff]  ;;  %550 = vst.msk [vmem:[#allocation2 + $0x2d0] sm:$0xff] %vm504_vm1, %v403_v41 }
 0x179   :  { %163 = vst.msk [vmem:[#allocation2 + $0x2c0] sm:$0xff] %vm118_vm0, %v98_v40 }
 0x17a   :  { %168 = vst.msk [vmem:[#allocation2 + $0x310] sm:$0xff] %vm118_vm0, %v103_v59 }
 0x17c   :  { %v1618_v47 = vpop.f32.mrf.mxu1  ;;  %v938_v29 = vpop.permute.xlu0 %937  ;;  %v1191_v43 = vld [vmem:[#allocation2 + $0x360] sm:$0xff] }
 0x17d   :  { %v1449_v50 = vpop.f32.mrf.mxu0  ;;  %1074 = vst.msk [vmem:[#allocation2 + $0x378] sm:$0xff] %vm504_vm1, %v938_v29  ;;  %v101_v29 = vld [vmem:[%s7931_s0 + $0x1a0] sm:$0xff] }
 0x17e   :  { %v6015_v51 = vadd.f32 %v1618_v47, %v1449_v50  ;;  %v401_v38 = vpop.permute.xlu1 %400  ;;  %v1193_v36 = vld [vmem:[#allocation2 + $0x370] sm:$0xff]  ;;  %v1192_v50 = vld [vmem:[#allocation2 + $0x368] sm:$0xff]  ;;  %166 = vst.msk [vmem:[#allocation2 + $0x2f0] sm:$0xff] %vm118_vm0, %v101_v29 }
 0x17f   :  { %549 = vst.msk [vmem:[#allocation2 + $0x2c0] sm:$0xff] %vm504_vm1, %v401_v38  ;;  %v1265_v53 = vpack.c.bf16 %v1193_v36, %v1191_v43 }
 0x181   :  { %1546 = vmatmul.bf16.gmra.mxu3 %v1265_v53  ;;  %v1249_v53 = vpack.c.bf16 %v1161_v2, %v1159_v25 }
 0x184   :  { %v1621_v61 = vpop.f32.mrf.mxu1  ;;  %v916_v47 = vpop.permute.xlu0 %915  ;;  %v1194_v9 = vld [vmem:[#allocation2 + $0x378] sm:$0xff] }
 0x185   :  { %v1452_v0 = vpop.f32.mrf.mxu0  ;;  %v1266_v23 = vpack.c.bf16 %v1194_v9, %v1192_v50  ;;  %1063 = vst.msk [vmem:[#allocation2 + $0x2c8] sm:$0xff] %vm504_vm1, %v916_v47  ;;  %v4310_v47 = vld [vmem:[%s7931_s0 + $0x1e8] sm:$0xff] }
 0x186   :  { %v6030_v1 = vadd.f32 %v1621_v61, %v1452_v0  ;;  %v1158_v61 = vld [vmem:[#allocation2 + $0x258] sm:$0xff]  ;;  %v918_v0 = vpop.permute.xlu1 %917  ;;  %681 = vst.msk [vmem:[#allocation2 + $0x2f8] sm:$0xff] %vm118_vm0, %v4310_v47  ;;  %v115_v47 = vld [vmem:[%s7931_s0 + $0x220] sm:$0xff] }
 0x187   :  { %1660 = vmatmul.bf16.gmra.mxu1 %v1244_v22  ;;  %1715 = vmatmul.bf16.gmra.mxu2 %v1266_v23  ;;  %v425_v22 = vpop.permute.xlu2 %424  ;;  %v1248_v10 = vpack.c.bf16 %v1158_v61, %v1156_v60  ;;  %1064 = vst.msk [vmem:[#allocation2 + $0x2d8] sm:$0xff] %vm504_vm1, %v918_v0  ;;  %v113_v61 = vld [vmem:[%s7931_s0 + $0x210] sm:$0xff] }
 0x188   :  { %7980 = vst [vmem:[#allocation14_spill] sm:$0xff] %v6030_v1  ;;  %1491 = vmatmul.bf16.gmra.mxu0 %v1243_v16  ;;  %v110_v16 = vld [vmem:[%s7931_s0 + $0x1f8] sm:$0xff] }
 0x189   :  { %175 = vst.msk [vmem:[#allocation2 + $0x380] sm:$0xff] %vm118_vm0, %v110_v16 }
 0x18a   :  { %561 = vst.msk [vmem:[#allocation2 + $0x380] sm:$0xff] %vm504_vm1, %v425_v22 }
 0x18b   :  { %682 = vst.msk [vmem:[#allocation2 + $0x308] sm:$0xff] %vm118_vm0, %v110_v16  ;;  %v1164_v16 = vld [vmem:[#allocation2 + $0x288] sm:$0xff] }
 0x18c   :  { %v1623_v12 = vpop.f32.mrf.mxu1  ;;  %v427_v4 = vpop.permute.xlu0 %426  ;;  %178 = vst.msk [vmem:[#allocation2 + $0x3b0] sm:$0xff] %vm118_vm0, %v113_v61 }
 0x18d   :  { %v1454_v18 = vpop.f32.mrf.mxu0  ;;  %562 = vst.msk [vmem:[#allocation2 + $0x390] sm:$0xff] %vm504_vm1, %v427_v4  ;;  %v1163_v4 = vld [vmem:[#allocation2 + $0x280] sm:$0xff] }
 0x18e   :  { %v6040_v8 = vadd.f32 %v1623_v12, %v1454_v18  ;;  %v1247_v12 = vpack.c.bf16 %v1157_v62, %v1155_v56  ;;  %v940_v7 = vpop.permute.xlu1 %939  ;;  %v112_v56 = vld [vmem:[%s7931_s0 + $0x208] sm:$0xff]  ;;  %180 = vst.msk [vmem:[#allocation2 + $0x3d0] sm:$0xff] %vm118_vm0, %v115_v47 }
 0x18f   :  { %v942_v14 = vpop.permute.xlu2 %941  ;;  %1075 = vst.msk [vmem:[#allocation2 + $0x388] sm:$0xff] %vm504_vm1, %v940_v7 }
 0x190   :  { %7981 = vst [vmem:[#allocation15_spill] sm:$0xff] %v6040_v8 }
 0x191   :  { %1076 = vst.msk [vmem:[#allocation2 + $0x398] sm:$0xff] %vm504_vm1, %v942_v14  ;;  %v1195_v40 = vld [vmem:[#allocation2 + $0x380] sm:$0xff] }
 0x192   :  { %177 = vst.msk [vmem:[#allocation2 + $0x3a0] sm:$0xff] %vm118_vm0, %v112_v56 }
 0x194   :  { %v1626_v28 = vpop.f32.mrf.mxu1  ;;  %v405_v21 = vpop.permute.xlu0 %404  ;;  %v1197_v41 = vld [vmem:[#allocation2 + $0x390] sm:$0xff] }
 0x195   :  { %v1457_v32 = vpop.f32.mrf.mxu0  ;;  %551 = vst.msk [vmem:[#allocation2 + $0x2e0] sm:$0xff] %vm504_vm1, %v405_v21  ;;  %v1267_v36 = vpack.c.bf16 %v1197_v41, %v1195_v40 }
 0x196   :  { %v6046_v35 = vadd.f32 %v1626_v28, %v1457_v32  ;;  %v407_v28 = vpop.permute.xlu1 %406  ;;  %v4309_v32 = vld [vmem:[%s7931_s0 + $0x1e0] sm:$0xff]  ;;  %v1196_v31 = vld [vmem:[#allocation2 + $0x388] sm:$0xff] }
 0x197   :  { %1665 = vmatmul.bf16.gmra.mxu1 %v1246_v33  ;;  %v920_v33 = vpop.permute.xlu2 %919  ;;  %552 = vst.msk [vmem:[#allocation2 + $0x2f0] sm:$0xff] %vm504_vm1, %v407_v28  ;;  %1551 = vmatmul.bf16.gmra.mxu3 %v1267_v36  ;;  %v1167_v36 = vld [vmem:[#allocation2 + $0x2a0] sm:$0xff] }
 0x198   :  { %7982 = vst [vmem:[#allocation16_spill] sm:$0xff] %v6046_v35  ;;  %1496 = vmatmul.bf16.gmra.mxu0 %v1245_v37  ;;  %v1198_v50 = vld [vmem:[#allocation2 + $0x398] sm:$0xff] }
 0x199   :  { %680 = vst.msk [vmem:[#allocation2 + $0x2e8] sm:$0xff] %vm118_vm0, %v4309_v32  ;;  %v1268_v9 = vpack.c.bf16 %v1198_v50, %v1196_v31  ;;  %v1169_v50 = vld [vmem:[#allocation2 + $0x2b0] sm:$0xff] }
 0x19a   :  { %1065 = vst.msk [vmem:[#allocation2 + $0x2e8] sm:$0xff] %vm504_vm1, %v920_v33 }
 0x19b   :  { %1720 = vmatmul.bf16.gmra.mxu2 %v1268_v9 }
 0x19c   :  { %v1628_v45 = vpop.f32.mrf.mxu1  ;;  %v922_v38 = vpop.permute.xlu0 %921 }
 0x19d   :  { %v1459_v52 = vpop.f32.mrf.mxu0  ;;  %1066 = vst.msk [vmem:[#allocation2 + $0x2f8] sm:$0xff] %vm504_vm1, %v922_v38 }
 0x19e   :  { %v6057_v49 = vadd.f32 %v1628_v45, %v1459_v52  ;;  %v1250_v45 = vpack.c.bf16 %v1162_v27, %v1160_v26  ;;  %v429_v23 = vpop.permute.xlu1 %428  ;;  %v114_v27 = vld [vmem:[%s7931_s0 + $0x218] sm:$0xff] }
 0x19f   :  { %v431_v60 = vpop.permute.xlu2 %430  ;;  %563 = vst.msk [vmem:[#allocation2 + $0x3a0] sm:$0xff] %vm504_vm1, %v429_v23 }
 0x1a0   :  { %7983 = vst [vmem:[#allocation17_spill] sm:$0xff] %v6057_v49 }
 0x1a1   :  { %564 = vst.msk [vmem:[#allocation2 + $0x3b0] sm:$0xff] %vm504_vm1, %v431_v60 }
 0x1a2   :  { %179 = vst.msk [vmem:[#allocation2 + $0x3c0] sm:$0xff] %vm118_vm0, %v114_v27  ;;  %v1173_v27 = vld [vmem:[#allocation2 + $0x2d0] sm:$0xff] }
 0x1a4   :  { %v1631_v58 = vpop.f32.mrf.mxu1  ;;  %v944_v63 = vpop.permute.xlu0 %943 }
 0x1a5   :  { %v1462_v6 = vpop.f32.mrf.mxu0  ;;  %1077 = vst.msk [vmem:[#allocation2 + $0x3a8] sm:$0xff] %vm504_vm1, %v944_v63  ;;  %v1253_v63 = vpack.c.bf16 %v1169_v50, %v1167_v36 }
 0x1a6   :  { %v6070_v11 = vadd.f32 %v1631_v58, %v1462_v6  ;;  %v1166_v58 = vld [vmem:[#allocation2 + $0x298] sm:$0xff]  ;;  %v1165_v6 = vld [vmem:[#allocation2 + $0x290] sm:$0xff]  ;;  %v1199_v2 = vld [vmem:[#allocation2 + $0x3a0] sm:$0xff] }
 0x1a7   :  { %1670 = vmatmul.bf16.gmra.mxu1 %v1248_v10  ;;  %v946_v10 = vpop.permute.xlu1 %945 }
 0x1a8   :  { %7984 = vst [vmem:[#allocation18_spill] sm:$0xff] %v6070_v11  ;;  %1501 = vmatmul.bf16.gmra.mxu0 %v1247_v12  ;;  %v409_v12 = vpop.permute.xlu2 %408  ;;  %v1201_v28 = vld [vmem:[#allocation2 + $0x3b0] sm:$0xff] }
 0x1a9   :  { %1078 = vst.msk [vmem:[#allocation2 + $0x3b8] sm:$0xff] %vm504_vm1, %v946_v10  ;;  %v1269_v33 = vpack.c.bf16 %v1201_v28, %v1199_v2 }
 0x1aa   :  { %553 = vst.msk [vmem:[#allocation2 + $0x300] sm:$0xff] %vm504_vm1, %v409_v12 }
 0x1ab   :  { %1556 = vmatmul.bf16.gmra.mxu3 %v1269_v33 }
 0x1ac   :  { %v1633_v18 = vpop.f32.mrf.mxu1  ;;  %v411_v14 = vpop.permute.xlu0 %410 }
 0x1ad   :  { %v1464_v19 = vpop.f32.mrf.mxu0  ;;  %554 = vst.msk [vmem:[#allocation2 + $0x310] sm:$0xff] %vm504_vm1, %v411_v14 }
 0x1ae   :  { %v6085_v24 = vadd.f32 %v1633_v18, %v1464_v19  ;;  %v1252_v18 = vpack.c.bf16 %v1166_v58, %v1164_v16  ;;  %v1251_v19 = vpack.c.bf16 %v1165_v6, %v1163_v4  ;;  %v116_v16 = vld [vmem:[%s7931_s0 + $0x228] sm:$0xff] }
 0x1af   :  { %v924_v25 = vpop.permute.xlu1 %923  ;;  %181 = vst.msk [vmem:[#allocation2 + $0x3e0] sm:$0xff] %vm118_vm0, %v116_v16 }
 0x1b0   :  { %v926_v26 = vpop.permute.xlu2 %925  ;;  %1067 = vst.msk [vmem:[#allocation2 + $0x308] sm:$0xff] %vm504_vm1, %v924_v25  ;;  %v1202_v38 = vld [vmem:[#allocation2 + $0x3b8] sm:$0xff]  ;;  %v117_v25 = vld [vmem:[%s7931_s0 + $0x230] sm:$0xff] }
 0x1b1   :  { %1068 = vst.msk [vmem:[#allocation2 + $0x318] sm:$0xff] %vm504_vm1, %v926_v26  ;;  %v1171_v26 = vld [vmem:[#allocation2 + $0x2c0] sm:$0xff] }
 0x1b2   :  { %182 = vst.msk [vmem:[#allocation2 + $0x3f0] sm:$0xff] %vm118_vm0, %v117_v25 }
 0x1b4   :  { %v1636_v37 = vpop.f32.mrf.mxu1  ;;  %v433_v32 = vpop.permute.xlu0 %432 }
 0x1b5   :  { %v1467_v43 = vpop.f32.mrf.mxu0  ;;  %565 = vst.msk [vmem:[#allocation2 + $0x3c0] sm:$0xff] %vm504_vm1, %v433_v32 }
 0x1b6   :  { %v6100_v52 = vadd.f32 %v1636_v37, %v1467_v43  ;;  %v1200_v37 = vld [vmem:[#allocation2 + $0x3a8] sm:$0xff] }
 0x1b7   :  { %1675 = vmatmul.bf16.gmra.mxu1 %v1250_v45  ;;  %v1270_v41 = vpack.c.bf16 %v1202_v38, %v1200_v37  ;;  %v1168_v43 = vld [vmem:[#allocation2 + $0x2a8] sm:$0xff]  ;;  %v1170_v45 = vld [vmem:[#allocation2 + $0x2b8] sm:$0xff] }
 0x1b8   :  { %1506 = vmatmul.bf16.gmra.mxu0 %v1249_v53  ;;  %v435_v53 = vpop.permute.xlu1 %434  ;;  %v948_v9 = vpop.permute.xlu2 %947  ;;  %v1254_v61 = vpack.c.bf16 %v1170_v45, %v1168_v43  ;;  %v1182_v25 = vld [vmem:[#allocation2 + $0x318] sm:$0xff] }
 0x1b9   :  { %1725 = vmatmul.bf16.gmra.mxu2 %v1270_v41  ;;  %566 = vst.msk [vmem:[#allocation2 + $0x3d0] sm:$0xff] %vm504_vm1, %v435_v53 }
 0x1ba   :  { %1079 = vst.msk [vmem:[#allocation2 + $0x3c8] sm:$0xff] %vm504_vm1, %v948_v9 }
 0x1bc   :  { %v1638_v62 = vpop.f32.mrf.mxu1  ;;  %v950_v56 = vpop.permute.xlu0 %949  ;;  %v1203_v58 = vld [vmem:[#allocation2 + $0x3c0] sm:$0xff] }
 0x1bd   :  { %v1469_v0 = vpop.f32.mrf.mxu0  ;;  %1080 = vst.msk [vmem:[#allocation2 + $0x3d8] sm:$0xff] %vm504_vm1, %v950_v56  ;;  %v1176_v56 = vld [vmem:[#allocation2 + $0x2e8] sm:$0xff] }
 0x1be   :  { %v6114_v22 = vadd.f32 %v1638_v62, %v1469_v0 }
 0x1c0   :  { %7985 = vst [vmem:[#allocation19_spill] sm:$0xff] %v6114_v22  ;;  %v437_v0 = vpop.permute.xlu1 %436  ;;  %v1205_v4 = vld [vmem:[#allocation2 + $0x3d0] sm:$0xff]  ;;  %v439_v28 = vpop.permute.xlu2 %438 }
 0x1c1   :  { %v1271_v10 = vpack.c.bf16 %v1205_v4, %v1203_v58  ;;  %v1204_v12 = vld [vmem:[#allocation2 + $0x3c8] sm:$0xff]  ;;  %567 = vst.msk [vmem:[#allocation2 + $0x3e0] sm:$0xff] %vm504_vm1, %v437_v0 }
 0x1c2   :  { %568 = vst.msk [vmem:[#allocation2 + $0x3f0] sm:$0xff] %vm504_vm1, %v439_v28 }
 0x1c3   :  { %1561 = vmatmul.bf16.gmra.mxu3 %v1271_v10 }
 0x1c4   :  { %v1641_v7 = vpop.f32.mrf.mxu1  ;;  %v952_v32 = vpop.permute.xlu0 %951 }
 0x1c5   :  { %v1472_v17 = vpop.f32.mrf.mxu0  ;;  %1081 = vst.msk [vmem:[#allocation2 + $0x3e8] sm:$0xff] %vm504_vm1, %v952_v32 }
 0x1c6   :  { %v6124_v21 = vadd.f32 %v1641_v7, %v1472_v17  ;;  %v1206_v7 = vld [vmem:[#allocation2 + $0x3d8] sm:$0xff] }
 0x1c7   :  { %1680 = vmatmul.bf16.gmra.mxu1 %v1252_v18  ;;  %v1272_v17 = vpack.c.bf16 %v1206_v7, %v1204_v12  ;;  %v1172_v18 = vld [vmem:[#allocation2 + $0x2c8] sm:$0xff] }
 0x1c8   :  { %7986 = vst [vmem:[#allocation20_spill] sm:$0xff] %v6124_v21  ;;  %1511 = vmatmul.bf16.gmra.mxu0 %v1251_v19  ;;  %v1174_v19 = vld [vmem:[#allocation2 + $0x2d8] sm:$0xff]  ;;  %v954_v2 = vpop.permute.xlu1 %953  ;;  %v1207_v41 = vld [vmem:[#allocation2 + $0x3e0] sm:$0xff] }
 0x1c9   :  { %1730 = vmatmul.bf16.gmra.mxu2 %v1272_v17  ;;  %1082 = vst.msk [vmem:[#allocation2 + $0x3f8] sm:$0xff] %vm504_vm1, %v954_v2  ;;  %v1256_v37 = vpack.c.bf16 %v1174_v19, %v1172_v18  ;;  %v1209_v47 = vld [vmem:[#allocation2 + $0x3f0] sm:$0xff]  ;;  %v1180_v19 = vld [vmem:[#allocation2 + $0x308] sm:$0xff] }
 0x1ca   :  { %v1273_v50 = vpack.c.bf16 %v1209_v47, %v1207_v41 }
 0x1cc   :  { %v1643_v29 = vpop.f32.mrf.mxu1  ;;  %v1208_v53 = vld [vmem:[#allocation2 + $0x3e8] sm:$0xff] }
 0x1cd   :  { %v1474_v40 = vpop.f32.mrf.mxu0 }
 0x1ce   :  { %v6133_v31 = vadd.f32 %v1643_v29, %v1474_v40  ;;  %v1255_v40 = vpack.c.bf16 %v1173_v27, %v1171_v26  ;;  %v1179_v26 = vld [vmem:[#allocation2 + $0x300] sm:$0xff]  ;;  %v1181_v27 = vld [vmem:[#allocation2 + $0x310] sm:$0xff] }
 0x1d0   :  { %7987 = vst [vmem:[#allocation21_spill] sm:$0xff] %v6133_v31  ;;  %v1210_v43 = vld [vmem:[#allocation2 + $0x3f8] sm:$0xff] }
 0x1d3   :  { %1566 = vmatmul.bf16.gmra.mxu3 %v1273_v50 }
 0x1d4   :  { %v1646_v23 = vpop.f32.mrf.mxu1 }
 0x1d5   :  { %v1477_v60 = vpop.f32.mrf.mxu0 }
 0x1d6   :  { %v6143_v62 = vadd.f32 %v1646_v23, %v1477_v60  ;;  %v1274_v23 = vpack.c.bf16 %v1210_v43, %v1208_v53  ;;  %v1178_v60 = vld [vmem:[#allocation2 + $0x2f8] sm:$0xff] }
 0x1d7   :  { %1685 = vmatmul.bf16.gmra.mxu1 %v1254_v61  ;;  %v1175_v61 = vld [vmem:[#allocation2 + $0x2e0] sm:$0xff]  ;;  %v1258_v58 = vpack.c.bf16 %v1178_v60, %v1176_v56 }
 0x1d8   :  { %7988 = vst [vmem:[#allocation22_spill] sm:$0xff] %v6143_v62  ;;  %1516 = vmatmul.bf16.gmra.mxu0 %v1253_v63  ;;  %v1177_v63 = vld [vmem:[#allocation2 + $0x2f0] sm:$0xff] }
 0x1d9   :  { %1735 = vmatmul.bf16.gmra.mxu2 %v1274_v23 }
 0x1da   :  { %v1537_v10 = vpop.f32.mrf.mxu3 }
 0x1db   :  { %v1706_v12 = vpop.f32.mrf.mxu2 }
 0x1dc   :  { %v1648_v6 = vpop.f32.mrf.mxu1  ;;  %v6166_v7 = vadd.f32 %v1706_v12, %v1537_v10 }
 0x1dd   :  { %v1479_v59 = vpop.f32.mrf.mxu0 }
 0x1de   :  { %v6151_v14 = vadd.f32 %v1648_v6, %v1479_v59  ;;  %v1257_v6 = vpack.c.bf16 %v1177_v63, %v1175_v61 }
 0x1e0   :  { %7989 = vst [vmem:[#allocation23_spill] sm:$0xff] %v6151_v14 }
 0x1e4   :  { %v1651_v29 = vpop.f32.mrf.mxu1 }
 0x1e5   :  { %v1482_v33 = vpop.f32.mrf.mxu0 }
 0x1e6   :  { %v6159_v38 = vadd.f32 %v1651_v29, %v1482_v33  ;;  %v1260_v29 = vpack.c.bf16 %v1182_v25, %v1180_v19  ;;  %v1259_v33 = vpack.c.bf16 %v1181_v27, %v1179_v26  ;;  %v1879_v19 = vmul.f32 %v5794_v5, %v5794_v5 }
 0x1e7   :  { %1690 = vmatmul.bf16.gmra.mxu1 %v1256_v37  ;;  %v6172_v37 = vpop.f32.mrf.mxu3  ;;  %v1744_v26 = vsel %vm1743_vm2, %v5738_v44, 0.0 }
 0x1e8   :  { %7990 = vst [vmem:[#allocation24_spill] sm:$0xff] %v6159_v38  ;;  %1521 = vmatmul.bf16.gmra.mxu0 %v1255_v40  ;;  %v6174_v40 = vpop.f32.mrf.mxu2 }
 0x1ec   :  { %v1653_v45 = vpop.f32.mrf.mxu1 }
 0x1ed   :  { %v1484_v36 = vpop.f32.mrf.mxu0 }
 0x1ee   :  { %v6162_v9 = vadd.f32 %v1653_v45, %v1484_v36 }
 0x1f0   :  { %7991 = vst [vmem:[#allocation25_spill] sm:$0xff] %v6162_v9 }
 0x1f3   :  { %v1711_v36 = vpop.f32.mrf.mxu2 }
 0x1f4   :  { %v1656_v0 = vpop.f32.mrf.mxu1  ;;  %v1542_v47 = vpop.f32.mrf.mxu3 }
 0x1f5   :  { %v1487_v16 = vpop.f32.mrf.mxu0  ;;  %v6178_v50 = vadd.f32 %v1711_v36, %v1542_v47  ;;  %v1881_v47 = vmul.f32 %v5844_v34, %v5844_v34 }
 0x1f6   :  { %v6164_v4 = vadd.f32 %v1656_v0, %v1487_v16 }
 0x1f7   :  { %1695 = vmatmul.bf16.gmra.mxu1 %v1258_v58 }
 0x1f8   :  { %7992 = vst [vmem:[#allocation26_spill] sm:$0xff] %v6164_v4  ;;  %1526 = vmatmul.bf16.gmra.mxu0 %v1257_v6  ;;  %v1878_v6 = vmul.f32 %v5765_v48, %v5765_v48 }
 0x1fa   :  { %v1942_v27 = vsel %vm1743_vm2, %v1878_v6, 0.0 }
 0x1fc   :  { %v1658_v59 = vpop.f32.mrf.mxu1 }
 0x1fd   :  { %v1489_v17 = vpop.f32.mrf.mxu0 }
 0x1fe   :  { %v6168_v18 = vadd.f32 %v1658_v59, %v1489_v17  ;;  %v1877_v59 = vmul.f32 %v5738_v44, %v5738_v44  ;;  %v1745_v17 = vsel %vm1743_vm2, %v5765_v48, 0.0 }
 0x200   :  { %7993 = vst [vmem:[#allocation27_spill] sm:$0xff] %v6168_v18 }
 0x204   :  { %v1661_v2 = vpop.f32.mrf.mxu1 }
 0x205   :  { %v1492_v28 = vpop.f32.mrf.mxu0 }
 0x206   :  { %v6170_v32 = vadd.f32 %v1661_v2, %v1492_v28  ;;  %v1747_v2 = vsel %vm1743_vm2, %v5794_v5, 0.0  ;;  %v1880_v28 = vmul.f32 %v5820_v15, %v5820_v15 }
 0x207   :  { %1700 = vmatmul.bf16.gmra.mxu1 %v1260_v29  ;;  %v1746_v29 = vadd.f32 %v1745_v17, %v1744_v26  ;;  %v1883_v17 = vmul.f32 %v5872_v55, %v5872_v55 }
 0x208   :  { %7994 = vst [vmem:[#allocation28_spill] sm:$0xff] %v6170_v32  ;;  %1531 = vmatmul.bf16.gmra.mxu0 %v1259_v33  ;;  %v1941_v33 = vsel %vm1743_vm2, %v1877_v59, 0.0  ;;  %v1753_v59 = vsel %vm1743_vm2, %v5855_v42, 0.0 }
 0x209   :  { %v1943_v36 = vadd.f32 %v1942_v27, %v1941_v33 }
 0x20c   :  { %v1663_v41 = vpop.f32.mrf.mxu1 }
 0x20d   :  { %v1494_v43 = vpop.f32.mrf.mxu0 }
 0x20e   :  { %v6176_v45 = vadd.f32 %v1663_v41, %v1494_v43  ;;  %v1944_v41 = vsel %vm1743_vm2, %v1879_v19, 0.0  ;;  %v1749_v43 = vsel %vm1743_vm2, %v5820_v15, 0.0 }
 0x210   :  { %7995 = vst [vmem:[#allocation29_spill] sm:$0xff] %v6176_v45 }
 0x214   :  { %v1666_v53 = vpop.f32.mrf.mxu1 }
 0x215   :  { %v1497_v23 = vpop.f32.mrf.mxu0 }
 0x216   :  { %v6180_v56 = vadd.f32 %v1666_v53, %v1497_v23  ;;  %v1748_v53 = vadd.f32 %v1747_v2, %v1746_v29  ;;  %v1946_v23 = vsel %vm1743_vm2, %v1880_v28, 0.0  ;;  %v1755_v28 = vsel %vm1743_vm2, %v5872_v55, 0.0 }
 0x217   :  { %v1884_v29 = vmul.f32 %v5896_v3, %v5896_v3 }
 0x218   :  { %7996 = vst [vmem:[#allocation30_spill] sm:$0xff] %v6180_v56  ;;  %v1750_v6 = vadd.f32 %v1749_v43, %v1748_v53  ;;  %v1952_v43 = vsel %vm1743_vm2, %v1883_v17, 0.0  ;;  %v1761_v17 = vsel %vm1743_vm2, %v5927_v30, 0.0 }
 0x21c   :  { %v1668_v60 = vpop.f32.mrf.mxu1 }
 0x21d   :  { %v1499_v61 = vpop.f32.mrf.mxu0 }
 0x21e   :  { %v6182_v63 = vadd.f32 %v1668_v60, %v1499_v61  ;;  %v1751_v60 = vsel %vm1743_vm2, %v5844_v34, 0.0  ;;  %v1882_v61 = vmul.f32 %v5855_v42, %v5855_v42 }
 0x21f   :  { %v1752_v27 = vadd.f32 %v1751_v60, %v1750_v6  ;;  %v1954_v60 = vsel %vm1743_vm2, %v1884_v29, 0.0  ;;  %v1763_v29 = vsel %vm1743_vm2, %v5944_v46, 0.0 }
 0x220   :  { %7997 = vst [vmem:[#allocation31_spill] sm:$0xff] %v6182_v63  ;;  %v1950_v2 = vsel %vm1743_vm2, %v1882_v61, 0.0  ;;  %v1759_v61 = vsel %vm1743_vm2, %v5909_v20, 0.0 }
 0x224   :  { %v1671_v0 = vpop.f32.mrf.mxu1 }
 0x225   :  { %v1502_v16 = vpop.f32.mrf.mxu0 }
 0x226   :  { %v6184_v58 = vadd.f32 %v1671_v0, %v1502_v16  ;;  %v1945_v16 = vadd.f32 %v1944_v41, %v1943_v36  ;;  %v1754_v41 = vadd.f32 %v1753_v59, %v1752_v27  ;;  %v1885_v36 = vmul.f32 %v5909_v20, %v5909_v20 }
 0x227   :  { %v1902_v20 = vmul.f32 %v6133_v31, %v6133_v31 }
 0x228   :  { %v1947_v26 = vadd.f32 %v1946_v23, %v1945_v16  ;;  %v1756_v23 = vadd.f32 %v1755_v28, %v1754_v41  ;;  %v1956_v59 = vsel %vm1743_vm2, %v1885_v36, 0.0  ;;  %v1765_v36 = vsel %vm1743_vm2, %v5954_v54, 0.0 }
 0x22c   :  { %v1673_v10 = vpop.f32.mrf.mxu1 }
 0x22d   :  { %v1504_v12 = vpop.f32.mrf.mxu0 }
 0x22e   :  { %v6194_v25 = vadd.f32 %v1673_v10, %v1504_v12  ;;  %v1948_v12 = vsel %vm1743_vm2, %v1881_v47, 0.0  ;;  %v1757_v47 = vsel %vm1743_vm2, %v5896_v3, 0.0 }
 0x22f   :  { %v1949_v33 = vadd.f32 %v1948_v12, %v1947_v26  ;;  %v1887_v26 = vmul.f32 %v5944_v46, %v5944_v46 }
 0x231   :  { %v1951_v53 = vadd.f32 %v1950_v2, %v1949_v33  ;;  %v1888_v33 = vmul.f32 %v5954_v54, %v5954_v54 }
 0x233   :  { %v1953_v6 = vadd.f32 %v1952_v43, %v1951_v53  ;;  %v1889_v53 = vmul.f32 %v5968_v57, %v5968_v57 }
 0x234   :  { %v1676_v0 = vpop.f32.mrf.mxu1 }
 0x235   :  { %v1507_v10 = vpop.f32.mrf.mxu0  ;;  %v1955_v27 = vadd.f32 %v1954_v60, %v1953_v6  ;;  %v1962_v6 = vsel %vm1743_vm2, %v1888_v33, 0.0  ;;  %v1964_v54 = vsel %vm1743_vm2, %v1889_v53, 0.0 }
 0x236   :  { %v6219_v19 = vadd.f32 %v1676_v0, %v1507_v10  ;;  %v1886_v0 = vmul.f32 %v5927_v30, %v5927_v30  ;;  %v1758_v10 = vadd.f32 %v1757_v47, %v1756_v23  ;;  %v1960_v47 = vsel %vm1743_vm2, %v1887_v26, 0.0  ;;  %v6255_v23 = vpop.f32.mrf.mxu3 }
 0x237   :  { %v1957_v41 = vadd.f32 %v1956_v59, %v1955_v27  ;;  %v1890_v59 = vmul.f32 %v5977_v13, %v5977_v13  ;;  %v1897_v30 = vmul.f32 %v6070_v11, %v6070_v11 }
 0x238   :  { %v1760_v2 = vadd.f32 %v1759_v61, %v1758_v10  ;;  %v1958_v28 = vsel %vm1743_vm2, %v1886_v0, 0.0  ;;  %v6257_v0 = vpop.f32.mrf.mxu2  ;;  %v1767_v10 = vsel %vm1743_vm2, %v5968_v57, 0.0  ;;  %v1771_v57 = vsel %vm1743_vm2, %v5999_v39, 0.0 }
 0x239   :  { %v1959_v60 = vadd.f32 %v1958_v28, %v1957_v41  ;;  %v1769_v28 = vsel %vm1743_vm2, %v5977_v13, 0.0  ;;  %v1893_v13 = vmul.f32 %v6030_v1, %v6030_v1 }
 0x23a   :  { %v1762_v43 = vadd.f32 %v1761_v17, %v1760_v2 }
 0x23b   :  { %v1961_v26 = vadd.f32 %v1960_v47, %v1959_v60  ;;  %v1892_v47 = vmul.f32 %v6015_v51, %v6015_v51 }
 0x23c   :  { %v6236_v16 = vpop.f32.mrf.mxu1  ;;  %v1764_v61 = vadd.f32 %v1763_v29, %v1762_v43  ;;  %v1891_v29 = vmul.f32 %v5999_v39, %v5999_v39  ;;  %v1966_v43 = vsel %vm1743_vm2, %v1890_v59, 0.0 }
 0x23d   :  { %v6238_v12 = vpop.f32.mrf.mxu0  ;;  %v1963_v33 = vadd.f32 %v1962_v6, %v1961_v26  ;;  %v1970_v59 = vsel %vm1743_vm2, %v1892_v47, 0.0  ;;  %v1775_v26 = vsel %vm1743_vm2, %v6030_v1, 0.0  ;;  %v1895_v47 = vmul.f32 %v6046_v35, %v6046_v35 }
 0x23e   :  { %v1766_v27 = vadd.f32 %v1765_v36, %v1764_v61  ;;  %v1968_v53 = vsel %vm1743_vm2, %v1891_v29, 0.0  ;;  %v1773_v61 = vsel %vm1743_vm2, %v6015_v51, 0.0 }
 0x23f   :  { %v1965_v36 = vadd.f32 %v1964_v54, %v1963_v33  ;;  %v6288_v54 = vpop.f32.mrf.mxu3 }
 0x240   :  { %v1768_v41 = vadd.f32 %v1767_v10, %v1766_v27  ;;  %v1894_v27 = vmul.f32 %v6040_v8, %v6040_v8 }
 0x241   :  { %v1967_v6 = vadd.f32 %v1966_v43, %v1965_v36  ;;  %v1777_v43 = vsel %vm1743_vm2, %v6040_v8, 0.0  ;;  %v1781_v8 = vsel %vm1743_vm2, %v6057_v49, 0.0 }
 0x242   :  { %v1770_v60 = vadd.f32 %v1769_v28, %v1768_v41  ;;  %v6292_v41 = vpop.f32.mrf.mxu2  ;;  %v1974_v1 = vsel %vm1743_vm2, %v1894_v27, 0.0 }
 0x243   :  { %v1969_v29 = vadd.f32 %v1968_v53, %v1967_v6  ;;  %v1779_v53 = vsel %vm1743_vm2, %v6046_v35, 0.0  ;;  %v1789_v35 = vsel %vm1743_vm2, %v6114_v22, 0.0 }
 0x244   :  { %v6264_v17 = vpop.f32.mrf.mxu1  ;;  %v1772_v10 = vadd.f32 %v1771_v57, %v1770_v60  ;;  %v1972_v57 = vsel %vm1743_vm2, %v1893_v13, 0.0  ;;  %v1976_v13 = vsel %vm1743_vm2, %v1895_v47, 0.0 }
 0x245   :  { %v6266_v2 = vpop.f32.mrf.mxu0  ;;  %v1971_v36 = vadd.f32 %v1970_v59, %v1969_v29  ;;  %v1783_v29 = vsel %vm1743_vm2, %v6070_v11, 0.0 }
 0x246   :  { %v1774_v33 = vadd.f32 %v1773_v61, %v1772_v10  ;;  %v1896_v61 = vmul.f32 %v6057_v49, %v6057_v49 }
 0x247   :  { %v1973_v6 = vadd.f32 %v1972_v57, %v1971_v36 }
 0x248   :  { %v1776_v60 = vadd.f32 %v1775_v26, %v1774_v33  ;;  %v1978_v27 = vsel %vm1743_vm2, %v1896_v61, 0.0  ;;  %v1898_v33 = vmul.f32 %v6085_v24, %v6085_v24  ;;  %v6325_v61 = vpop.f32.mrf.mxu3 }
 0x249   :  { %v1975_v59 = vadd.f32 %v1974_v1, %v1973_v6  ;;  %v1785_v1 = vsel %vm1743_vm2, %v6085_v24, 0.0 }
 0x24a   :  { %v1778_v10 = vadd.f32 %v1777_v43, %v1776_v60  ;;  %v1980_v60 = vsel %vm1743_vm2, %v1897_v30, 0.0  ;;  %v6327_v49 = vpop.f32.mrf.mxu2  ;;  %v1982_v11 = vsel %vm1743_vm2, %v1898_v33, 0.0  ;;  %v1900_v30 = vmul.f32 %v6114_v22, %v6114_v22 }
 0x24b   :  { %v1977_v43 = vadd.f32 %v1976_v13, %v1975_v59  ;;  %v1990_v22 = vsel %vm1743_vm2, %v1902_v20, 0.0 }
 0x24c   :  { %v6290_v28 = vpop.f32.mrf.mxu1  ;;  %v1780_v26 = vadd.f32 %v1779_v53, %v1778_v10  ;;  %v1899_v53 = vmul.f32 %v6100_v52, %v6100_v52  ;;  %v1986_v33 = vsel %vm1743_vm2, %v1900_v30, 0.0 }
 0x24d   :  { %v6294_v46 = vpop.f32.mrf.mxu0  ;;  %v1979_v6 = vadd.f32 %v1978_v27, %v1977_v43  ;;  %v1901_v27 = vmul.f32 %v6124_v21, %v6124_v21 }
 0x24e   :  { %v1782_v47 = vadd.f32 %v1781_v8, %v1780_v26  ;;  %v1787_v8 = vsel %vm1743_vm2, %v6100_v52, 0.0  ;;  %v1984_v26 = vsel %vm1743_vm2, %v1899_v53, 0.0 }
 0x24f   :  { %v1981_v13 = vadd.f32 %v1980_v60, %v1979_v6 }
 0x250   :  { %v1784_v10 = vadd.f32 %v1783_v29, %v1782_v47  ;;  %v1791_v47 = vsel %vm1743_vm2, %v6124_v21, 0.0  ;;  %v6353_v30 = vpop.f32.mrf.mxu3 }
 0x251   :  { %v1983_v29 = vadd.f32 %v1982_v11, %v1981_v13  ;;  %v1793_v11 = vsel %vm1743_vm2, %v6133_v31, 0.0  ;;  %v1797_v31 = vsel %vm1743_vm2, %v6151_v14, 0.0 }
 0x252   :  { %v1786_v59 = vadd.f32 %v1785_v1, %v1784_v10  ;;  %v1988_v10 = vsel %vm1743_vm2, %v1901_v27, 0.0  ;;  %v6355_v21 = vpop.f32.mrf.mxu2 }
 0x253   :  { %v1985_v1 = vadd.f32 %v1984_v26, %v1983_v29  ;;  %v1904_v26 = vmul.f32 %v6151_v14, %v6151_v14 }
 0x254   :  { %v6316_v57 = vpop.f32.mrf.mxu1  ;;  %v1788_v43 = vadd.f32 %v1787_v8, %v1786_v59  ;;  %v1903_v8 = vmul.f32 %v6143_v62, %v6143_v62 }
 0x255   :  { %v6318_v36 = vpop.f32.mrf.mxu0  ;;  %v1987_v13 = vadd.f32 %v1986_v33, %v1985_v1  ;;  %v1905_v33 = vmul.f32 %v6159_v38, %v6159_v38  ;;  %v1994_v20 = vsel %vm1743_vm2, %v1904_v26, 0.0 }
 0x256   :  { %v1790_v53 = vadd.f32 %v1789_v35, %v1788_v43  ;;  %v1795_v35 = vsel %vm1743_vm2, %v6143_v62, 0.0  ;;  %v1992_v43 = vsel %vm1743_vm2, %v1903_v8, 0.0  ;;  %v1906_v62 = vmul.f32 %v6162_v9, %v6162_v9 }
 0x257   :  { %v1989_v27 = vadd.f32 %v1988_v10, %v1987_v13 }
 0x258   :  { %v1792_v59 = vadd.f32 %v1791_v47, %v1790_v53  ;;  %v1799_v53 = vsel %vm1743_vm2, %v6159_v38, 0.0  ;;  %v1803_v38 = vsel %vm1743_vm2, %v6164_v4, 0.0 }
 0x259   :  { %v1991_v47 = vadd.f32 %v1990_v22, %v1989_v27  ;;  %v1801_v22 = vsel %vm1743_vm2, %v6162_v9, 0.0 }
 0x25a   :  { %v1794_v29 = vadd.f32 %v1793_v11, %v1792_v59  ;;  %v1996_v59 = vsel %vm1743_vm2, %v1905_v33, 0.0 }
 0x25b   :  { %v1993_v11 = vadd.f32 %v1992_v43, %v1991_v47  ;;  %v6386_v43 = vpop.f32.mrf.mxu3 }
 0x25c   :  { %v6344_v60 = vpop.f32.mrf.mxu1  ;;  %v1796_v1 = vadd.f32 %v1795_v35, %v1794_v29  ;;  %v1907_v35 = vmul.f32 %v6164_v4, %v6164_v4  ;;  %v1998_v29 = vsel %vm1743_vm2, %v1906_v62, 0.0  ;;  %v1909_v62 = vmul.f32 %v6170_v32, %v6170_v32 }
 0x25d   :  { %v6346_v6 = vpop.f32.mrf.mxu0  ;;  %v1995_v26 = vadd.f32 %v1994_v20, %v1993_v11  ;;  %v1805_v20 = vsel %vm1743_vm2, %v6168_v18, 0.0  ;;  %v1807_v4 = vsel %vm1743_vm2, %v6170_v32, 0.0  ;;  %v1811_v32 = vsel %vm1743_vm2, %v6180_v56, 0.0 }
 0x25e   :  { %v1798_v8 = vadd.f32 %v1797_v31, %v1796_v1  ;;  %v1908_v31 = vmul.f32 %v6168_v18, %v6168_v18  ;;  %v6388_v1 = vpop.f32.mrf.mxu2  ;;  %v2000_v9 = vsel %vm1743_vm2, %v1907_v35, 0.0  ;;  %v2004_v18 = vsel %vm1743_vm2, %v1909_v62, 0.0 }
 0x25f   :  { %v1997_v47 = vadd.f32 %v1996_v59, %v1995_v26  ;;  %v1910_v59 = vmul.f32 %v6176_v45, %v6176_v45 }
 0x260   :  { %v1800_v27 = vadd.f32 %v1799_v53, %v1798_v8  ;;  %v2002_v8 = vsel %vm1743_vm2, %v1908_v31, 0.0 }
 0x261   :  { %v1999_v53 = vadd.f32 %v1998_v29, %v1997_v47  ;;  %v1809_v29 = vsel %vm1743_vm2, %v6176_v45, 0.0 }
 0x262   :  { %v1802_v33 = vadd.f32 %v1801_v22, %v1800_v27 }
 0x263   :  { %v2001_v26 = vadd.f32 %v2000_v9, %v1999_v53  ;;  %v1912_v9 = vmul.f32 %v6182_v63, %v6182_v63 }
 0x264   :  { %v6372_v10 = vpop.f32.mrf.mxu1  ;;  %v1804_v11 = vadd.f32 %v1803_v38, %v1802_v33  ;;  %v1911_v38 = vmul.f32 %v6180_v56, %v6180_v56  ;;  %v2006_v33 = vsel %vm1743_vm2, %v1910_v59, 0.0  ;;  %v1815_v56 = vsel %vm1743_vm2, %v6184_v58, 0.0 }
 0x265   :  { %v6374_v13 = vpop.f32.mrf.mxu0  ;;  %v2003_v31 = vadd.f32 %v2002_v8, %v2001_v26  ;;  %v1813_v8 = vsel %vm1743_vm2, %v6182_v63, 0.0 }
 0x266   :  { %v1806_v35 = vadd.f32 %v1805_v20, %v1804_v11  ;;  %v6414_v20 = vpop.f32.mrf.mxu3  ;;  %v6416_v11 = vpop.f32.mrf.mxu2  ;;  %v2008_v45 = vsel %vm1743_vm2, %v1911_v38, 0.0 }
 0x267   :  { %v2005_v53 = vadd.f32 %v2004_v18, %v2003_v31  ;;  %v1914_v18 = vmul.f32 %v6194_v25, %v6194_v25 }
 0x268   :  { %v1808_v47 = vadd.f32 %v1807_v4, %v1806_v35  ;;  %v1913_v4 = vmul.f32 %v6184_v58, %v6184_v58  ;;  %v2010_v35 = vsel %vm1743_vm2, %v1912_v9, 0.0  ;;  %v6439_v9 = vadd.f32 %v6264_v17, %v6266_v2 }
 0x269   :  { %v2007_v59 = vadd.f32 %v2006_v33, %v2005_v53  ;;  %v1915_v33 = vmul.f32 %v6219_v19, %v6219_v19  ;;  %v6457_v2 = vadd.f32 %v6316_v57, %v6318_v36 }
 0x26a   :  { %v1810_v62 = vadd.f32 %v1809_v29, %v1808_v47  ;;  %v6430_v29 = vadd.f32 %v6236_v16, %v6238_v12  ;;  %v2012_v14 = vsel %vm1743_vm2, %v1913_v4, 0.0  ;;  %v2014_v16 = vsel %vm1743_vm2, %v1914_v18, 0.0 }
 0x26b   :  { %v2009_v31 = vadd.f32 %v2008_v45, %v2007_v59  ;;  %v1819_v45 = vsel %vm1743_vm2, %v6219_v19, 0.0 }
 0x26c   :  { %v6400_v22 = vpop.f32.mrf.mxu1  ;;  %v1812_v26 = vadd.f32 %v1811_v32, %v1810_v62  ;;  %v1817_v32 = vsel %vm1743_vm2, %v6194_v25, 0.0  ;;  %v1916_v12 = vmul.f32 %v6430_v29, %v6430_v29  ;;  %v1821_v17 = vsel %vm1743_vm2, %v6430_v29, 0.0 }
 0x26d   :  { %v6402_v27 = vpop.f32.mrf.mxu0  ;;  %v2011_v53 = vadd.f32 %v2010_v35, %v2009_v31 }
 0x26e   :  { %v1814_v47 = vadd.f32 %v1813_v8, %v1812_v26  ;;  %v6448_v8 = vadd.f32 %v6290_v28, %v6294_v46  ;;  %v2016_v26 = vsel %vm1743_vm2, %v1915_v33, 0.0  ;;  %v6459_v35 = vpop.f32.mrf.mxu3  ;;  %v6461_v46 = vpop.f32.mrf.mxu2  ;;  %v1823_v28 = vsel %vm1743_vm2, %v6439_v9, 0.0 }
 0x26f   :  { %v2013_v4 = vadd.f32 %v2012_v14, %v2011_v53  ;;  %v2018_v14 = vsel %vm1743_vm2, %v1916_v12, 0.0  ;;  %v6479_v12 = vadd.f32 %v6372_v10, %v6374_v13 }
 0x270   :  { %v1816_v62 = vadd.f32 %v1815_v56, %v1814_v47  ;;  %v1917_v56 = vmul.f32 %v6439_v9, %v6439_v9  ;;  %v1918_v47 = vmul.f32 %v6448_v8, %v6448_v8 }
 0x271   :  { %v2015_v18 = vadd.f32 %v2014_v16, %v2013_v4  ;;  %v1825_v16 = vsel %vm1743_vm2, %v6448_v8, 0.0  ;;  %7998 = vst [vmem:[#allocation32_spill] sm:$0xff] %v6479_v12  ;;  %v1921_v13 = vmul.f32 %v6479_v12, %v6479_v12 }
 0x272   :  { %v1818_v59 = vadd.f32 %v1817_v32, %v1816_v62  ;;  %v6470_v32 = vadd.f32 %v6344_v60, %v6346_v6  ;;  %v2020_v62 = vsel %vm1743_vm2, %v1917_v56, 0.0  ;;  %v2022_v60 = vsel %vm1743_vm2, %v1918_v47, 0.0 }
 0x273   :  { %v2017_v36 = vadd.f32 %v2016_v26, %v2015_v18  ;;  %v1827_v6 = vsel %vm1743_vm2, %v6457_v2, 0.0 }
 0x274   :  { %v1696_v38 = vpop.f32.mrf.mxu1  ;;  %v1820_v31 = vadd.f32 %v1819_v45, %v1818_v59  ;;  %v1919_v45 = vmul.f32 %v6457_v2, %v6457_v2  ;;  %v1920_v26 = vmul.f32 %v6470_v32, %v6470_v32  ;;  %v1829_v10 = vsel %vm1743_vm2, %v6470_v32, 0.0 }
 0x275   :  { %v1527_v63 = vpop.f32.mrf.mxu0  ;;  %v2019_v4 = vadd.f32 %v2018_v14, %v2017_v36 }
 0x276   :  { %v1822_v33 = vadd.f32 %v1821_v17, %v1820_v31  ;;  %v6488_v17 = vadd.f32 %v6400_v22, %v6402_v27  ;;  %v2024_v31 = vsel %vm1743_vm2, %v1919_v45, 0.0  ;;  %v6495_v14 = vadd.f32 %v1696_v38, %v1527_v63 }
 0x277   :  { %v2021_v56 = vadd.f32 %v2020_v62, %v2019_v4  ;;  %v2026_v36 = vsel %vm1743_vm2, %v1920_v26, 0.0  ;;  %v1831_v22 = vsel %vm1743_vm2, %v6479_v12, 0.0  ;;  %v6504_v62 = vpop.f32.mrf.mxu3  ;;  %v2028_v38 = vsel %vm1743_vm2, %v1921_v13, 0.0 }
 0x278   :  { %v1824_v59 = vadd.f32 %v1823_v28, %v1822_v33  ;;  %v1922_v27 = vmul.f32 %v6488_v17, %v6488_v17 }
 0x279   :  { %v2023_v28 = vadd.f32 %v2022_v60, %v2021_v56  ;;  %v1833_v60 = vsel %vm1743_vm2, %v6488_v17, 0.0 }
 0x27a   :  { %v1826_v18 = vadd.f32 %v1825_v16, %v1824_v59  ;;  %v6506_v59 = vpop.f32.mrf.mxu2  ;;  %v2030_v56 = vsel %vm1743_vm2, %v1922_v27, 0.0 }
 0x27b   :  { %v2025_v45 = vadd.f32 %v2024_v31, %v2023_v28 }
 0x27c   :  { %v1698_v57 = vpop.f32.mrf.mxu1  ;;  %v1828_v47 = vadd.f32 %v1827_v6, %v1826_v18  ;;  %v1923_v6 = vmul.f32 %v6495_v14, %v6495_v14  ;;  %v1835_v18 = vsel %vm1743_vm2, %v6495_v14, 0.0 }
 0x27d   :  { %v1529_v53 = vpop.f32.mrf.mxu0 }
 0x27e   :  { %v6502_v33 = vadd.f32 %v1698_v57, %v1529_v53  ;;  %v1830_v4 = vadd.f32 %v1829_v10, %v1828_v47  ;;  %v2027_v57 = vadd.f32 %v2026_v36, %v2025_v45  ;;  %v2032_v28 = vsel %vm1743_vm2, %v1923_v6, 0.0 }
 0x280   :  { %v1832_v53 = vadd.f32 %v1831_v22, %v1830_v4  ;;  %v1924_v31 = vmul.f32 %v6502_v33, %v6502_v33  ;;  %v2029_v10 = vadd.f32 %v2028_v38, %v2027_v57  ;;  %v1837_v47 = vsel %vm1743_vm2, %v6502_v33, 0.0 }
 0x282   :  { %v1834_v13 = vadd.f32 %v1833_v60, %v1832_v53  ;;  %v2031_v36 = vadd.f32 %v2030_v56, %v2029_v10  ;;  %v2034_v27 = vsel %vm1743_vm2, %v1924_v31, 0.0  ;;  %v6530_v60 = vadd.f32 %v6174_v40, %v6172_v37  ;;  %v1733_v10 = vpop.f32.mrf.mxu2 }
 0x283   :  { %v1927_v31 = vmul.f32 %v6166_v7, %v6166_v7  ;;  %v1843_v40 = vsel %vm1743_vm2, %v6166_v7, 0.0 }
 0x284   :  { %v1701_v16 = vpop.f32.mrf.mxu1  ;;  %v1836_v22 = vadd.f32 %v1835_v18, %v1834_v13  ;;  %v1564_v18 = vpop.f32.mrf.mxu3 }
 0x285   :  { %v1532_v63 = vpop.f32.mrf.mxu0 }
 0x286   :  { %v6513_v26 = vadd.f32 %v1701_v16, %v1532_v63  ;;  %v2033_v63 = vadd.f32 %v2032_v28, %v2031_v36  ;;  %v1838_v12 = vadd.f32 %v1837_v47, %v1836_v22 }
 0x288   :  { %v1925_v16 = vmul.f32 %v6513_v26, %v6513_v26  ;;  %v1839_v45 = vsel %vm1743_vm2, %v6513_v26, 0.0  ;;  %v2035_v53 = vadd.f32 %v2034_v27, %v2033_v63  ;;  %v1929_v63 = vmul.f32 %v6178_v50, %v6178_v50 }
 0x289   :  { %v1840_v56 = vadd.f32 %v1839_v45, %v1838_v12  ;;  %v6547_v12 = vadd.f32 %v6257_v0, %v6255_v23  ;;  %v2040_v45 = vsel %vm1743_vm2, %v1927_v31, 0.0  ;;  %v1847_v0 = vsel %vm1743_vm2, %v6178_v50, 0.0 }
 0x28a   :  { %v2036_v6 = vsel %vm1743_vm2, %v1925_v16, 0.0  ;;  %v1928_v16 = vmul.f32 %v6530_v60, %v6530_v60  ;;  %v6566_v31 = vadd.f32 %v6327_v49, %v6325_v61 }
 0x28b   :  { %v2037_v47 = vadd.f32 %v2036_v6, %v2035_v53 }
 0x28c   :  { %v1703_v4 = vpop.f32.mrf.mxu1  ;;  %v2042_v23 = vsel %vm1743_vm2, %v1928_v16, 0.0 }
 0x28d   :  { %v1534_v38 = vpop.f32.mrf.mxu0 }
 0x28e   :  { %v6533_v57 = vadd.f32 %v1703_v4, %v1534_v38  ;;  %v1845_v4 = vsel %vm1743_vm2, %v6530_v60, 0.0  ;;  %v6557_v38 = vadd.f32 %v6292_v41, %v6288_v54  ;;  %v1849_v54 = vsel %vm1743_vm2, %v6547_v12, 0.0 }
 0x290   :  { %v1841_v13 = vsel %vm1743_vm2, %v6533_v57, 0.0  ;;  %v1926_v28 = vmul.f32 %v6533_v57, %v6533_v57  ;;  %v1931_v41 = vmul.f32 %v6557_v38, %v6557_v38  ;;  %v1851_v61 = vsel %vm1743_vm2, %v6557_v38, 0.0 }
 0x291   :  { %v1842_v37 = vadd.f32 %v1841_v13, %v1840_v56  ;;  %v1930_v56 = vmul.f32 %v6547_v12, %v6547_v12 }
 0x292   :  { %v2038_v36 = vsel %vm1743_vm2, %v1926_v28, 0.0 }
 0x293   :  { %v1844_v22 = vadd.f32 %v1843_v40, %v1842_v37  ;;  %v2039_v27 = vadd.f32 %v2038_v36, %v2037_v47  ;;  %v2044_v47 = vsel %vm1743_vm2, %v1929_v63, 0.0  ;;  %v6575_v37 = vadd.f32 %v6355_v21, %v6353_v30  ;;  %v1567_v36 = vpop.f32.mrf.mxu3 }
 0x294   :  { %v2046_v49 = vsel %vm1743_vm2, %v1930_v56, 0.0  ;;  %v2048_v21 = vsel %vm1743_vm2, %v1931_v41, 0.0  ;;  %v1853_v30 = vsel %vm1743_vm2, %v6566_v31, 0.0  ;;  %v6611_v41 = vadd.f32 %v6506_v59, %v6504_v62 }
 0x295   :  { %v1846_v6 = vadd.f32 %v1845_v4, %v1844_v22  ;;  %v2041_v53 = vadd.f32 %v2040_v45, %v2039_v27  ;;  %v1736_v22 = vpop.f32.mrf.mxu2  ;;  %v1932_v27 = vmul.f32 %v6566_v31, %v6566_v31  ;;  %v6584_v45 = vadd.f32 %v6388_v1, %v6386_v43 }
 0x296   :  { %v1855_v43 = vsel %vm1743_vm2, %v6575_v37, 0.0  ;;  %v1937_v59 = vmul.f32 %v6611_v41, %v6611_v41 }
 0x297   :  { %v1848_v13 = vadd.f32 %v1847_v0, %v1846_v6  ;;  %v2043_v28 = vadd.f32 %v2042_v23, %v2041_v53  ;;  %v1933_v6 = vmul.f32 %v6575_v37, %v6575_v37  ;;  %v6593_v53 = vadd.f32 %v6416_v11, %v6414_v20 }
 0x298   :  { %v2050_v56 = vsel %vm1743_vm2, %v1932_v27, 0.0  ;;  %v1934_v1 = vmul.f32 %v6584_v45, %v6584_v45  ;;  %v1857_v20 = vsel %vm1743_vm2, %v6584_v45, 0.0 }
 0x299   :  { %v1850_v40 = vadd.f32 %v1849_v54, %v1848_v13  ;;  %v2045_v16 = vadd.f32 %v2044_v47, %v2043_v28  ;;  %v6602_v13 = vadd.f32 %v6461_v46, %v6459_v35  ;;  %v2052_v54 = vsel %vm1743_vm2, %v1933_v6, 0.0 }
 0x29a   :  { %v1935_v11 = vmul.f32 %v6593_v53, %v6593_v53  ;;  %v1859_v35 = vsel %vm1743_vm2, %v6593_v53, 0.0  ;;  %v6625_v6 = vadd.f32 %v1736_v22, %v1567_v36 }
 0x29b   :  { %v1852_v4 = vadd.f32 %v1851_v61, %v1850_v40  ;;  %v2047_v63 = vadd.f32 %v2046_v49, %v2045_v16  ;;  %v2054_v49 = vsel %vm1743_vm2, %v1934_v1, 0.0  ;;  %v1936_v46 = vmul.f32 %v6602_v13, %v6602_v13 }
 0x29c   :  { %v6618_v61 = vadd.f32 %v1733_v10, %v1564_v18  ;;  %v1861_v62 = vsel %vm1743_vm2, %v6602_v13, 0.0  ;;  %v1863_v18 = vsel %vm1743_vm2, %v6611_v41, 0.0  ;;  %v1939_v22 = vmul.f32 %v6625_v6, %v6625_v6 }
 0x29d   :  { %v1854_v23 = vadd.f32 %v1853_v30, %v1852_v4  ;;  %v2049_v0 = vadd.f32 %v2048_v21, %v2047_v63  ;;  %v1569_v63 = vpop.f32.mrf.mxu3  ;;  %v1738_v21 = vpop.f32.mrf.mxu2  ;;  %v2056_v30 = vsel %vm1743_vm2, %v1935_v11, 0.0 }
 0x29e   :  { %v1938_v10 = vmul.f32 %v6618_v61, %v6618_v61  ;;  %v1865_v36 = vsel %vm1743_vm2, %v6618_v61, 0.0 }
 0x29f   :  { %v2051_v28 = vadd.f32 %v2050_v56, %v2049_v0  ;;  %v1856_v47 = vadd.f32 %v1855_v43, %v1854_v23  ;;  %v2058_v56 = vsel %vm1743_vm2, %v1936_v46, 0.0  ;;  %v6632_v43 = vadd.f32 %v1738_v21, %v1569_v63 }
 0x2a0   :  { %v2062_v11 = vsel %vm1743_vm2, %v1938_v10, 0.0  ;;  %v2064_v46 = vsel %vm1743_vm2, %v1939_v22, 0.0 }
 0x2a1   :  { %v1858_v40 = vadd.f32 %v1857_v20, %v1856_v47  ;;  %v2053_v16 = vadd.f32 %v2052_v54, %v2051_v28  ;;  %v2060_v47 = vsel %vm1743_vm2, %v1937_v59, 0.0 }
 0x2a3   :  { %v1860_v27 = vadd.f32 %v1859_v35, %v1858_v40  ;;  %v2055_v4 = vadd.f32 %v2054_v49, %v2053_v16  ;;  %v1867_v40 = vsel %vm1743_vm2, %v6625_v6, 0.0  ;;  %v1940_v16 = vmul.f32 %v6632_v43, %v6632_v43 }
 0x2a5   :  { %v1862_v23 = vadd.f32 %v1861_v62, %v1860_v27  ;;  %v2057_v0 = vadd.f32 %v2056_v30, %v2055_v4  ;;  %v1869_v27 = vsel %vm1743_vm2, %v6632_v43, 0.0  ;;  %v2066_v21 = vsel %vm1743_vm2, %v1940_v16, 0.0 }
 0x2a7   :  { %v1864_v1 = vadd.f32 %v1863_v18, %v1862_v23  ;;  %v2059_v28 = vadd.f32 %v2058_v56, %v2057_v0 }
 0x2a9   :  { %v1866_v54 = vadd.f32 %v1865_v36, %v1864_v1  ;;  %v2061_v20 = vadd.f32 %v2060_v47, %v2059_v28 }
 0x2ab   :  { %v1868_v49 = vadd.f32 %v1867_v40, %v1866_v54  ;;  %v2063_v35 = vadd.f32 %v2062_v11, %v2061_v20 }
 0x2ad   :  { %v2065_v4 = vadd.f32 %v2064_v46, %v2063_v35  ;;  %v1870_v63 = vadd.f32 %v1869_v27, %v1868_v49 }
 0x2af   :  { %v1871_v30 = vrot.slane %v1870_v63, 4  ;;  %v2067_v62 = vadd.f32 %v2066_v21, %v2065_v4 }
 0x2b1   :  { %v1872_v59 = vadd.f32 %v1871_v30, %v1870_v63  ;;  %v2068_v23 = vrot.slane %v2067_v62, 4  ;;  %v49_v63 = vlaneseq }
 0x2b3   :  { %v1873_v0 = vrot.slane %v1872_v59, 2  ;;  %v2069_v56 = vadd.f32 %v2068_v23, %v2067_v62  ;;  %v8006_v62 = vld [vmem:[#allocation29_spill] sm:$0xff] }
 0x2b5   :  { %v1874_v18 = vadd.f32 %v1873_v0, %v1872_v59  ;;  %v2070_v10 = vrot.slane %v2069_v56, 2  ;;  %v50_v59 = vshrl.u32 %v49_v63, 7 }
 0x2b7   :  { %v1875_v1 = vrot.slane %v1874_v18, 1  ;;  %v2071_v28 = vadd.f32 %v2070_v10, %v2069_v56  ;;  %vm51_vm6 = vcmp.lt.s32.totalorder %v50_v59, 2 }
 0x2b9   :  { %v1876_v47 = vadd.f32 %v1875_v1, %v1874_v18  ;;  %v2072_v36 = vrot.slane %v2071_v28, 1 }
 0x2bb   :  { %v2073_v22 = vadd.f32 %v2072_v36, %v2071_v28  ;;  %v6648_v54 = vmul.f32 0.0078125, %v1876_v47  ;;  %v8005_v28 = vld [vmem:[#allocation28_spill] sm:$0xff] }
 0x2bd   :  { %v2075_v20 = vmul.f32 0.0078125, %v2073_v22  ;;  %v2076_v11 = vmul.f32 %v6648_v54, %v6648_v54  ;;  %v2142_v40 = vsub.f32 %v6632_v43, %v6648_v54  ;;  %v2081_v43 = vsub.f32 %v5794_v5, %v6648_v54 }
 0x2be   :  { %v2082_v0 = vsub.f32 %v5820_v15, %v6648_v54  ;;  %v2093_v47 = vsub.f32 %v5999_v39, %v6648_v54  ;;  %v2094_v15 = vsub.f32 %v6015_v51, %v6648_v54  ;;  %v2100_v36 = vsub.f32 %v6085_v24, %v6648_v54  ;;  %v8000_v39 = vld [vmem:[#allocation20_spill] sm:$0xff] }
 0x2bf   :  { %v2077_v16 = vsub.f32 %v2075_v20, %v2076_v11  ;;  %v2101_v20 = vsub.f32 %v6100_v52, %v6648_v54  ;;  %v7999_v11 = vld [vmem:[#allocation19_spill] sm:$0xff]  ;;  %v2103_v51 = vsub.f32 %v8000_v39, %v6648_v54  ;;  %v8003_v52 = vld [vmem:[#allocation26_spill] sm:$0xff]  ;;  %v2111_v1 = vsub.f32 %v8005_v28, %v6648_v54 }
 0x2c0   :  { %v2112_v39 = vsub.f32 %v8006_v62, %v6648_v54  ;;  %v2117_v28 = vsub.f32 %v6219_v19, %v6648_v54  ;;  %v2118_v62 = vsub.f32 %v6430_v29, %v6648_v54  ;;  %v2124_v19 = vsub.f32 %v6488_v17, %v6648_v54 }
 0x2c1   :  { %v2078_v49 = vmax.f32 %v2077_v16, 0.0  ;;  %v2102_v16 = vsub.f32 %v7999_v11, %v6648_v54  ;;  %v2125_v29 = vsub.f32 %v6495_v14, %v6648_v54  ;;  %v2131_v17 = vsub.f32 %v6178_v50, %v6648_v54 }
 0x2c2   :  { %v2132_v14 = vsub.f32 %v6547_v12, %v6648_v54  ;;  %v2135_v50 = vsub.f32 %v6575_v37, %v6648_v54  ;;  %v2136_v12 = vsub.f32 %v6584_v45, %v6648_v54  ;;  %v2141_v5 = vsub.f32 %v6625_v6, %v6648_v54 }
 0x2c3   :  { %v2143_v35 = vadd.f32 1e-05, %v2078_v49  ;;  %v6685_v49 = vld [vmem:[%s7933_s2] ss:$0 sm:$0xff]  ;;  %s5005_s2 = smov [#allocation5]  }
 0x2c4   :  { %s4187_s27 = sshll.u32 %s5005_s2, 4  ;;  %s4188_s27 = int_to_ptr.vmem [resolvable:$true] %s4187_s27 }
 0x2c5   :  { %4967 = vrsqrt.f32 %v2143_v35  ;;  %vm2150_vm4 = vweird.f32 %v2143_v35 }
 0x2cb   :  { %v4968_v46 = vpop.eup %4967 }
 0x2cc   :  { %v2145_v4 = vmul.f32 %v4968_v46, %v2143_v35  ;;  %vm2151_vm3 = vweird.f32 %v4968_v46  ;;  %v8002_v35 = vld [vmem:[#allocation25_spill] sm:$0xff] }
 0x2cd   :  { %vm2152_vm5 = vmor %vm2150_vm4, %vm2151_vm3  ;;  %v2108_v63 = vsub.f32 %v8002_v35, %v6648_v54  ;;  %v2116_v35 = vsub.f32 %v6194_v25, %v6648_v54 }
 0x2ce   :  { %v2146_v21 = vmul.f32 %v4968_v46, %v2145_v4  ;;  %v8001_v4 = vld [vmem:[#allocation23_spill] sm:$0xff] }
 0x2cf   :  { %v2106_v24 = vsub.f32 %v8001_v4, %v6648_v54  ;;  %v8007_v4 = vld [vmem:[#allocation31_spill] sm:$0xff] }
 0x2d0   :  { %v2147_v30 = vmul.f32 0.5, %v2146_v21  ;;  %v2109_v21 = vsub.f32 %v8003_v52, %v6648_v54  ;;  %v2114_v56 = vsub.f32 %v8007_v4, %v6648_v54  ;;  %v2120_v52 = vsub.f32 %v6448_v8, %v6648_v54 }
 0x2d1   :  { %v2127_v8 = vsub.f32 %v6513_v26, %v6648_v54 }
 0x2d2   :  { %v2148_v18 = vsub.f32 1.5, %v2147_v30 }
 0x2d4   :  { %v2149_v22 = vmul.f32 %v4968_v46, %v2148_v18  ;;  %v8004_v18 = vld [vmem:[#allocation27_spill] sm:$0xff] }
 0x2d5   :  { %v2110_v11 = vsub.f32 %v8004_v18, %v6648_v54 }
 0x2d6   :  { %v6695_v30 = vsel %vm2152_vm5, %v4968_v46, %v2149_v22  ;;  %v6712_v22 = vld [vmem:[%s7934_s3] ss:$0 sm:$0xff] }
 0x2d7   :  { %v2217_v10 = vmul.f32 %v6695_v30, %v2142_v40  ;;  %v2157_v46 = vmul.f32 %v6695_v30, %v2082_v0  ;;  %v2119_v40 = vsub.f32 %v6439_v9, %v6648_v54  ;;  %v2122_v0 = vsub.f32 %v6470_v32, %v6648_v54 }
 0x2d8   :  { %v2126_v9 = vsub.f32 %v6502_v33, %v6648_v54  ;;  %v2168_v59 = vmul.f32 %v6695_v30, %v2093_v47  ;;  %v2169_v4 = vmul.f32 %v6695_v30, %v2094_v15  ;;  %v2133_v33 = vsub.f32 %v6557_v38, %v6648_v54 }
 0x2d9   :  { %v6723_v25 = vmul.f32 %v6685_v49, %v2217_v10  ;;  %v2224_v18 = vmul.f32 %v6685_v49, %v2157_v46  ;;  %v2130_v10 = vsub.f32 %v6530_v60, %v6648_v54  ;;  %v5001_v46 = vmov 0.0  }
 0x2da   :  { %v6747_v26 = vsel %vm51_vm6, 1.0, %v5001_v46  ;;  %v2134_v60 = vsub.f32 %v6566_v31, %v6648_v54  ;;  %v2175_v47 = vmul.f32 %v6695_v30, %v2100_v36  ;;  %v2176_v15 = vmul.f32 %v6695_v30, %v2101_v20 }
 0x2db   :  { %8008 = vst [vmem:[#allocation19_spill] sm:$0xff] %v6723_v25  ;;  %v2291_v32 = vadd.f32 %v6712_v22, %v2224_v18  ;;  %v2177_v23 = vmul.f32 %v6695_v30, %v2102_v16  ;;  %v2178_v38 = vmul.f32 %v6695_v30, %v2103_v51  ;;  %v2137_v46 = vsub.f32 %v6593_v53, %v6648_v54 }
 0x2dc   :  { %v2183_v36 = vmul.f32 %v6695_v30, %v2108_v63  ;;  %v2184_v20 = vmul.f32 %v6695_v30, %v2109_v21  ;;  %v2185_v37 = vmul.f32 %v6695_v30, %v2110_v11  ;;  %v2186_v27 = vmul.f32 %v6695_v30, %v2111_v1 }
 0x2dd   :  { %v2355_v18 = vmax.f32 %v2291_v32, 0.0  ;;  %v2181_v32 = vmul.f32 %v6695_v30, %v2106_v24  ;;  %v2187_v45 = vmul.f32 %v6695_v30, %v2112_v39  ;;  %v2138_v16 = vsub.f32 %v6602_v13, %v6648_v54 }
 0x2de   :  { %v2139_v53 = vsub.f32 %v6611_v41, %v6648_v54  ;;  %v2189_v51 = vmul.f32 %v6695_v30, %v2114_v56  ;;  %v2191_v24 = vmul.f32 %v6695_v30, %v2116_v35  ;;  %v2192_v63 = vmul.f32 %v6695_v30, %v2117_v28 }
 0x2df   :  { %v2419_v31 = vmul.f32 %v6747_v26, %v2355_v18  ;;  %v2193_v21 = vmul.f32 %v6695_v30, %v2118_v62  ;;  %v2194_v1 = vmul.f32 %v6695_v30, %v2119_v40  ;;  %v2195_v11 = vmul.f32 %v6695_v30, %v2120_v52 }
 0x2e0   :  { %v2140_v13 = vsub.f32 %v6618_v61, %v6648_v54  ;;  %v2156_v41 = vmul.f32 %v6695_v30, %v2081_v43  ;;  %v2197_v56 = vmul.f32 %v6695_v30, %v2122_v0  ;;  %v2199_v39 = vmul.f32 %v6695_v30, %v2124_v19 }
 0x2e1   :  { %2500 = vrot.lane.b32.xlu0 %v2419_v31, %s5002_s28  ;;  %v2200_v35 = vmul.f32 %v6695_v30, %v2125_v29  ;;  %v2201_v28 = vmul.f32 %v6695_v30, %v2126_v9  ;;  %v2202_v62 = vmul.f32 %v6695_v30, %v2127_v8  ;;  %v8009_v40 = vsub.f32 %v6533_v57, %v6648_v54 }
 0x2e2   :  { %v2205_v43 = vmul.f32 %v6695_v30, %v2130_v10  ;;  %v2206_v52 = vmul.f32 %v6695_v30, %v2131_v17  ;;  %v2207_v0 = vmul.f32 %v6695_v30, %v2132_v14  ;;  %v2208_v19 = vmul.f32 %v6695_v30, %v2133_v33  ;;  %v8010_v17 = vld [vmem:[#allocation8_spill] sm:$0xff]  ;;  %v8011_v14 = vld [vmem:[#allocation9_spill] sm:$0xff] }
 0x2e3   :  { %v2203_v61 = vmul.f32 %v6695_v30, %v8009_v40  ;;  %v2209_v29 = vmul.f32 %v6695_v30, %v2134_v60  ;;  %v2210_v9 = vmul.f32 %v6695_v30, %v2135_v50  ;;  %v2211_v8 = vmul.f32 %v6695_v30, %v2136_v12  ;;  %v8012_v12 = vld [vmem:[#allocation10_spill] sm:$0xff] }
 0x2e4   :  { %v2212_v57 = vmul.f32 %v6695_v30, %v2137_v46  ;;  %v2213_v18 = vmul.f32 %v6695_v30, %v2138_v16  ;;  %v2214_v6 = vmul.f32 %v6695_v30, %v2139_v53  ;;  %v2215_v10 = vmul.f32 %v6695_v30, %v2140_v13  ;;  %v8013_v46 = vld [vmem:[#allocation11_spill] sm:$0xff] }
 0x2e5   :  { %v2216_v60 = vmul.f32 %v6695_v30, %v2141_v5  ;;  %v2223_v50 = vmul.f32 %v6685_v49, %v2156_v41  ;;  %v2089_v25 = vsub.f32 %v8012_v12, %v6648_v54  ;;  %v2090_v16 = vsub.f32 %v8013_v46, %v6648_v54 }
 0x2e6   :  { %v6818_v53 = vmul.f32 %v6685_v49, %v2168_v59  ;;  %v6821_v13 = vmul.f32 %v6685_v49, %v2169_v4  ;;  %v6826_v5 = vmul.f32 %v6685_v49, %v2175_v47  ;;  %v6829_v41 = vmul.f32 %v6685_v49, %v2176_v15  ;;  %v8016_v59 = vld [vmem:[#allocation12_spill] sm:$0xff]  ;;  %v8017_v4 = vld [vmem:[#allocation13_spill] sm:$0xff] }
 0x2e7   :  { %v2290_v40 = vadd.f32 %v6712_v22, %v2223_v50  ;;  %v6832_v12 = vmul.f32 %v6685_v49, %v2177_v23  ;;  %v2091_v46 = vsub.f32 %v8016_v59, %v6648_v54  ;;  %v2092_v33 = vsub.f32 %v8017_v4, %v6648_v54 }
 0x2e8   :  { %8014 = vst [vmem:[#allocation20_spill] sm:$0xff] %v6821_v13  ;;  %v6839_v13 = vmul.f32 %v6685_v49, %v2178_v38  ;;  %v8018_v47 = vsub.f32 %v5765_v48, %v6648_v54  ;;  %v6849_v23 = vmul.f32 %v6685_v49, %v2183_v36  ;;  %v6852_v59 = vmul.f32 %v6685_v49, %v2184_v20 }
 0x2e9   :  { %2584 = vrot.lane.b32.xlu0 %v2419_v31, %s5003_s29  ;;  %8015 = vst [vmem:[#allocation23_spill] sm:$0xff] %v6829_v41  ;;  %v6842_v31 = vmul.f32 %v6685_v49, %v2181_v32  ;;  %v2354_v50 = vmax.f32 %v2290_v40, 0.0  ;;  %v8019_v4 = vsub.f32 %v5844_v34, %v6648_v54  ;;  %v6859_v32 = vmul.f32 %v6685_v49, %v2185_v37 }
 0x2ea   :  { %v2155_v15 = vmul.f32 %v6695_v30, %v8018_v47  ;;  %v6862_v41 = vmul.f32 %v6685_v49, %v2186_v27  ;;  %v6865_v48 = vmul.f32 %v6685_v49, %v2187_v45  ;;  %v8020_v36 = vsub.f32 %v5855_v42, %v6648_v54 }
 0x2eb   :  { %v2158_v38 = vmul.f32 %v6695_v30, %v8019_v4  ;;  %v2418_v40 = vmul.f32 %v6747_v26, %v2354_v50  ;;  %v6873_v34 = vmul.f32 %v6685_v49, %v2189_v51  ;;  %v6876_v47 = vmul.f32 %v6685_v49, %v2191_v24 }
 0x2ec   :  { %v2159_v20 = vmul.f32 %v6695_v30, %v8020_v36  ;;  %v6879_v37 = vmul.f32 %v6685_v49, %v2192_v63  ;;  %v6882_v27 = vmul.f32 %v6685_v49, %v2193_v21  ;;  %v6885_v45 = vmul.f32 %v6685_v49, %v2194_v1 }
 0x2ed   :  { %v6888_v42 = vmul.f32 %v6685_v49, %v2195_v11  ;;  %v2164_v50 = vmul.f32 %v6695_v30, %v2089_v25  ;;  %v2165_v51 = vmul.f32 %v6695_v30, %v2090_v16  ;;  %2544 = vrot.lane.b32.xlu1 %v2418_v40, %s5000_s17  ;;  %v6894_v24 = vmul.f32 %v6685_v49, %v2197_v56 }
 0x2ee   :  { %v6897_v63 = vmul.f32 %v6685_v49, %v2199_v39  ;;  %v6900_v21 = vmul.f32 %v6685_v49, %v2200_v35  ;;  %v6903_v1 = vmul.f32 %v6685_v49, %v2201_v28  ;;  %v6906_v11 = vmul.f32 %v6685_v49, %v2202_v62  ;;  %2481 = vst.msk [vmem:[#allocation3 + $0x20] sm:$0xff] %vm1743_vm2, %v2418_v40 }
 0x2ef   :  { %v6909_v25 = vmul.f32 %v6685_v49, %v2203_v61  ;;  %v2166_v56 = vmul.f32 %v6695_v30, %v2091_v46  ;;  %v6914_v16 = vmul.f32 %v6685_v49, %v2205_v43  ;;  %v6917_v39 = vmul.f32 %v6685_v49, %v2206_v52 }
 0x2f0   :  { %v6920_v35 = vmul.f32 %v6685_v49, %v2207_v0  ;;  %v6923_v28 = vmul.f32 %v6685_v49, %v2208_v19  ;;  %v6926_v62 = vmul.f32 %v6685_v49, %v2209_v29  ;;  %v6929_v61 = vmul.f32 %v6685_v49, %v2210_v9 }
 0x2f1   :  { %8021 = vst [vmem:[#allocation25_spill] sm:$0xff] %v6909_v25  ;;  %v6932_v46 = vmul.f32 %v6685_v49, %v2211_v8  ;;  %v6935_v43 = vmul.f32 %v6685_v49, %v2212_v57  ;;  %v6938_v52 = vmul.f32 %v6685_v49, %v2213_v18  ;;  %v6941_v0 = vmul.f32 %v6685_v49, %v2214_v6  ;;  %v8030_v57 = vld [vmem:[#allocation15_spill] sm:$0xff]  ;;  %v8031_v18 = vld [vmem:[#allocation16_spill] sm:$0xff] }
 0x2f2   :  { %8022 = vst [vmem:[#allocation26_spill] sm:$0xff] %v6914_v16  ;;  %v6944_v19 = vmul.f32 %v6685_v49, %v2215_v10  ;;  %v6947_v29 = vmul.f32 %v6685_v49, %v2216_v60  ;;  %v2222_v9 = vmul.f32 %v6685_v49, %v2155_v15  ;;  %v2226_v8 = vmul.f32 %v6685_v49, %v2159_v20 }
 0x2f3   :  { %8023 = vst [vmem:[#allocation27_spill] sm:$0xff] %v6920_v35  ;;  %v2225_v4 = vmul.f32 %v6685_v49, %v2158_v38  ;;  %v2096_v36 = vsub.f32 %v8030_v57, %v6648_v54  ;;  %v2097_v40 = vsub.f32 %v8031_v18, %v6648_v54  ;;  %v2232_v6 = vmul.f32 %v6685_v49, %v2165_v51  ;;  %v8032_v38 = vld [vmem:[#allocation22_spill] sm:$0xff] }
 0x2f4   :  { %8024 = vst [vmem:[#allocation28_spill] sm:$0xff] %v6923_v28  ;;  %v2231_v10 = vmul.f32 %v6685_v49, %v2164_v50  ;;  %v2293_v60 = vadd.f32 %v6712_v22, %v2226_v8  ;;  %v2233_v20 = vmul.f32 %v6685_v49, %v2166_v56  ;;  %v8033_v57 = vsub.f32 %v8011_v14, %v6648_v54 }
 0x2f5   :  { %8025 = vst [vmem:[#allocation29_spill] sm:$0xff] %v6926_v62  ;;  %v2289_v62 = vadd.f32 %v6712_v22, %v2222_v9  ;;  %v2292_v15 = vadd.f32 %v6712_v22, %v2225_v4  ;;  %v2299_v51 = vadd.f32 %v6712_v22, %v2232_v6  ;;  %v2167_v4 = vmul.f32 %v6695_v30, %v2092_v33 }
 0x2f6   :  { %8026 = vst [vmem:[#allocation31_spill] sm:$0xff] %v6932_v46  ;;  %v2163_v18 = vmul.f32 %v6695_v30, %v8033_v57  ;;  %v2298_v50 = vadd.f32 %v6712_v22, %v2231_v10  ;;  %v2357_v9 = vmax.f32 %v2293_v60, 0.0  ;;  %v2300_v8 = vadd.f32 %v6712_v22, %v2233_v20 }
 0x2f7   :  { %8027 = vst [vmem:[#allocation8_spill] sm:$0xff] %v6938_v52  ;;  %v2353_v28 = vmax.f32 %v2289_v62, 0.0  ;;  %v2172_v56 = vmul.f32 %v6695_v30, %v2097_v40  ;;  %v2363_v46 = vmax.f32 %v2299_v51, 0.0  ;;  %v8034_v62 = vld [vmem:[#allocation18_spill] sm:$0xff]  ;;  %v2171_v60 = vmul.f32 %v6695_v30, %v2096_v36  ;;  %v8036_v36 = vld [vmem:[#allocation24_spill] sm:$0xff] }
 0x2f8   :  { %8028 = vst [vmem:[#allocation9_spill] sm:$0xff] %v6944_v19  ;;  %v2356_v19 = vmax.f32 %v2292_v15, 0.0  ;;  %v6975_v14 = vmul.f32 %v6747_v26, %v2357_v9  ;;  %v2364_v57 = vmax.f32 %v2300_v8, 0.0  ;;  %v2099_v10 = vsub.f32 %v8034_v62, %v6648_v54  ;;  %v8035_v40 = vld [vmem:[#allocation14_spill] sm:$0xff]  ;;  %v8038_v9 = vld [vmem:[#allocation21_spill] sm:$0xff] }
 0x2f9   :  { %8029 = vst [vmem:[#allocation10_spill] sm:$0xff] %v6947_v29  ;;  %v2105_v29 = vsub.f32 %v8032_v38, %v6648_v54  ;;  %v2362_v38 = vmax.f32 %v2298_v50, 0.0  ;;  %v2417_v52 = vmul.f32 %v6747_v26, %v2353_v28  ;;  %v2427_v15 = vmul.f32 %v6747_v26, %v2363_v46  ;;  %v8039_v62 = vld [vmem:[#allocation30_spill] sm:$0xff] }
 0x2fa   :  { %v2420_v6 = vmul.f32 %v6747_v26, %v2356_v19  ;;  %2586 = vrot.lane.b32.xlu1 %v6975_v14, %s5003_s29  ;;  %v6991_v19 = vmul.f32 %v6747_v26, %v2364_v57  ;;  %v2107_v46 = vsub.f32 %v8036_v36, %v6648_v54  ;;  %v2174_v51 = vmul.f32 %v6695_v30, %v2099_v10 }
 0x2fb   :  { %v2426_v33 = vmul.f32 %v6747_v26, %v2362_v38  ;;  %v2180_v28 = vmul.f32 %v6695_v30, %v2105_v29  ;;  %2498 = vrot.lane.b32.xlu2 %v2417_v52, %s5002_s28  ;;  %2641 = vrot.lane.b32.xlu0 %v2427_v15, %s5002_s28  ;;  %v2239_v29 = vmul.f32 %v6685_v49, %v2172_v56  ;;  %v8037_v52 = vld [vmem:[#allocation17_spill] sm:$0xff] }
 0x2fc   :  { %2482 = vst.msk [vmem:[#allocation3 + $0x40] sm:$0xff] %vm1743_vm2, %v2420_v6  ;;  %v2098_v50 = vsub.f32 %v8037_v52, %v6648_v54  ;;  %v2104_v8 = vsub.f32 %v8038_v9, %v6648_v54  ;;  %v2230_v38 = vmul.f32 %v6685_v49, %v2163_v18  ;;  %v2234_v57 = vmul.f32 %v6685_v49, %v2167_v4  ;;  %v8040_v4 = vld [vmem:[#allocation32_spill] sm:$0xff] }
 0x2fd   :  { %2622 = vst.msk [vmem:[#allocation3 + $0x28] sm:$0xff] %vm1743_vm2, %v2426_v33  ;;  %v2113_v10 = vsub.f32 %v8039_v62, %v6648_v54  ;;  %v2182_v36 = vmul.f32 %v6695_v30, %v2107_v46  ;;  %v2238_v56 = vmul.f32 %v6685_v49, %v2171_v60  ;;  %v2306_v20 = vadd.f32 %v6712_v22, %v2239_v29 }
 0x2fe   :  { %2623 = vst.msk [vmem:[#allocation3 + $0x48] sm:$0xff] %vm1743_vm2, %v6991_v19  ;;  %v2115_v52 = vsub.f32 %v6184_v58, %v6648_v54  ;;  %v2121_v18 = vsub.f32 %v6457_v2, %v6648_v54  ;;  %v2123_v9 = vsub.f32 %v8040_v4, %v6648_v54  ;;  %v2247_v35 = vmul.f32 %v6685_v49, %v2180_v28 }
 0x2ff   :  { %v8041_v62 = vsub.f32 %v5738_v44, %v6648_v54  ;;  %v2188_v60 = vmul.f32 %v6695_v30, %v2113_v10  ;;  %v2241_v29 = vmul.f32 %v6685_v49, %v2174_v51  ;;  %v2370_v25 = vmax.f32 %v2306_v20, 0.0 }
 0x300   :  { %v2129_v58 = vsub.f32 %v6166_v7, %v6648_v54  ;;  %v8042_v2 = vsub.f32 %v5872_v55, %v6648_v54  ;;  %v2297_v28 = vadd.f32 %v6712_v22, %v2230_v38  ;;  %v2301_v16 = vadd.f32 %v6712_v22, %v2234_v57 }
 0x301   :  { %v2154_v46 = vmul.f32 %v6695_v30, %v8041_v62  ;;  %v8043_v44 = vsub.f32 %v5896_v3, %v6648_v54  ;;  %v2249_v51 = vmul.f32 %v6685_v49, %v2182_v36  ;;  %v2305_v20 = vadd.f32 %v6712_v22, %v2238_v56 }
 0x302   :  { %v2160_v4 = vmul.f32 %v6695_v30, %v8042_v2  ;;  %v7040_v7 = vmul.f32 %v6747_v26, %v2370_v25  ;;  %v8044_v55 = vsub.f32 %v8010_v17, %v6648_v54  ;;  %v2190_v38 = vmul.f32 %v6695_v30, %v2115_v52  ;;  %2684 = vrot.lane.b32.xlu1 %v2426_v33, %s5000_s17 }
 0x303   :  { %v2161_v10 = vmul.f32 %v6695_v30, %v8043_v44  ;;  %2546 = vrot.lane.b32.xlu2 %v2420_v6, %s5000_s17  ;;  %v2314_v3 = vadd.f32 %v6712_v22, %v2247_v35  ;;  %v2221_v57 = vmul.f32 %v6685_v49, %v2154_v46  ;;  %v2255_v36 = vmul.f32 %v6685_v49, %v2188_v60 }
 0x304   :  { %v2162_v62 = vmul.f32 %v6695_v30, %v8044_v55  ;;  %2723 = vrot.lane.b32.xlu0 %v2427_v15, %s5003_s29  ;;  %2484 = vst.msk [vmem:[#allocation3 + $0x80] sm:$0xff] %vm1743_vm2, %v7040_v7  ;;  %v2308_v17 = vadd.f32 %v6712_v22, %v2241_v29  ;;  %v2361_v25 = vmax.f32 %v2297_v28, 0.0  ;;  %v2365_v56 = vmax.f32 %v2301_v16, 0.0 }
 0x305   :  { %v2227_v52 = vmul.f32 %v6685_v49, %v2160_v4  ;;  %2760 = vst.msk [vmem:[#allocation3 + $0x30] sm:$0xff] %vm1743_vm2, %v7040_v7  ;;  %v2378_v6 = vmax.f32 %v2314_v3, 0.0  ;;  %v2369_v35 = vmax.f32 %v2305_v20, 0.0  ;;  %v2228_v33 = vmul.f32 %v6685_v49, %v2161_v10 }
 0x306   :  { %v2372_v46 = vmax.f32 %v2308_v17, 0.0  ;;  %v2316_v60 = vadd.f32 %v6712_v22, %v2249_v51  ;;  %v2173_v15 = vmul.f32 %v6695_v30, %v2098_v50  ;;  %v2179_v2 = vmul.f32 %v6695_v30, %v2104_v8 }
 0x307   :  { %v2196_v29 = vmul.f32 %v6695_v30, %v2121_v18  ;;  %v7065_v16 = vmul.f32 %v6747_v26, %v2378_v6  ;;  %v2198_v4 = vmul.f32 %v6695_v30, %v2123_v9  ;;  %v2257_v28 = vmul.f32 %v6685_v49, %v2190_v38 }
 0x308   :  { %v7070_v44 = vmul.f32 %v6747_v26, %v2372_v46  ;;  %v2380_v10 = vmax.f32 %v2316_v60, 0.0  ;;  %v2425_v20 = vmul.f32 %v6747_v26, %v2361_v25  ;;  %v7074_v51 = vmul.f32 %v6747_v26, %v2365_v56 }
 0x309   :  { %v2294_v50 = vadd.f32 %v6712_v22, %v2227_v52  ;;  %2625 = vst.msk [vmem:[#allocation3 + $0x88] sm:$0xff] %vm1743_vm2, %v7065_v16  ;;  %v2288_v8 = vadd.f32 %v6712_v22, %v2221_v57  ;;  %v2433_v18 = vmul.f32 %v6747_v26, %v2369_v35  ;;  %v2295_v9 = vadd.f32 %v6712_v22, %v2228_v33 }
 0x30a   :  { %2830 = vst.msk [vmem:[#allocation3 + $0x38] sm:$0xff] %vm1743_vm2, %v7065_v16  ;;  %v7085_v55 = vmul.f32 %v6747_v26, %v2380_v10  ;;  %v2322_v38 = vadd.f32 %v6712_v22, %v2255_v36  ;;  %v2229_v3 = vmul.f32 %v6685_v49, %v2162_v62  ;;  %v2263_v17 = vmul.f32 %v6685_v49, %v2196_v29 }
 0x30b   :  { %2639 = vrot.lane.b32.xlu2 %v2425_v20, %s5002_s28  ;;  %2725 = vrot.lane.b32.xlu1 %v7074_v51, %s5003_s29  ;;  %2485 = vst.msk [vmem:[#allocation3 + $0xa0] sm:$0xff] %vm1743_vm2, %v7070_v44  ;;  %v2352_v57 = vmax.f32 %v2288_v8, 0.0  ;;  %v8045_v25 = vsub.f32 %v8035_v40, %v6648_v54  ;;  %v2265_v36 = vmul.f32 %v6685_v49, %v2198_v4  ;;  %v2358_v35 = vmax.f32 %v2294_v50, 0.0 }
 0x30c   :  { %2504 = vrot.lane.b32.xlu0 %v2433_v18, %s5002_s28  ;;  %2761 = vst.msk [vmem:[#allocation3 + $0x50] sm:$0xff] %vm1743_vm2, %v7070_v44  ;;  %v2386_v62 = vmax.f32 %v2322_v38, 0.0  ;;  %v2324_v52 = vadd.f32 %v6712_v22, %v2257_v28  ;;  %v2204_v6 = vmul.f32 %v6695_v30, %v2129_v58  ;;  %v2240_v33 = vmul.f32 %v6685_v49, %v2173_v15 }
 0x30d   :  { %v2170_v56 = vmul.f32 %v6695_v30, %v8045_v25  ;;  %2626 = vst.msk [vmem:[#allocation3 + $0xa8] sm:$0xff] %vm1743_vm2, %v7085_v55  ;;  %v2416_v54 = vmul.f32 %v6747_v26, %v2352_v57  ;;  %v2246_v40 = vmul.f32 %v6685_v49, %v2179_v2  ;;  %v2359_v46 = vmax.f32 %v2295_v9, 0.0 }
 0x30e   :  { %2831 = vst.msk [vmem:[#allocation3 + $0x58] sm:$0xff] %vm1743_vm2, %v7085_v55  ;;  %v7113_v60 = vmul.f32 %v6747_v26, %v2386_v62  ;;  %v2388_v29 = vmax.f32 %v2324_v52, 0.0  ;;  %v2296_v30 = vadd.f32 %v6712_v22, %v2229_v3  ;;  %v2330_v58 = vadd.f32 %v6712_v22, %v2263_v17 }
 0x30f   :  { %2480 = vst.msk [vmem:[#allocation3] sm:$0xff] %vm1743_vm2, %v2416_v54  ;;  %v2237_v15 = vmul.f32 %v6685_v49, %v2170_v56  ;;  %v2332_v4 = vadd.f32 %v6712_v22, %v2265_v36  ;;  %v2422_v28 = vmul.f32 %v6747_v26, %v2358_v35  ;;  %v2307_v10 = vadd.f32 %v6712_v22, %v2240_v33  ;;  %v8046_v35 = vld [vmem:[#allocation20_spill] sm:$0xff] }
 0x310   :  { %2487 = vst.msk [vmem:[#allocation3 + $0xe0] sm:$0xff] %vm1743_vm2, %v7113_v60  ;;  %v7122_v2 = vmul.f32 %v6747_v26, %v2388_v29  ;;  %v2360_v20 = vmax.f32 %v2296_v30, 0.0  ;;  %v2394_v50 = vmax.f32 %v2330_v58, 0.0  ;;  %v2271_v8 = vmul.f32 %v6685_v49, %v2204_v6 }
 0x311   :  { %2763 = vst.msk [vmem:[#allocation3 + $0x90] sm:$0xff] %vm1743_vm2, %v7113_v60  ;;  %v2423_v18 = vmul.f32 %v6747_v26, %v2359_v46  ;;  %v2313_v9 = vadd.f32 %v6712_v22, %v2246_v40  ;;  %v2396_v38 = vmax.f32 %v2332_v4, 0.0  ;;  %v2371_v57 = vmax.f32 %v2307_v10, 0.0 }
 0x312   :  { %2488 = vst.msk [vmem:[#allocation3 + $0x100] sm:$0xff] %vm1743_vm2, %v7122_v2  ;;  %v2424_v3 = vmul.f32 %v6747_v26, %v2360_v20  ;;  %v7141_v49 = vmul.f32 %v6747_v26, %v2394_v50  ;;  %v2304_v56 = vadd.f32 %v6712_v22, %v2237_v15  ;;  %v2302_v6 = vadd.f32 %v6712_v22, %v6818_v53 }
 0x313   :  { %2686 = vrot.lane.b32.xlu2 %v6991_v19, %s5000_s17  ;;  %2548 = vrot.lane.b32.xlu1 %v2422_v28, %s5000_s17  ;;  %2764 = vst.msk [vmem:[#allocation3 + $0xb0] sm:$0xff] %vm1743_vm2, %v7122_v2  ;;  %v7145_v17 = vmul.f32 %v6747_v26, %v2396_v38  ;;  %v2377_v25 = vmax.f32 %v2313_v9, 0.0  ;;  %v2338_v19 = vadd.f32 %v6712_v22, %v2271_v8 }
 0x314   :  { %2588 = vrot.lane.b32.xlu0 %v2423_v18, %s5003_s29  ;;  %2621 = vst.msk [vmem:[#allocation3 + $0x8] sm:$0xff] %vm1743_vm2, %v2424_v3  ;;  %v2368_v62 = vmax.f32 %v2304_v56, 0.0  ;;  %v7157_v52 = vmul.f32 %v6747_v26, %v2371_v57  ;;  %v2303_v33 = vadd.f32 %v6712_v22, %v8046_v35  ;;  %v2340_v54 = vadd.f32 %v6712_v22, %v6917_v39  ;;  %v4849_v35 = vld [vmem:[%s7935_s4 + $0x38] sm:$0xff] }
 0x315   :  { %2628 = vst.msk [vmem:[#allocation3 + $0xe8] sm:$0xff] %vm1743_vm2, %v7141_v49  ;;  %v2402_v36 = vmax.f32 %v2338_v19, 0.0  ;;  %v2441_v40 = vmul.f32 %v6747_v26, %v2377_v25  ;;  %v2346_v30 = vadd.f32 %v6712_v22, %v6935_v43  ;;  %v2312_v39 = vadd.f32 %v6712_v22, %v6839_v13  ;;  %3211 = vmatpush.bf16.msrb.mxu2 %v4849_v35 }
 0x316   :  { %2833 = vst.msk [vmem:[#allocation3 + $0x98] sm:$0xff] %vm1743_vm2, %v7141_v49  ;;  %v2432_v29 = vmul.f32 %v6747_v26, %v2368_v62  ;;  %v2404_v53 = vmax.f32 %v2340_v54, 0.0  ;;  %v2366_v58 = vmax.f32 %v2302_v6, 0.0  ;;  %v2367_v15 = vmax.f32 %v2303_v33, 0.0  ;;  %v4857_v33 = vld [vmem:[%s7935_s4 + $0x78] sm:$0xff] }
 0x317   :  { %2629 = vst.msk [vmem:[#allocation3 + $0x108] sm:$0xff] %vm1743_vm2, %v7145_v17  ;;  %v7169_v46 = vmul.f32 %v6747_v26, %v2402_v36  ;;  %v2410_v4 = vmax.f32 %v2346_v30, 0.0  ;;  %v2376_v28 = vmax.f32 %v2312_v39, 0.0  ;;  %v2348_v43 = vadd.f32 %v6712_v22, %v6941_v0  ;;  %3244 = vmatpush.bf16.msrb.mxu3 %v4857_v33  ;;  %v8047_v30 = vld [vmem:[#allocation23_spill] sm:$0xff] }
 0x318   :  { %2834 = vst.msk [vmem:[#allocation3 + $0xb8] sm:$0xff] %vm1743_vm2, %v7145_v17  ;;  %v2430_v50 = vmul.f32 %v6747_v26, %v2366_v58  ;;  %v2431_v8 = vmul.f32 %v6747_v26, %v2367_v15  ;;  %v2315_v18 = vadd.f32 %v6712_v22, %v6842_v31  ;;  %v2320_v0 = vadd.f32 %v6712_v22, %v6862_v41 }
 0x319   :  { %2766 = vst.msk [vmem:[#allocation3 + $0xf0] sm:$0xff] %vm1743_vm2, %v7169_v46  ;;  %v7193_v10 = vmul.f32 %v6747_v26, %v2410_v4  ;;  %v2440_v13 = vmul.f32 %v6747_v26, %v2376_v28  ;;  %v2412_v20 = vmax.f32 %v2348_v43, 0.0  ;;  %v2309_v9 = vadd.f32 %v6712_v22, %v6826_v5  ;;  %v4847_v43 = vld [vmem:[%s7935_s4 + $0x28] sm:$0xff] }
 0x31a   :  { %2483 = vst.msk [vmem:[#allocation3 + $0x60] sm:$0xff] %vm1743_vm2, %v2432_v29  ;;  %v2328_v3 = vadd.f32 %v6712_v22, %v6885_v45  ;;  %v2336_v31 = vadd.f32 %v6712_v22, %v6906_v11  ;;  %v2384_v41 = vmax.f32 %v2320_v0, 0.0  ;;  %v2344_v45 = vadd.f32 %v6712_v22, %v6929_v61 }
 0x31b   :  { %2502 = vrot.lane.b32.xlu2 %v6975_v14, %s5002_s28  ;;  %2590 = vrot.lane.b32.xlu1 %v7157_v52, %s5003_s29  ;;  %v7185_v14 = vmul.f32 %v6747_v26, %v2404_v53  ;;  %2759 = vst.msk [vmem:[#allocation3 + $0x10] sm:$0xff] %vm1743_vm2, %v2432_v29  ;;  %v7208_v38 = vmul.f32 %v6747_v26, %v2412_v20  ;;  %v2379_v25 = vmax.f32 %v2315_v18, 0.0  ;;  %v2373_v19 = vmax.f32 %v2309_v9, 0.0  ;;  %v4855_v20 = vld [vmem:[%s7935_s4 + $0x68] sm:$0xff] }
 0x31c   :  { %2645 = vrot.lane.b32.xlu0 %v2441_v40, %s5002_s28  ;;  %2836 = vst.msk [vmem:[#allocation3 + $0xf8] sm:$0xff] %vm1743_vm2, %v7193_v10  ;;  %v2392_v5 = vmax.f32 %v2328_v3, 0.0  ;;  %v2400_v57 = vmax.f32 %v2336_v31, 0.0  ;;  %v2448_v11 = vmul.f32 %v6747_v26, %v2384_v41  ;;  %v2408_v56 = vmax.f32 %v2344_v45, 0.0  ;;  %v4844_v31 = vld [vmem:[%s7935_s4 + $0x10] sm:$0xff] }
 0x31d   :  { %2767 = vst.msk [vmem:[#allocation3 + $0x110] sm:$0xff] %vm1743_vm2, %v7185_v14  ;;  %v2443_v6 = vmul.f32 %v6747_v26, %v2379_v25  ;;  %v2437_v61 = vmul.f32 %v6747_v26, %v2373_v19  ;;  %v2317_v54 = vadd.f32 %v6712_v22, %v6849_v23  ;;  %v2310_v39 = vadd.f32 %v6712_v22, %v8047_v30  ;;  %v4848_v23 = vld [vmem:[%s7935_s4 + $0x30] sm:$0xff] }
 0x31e   :  { %2624 = vst.msk [vmem:[#allocation3 + $0x68] sm:$0xff] %vm1743_vm2, %v2440_v13  ;;  %v2464_v36 = vmul.f32 %v6747_v26, %v2400_v57  ;;  %v2472_v62 = vmul.f32 %v6747_v26, %v2408_v56  ;;  %3212 = vmatpush.bf16.msrb.mxu2 %v4848_v23  ;;  %v2323_v15 = vadd.f32 %v6712_v22, %v6873_v34 }
 0x31f   :  { %2829 = vst.msk [vmem:[#allocation3 + $0x18] sm:$0xff] %vm1743_vm2, %v2440_v13  ;;  %v2381_v29 = vmax.f32 %v2317_v54, 0.0  ;;  %v2321_v18 = vadd.f32 %v6712_v22, %v6865_v48  ;;  %v2325_v0 = vadd.f32 %v6712_v22, %v6876_v47  ;;  %v2331_v3 = vadd.f32 %v6712_v22, %v6894_v24 }
 0x320   :  { %2837 = vst.msk [vmem:[#allocation3 + $0x118] sm:$0xff] %vm1743_vm2, %v7208_v38  ;;  %v2387_v28 = vmax.f32 %v2323_v15, 0.0  ;;  %v2327_v54 = vadd.f32 %v6712_v22, %v6882_v27 }
 0x321   :  { %2486 = vst.msk [vmem:[#allocation3 + $0xc0] sm:$0xff] %vm1743_vm2, %v2448_v11  ;;  %v2385_v47 = vmax.f32 %v2321_v18, 0.0  ;;  %v2389_v41 = vmax.f32 %v2325_v0, 0.0  ;;  %v2395_v24 = vmax.f32 %v2331_v3, 0.0  ;;  %v8050_v0 = vld [vmem:[#allocation27_spill] sm:$0xff]  ;;  %v8051_v3 = vld [vmem:[#allocation8_spill] sm:$0xff] }
 0x322   :  { %2762 = vst.msk [vmem:[#allocation3 + $0x70] sm:$0xff] %vm1743_vm2, %v2448_v11  ;;  %3213 = vmatpush.bf16.msrb.mxu2 %v4847_v43  ;;  %v2451_v34 = vmul.f32 %v6747_v26, %v2387_v28  ;;  %v4842_v11 = vld [vmem:[%s7935_s4] sm:$0xff] }
 0x323   :  { %2550 = vrot.lane.b32.xlu2 %v7040_v7, %s5000_s17  ;;  %2688 = vrot.lane.b32.xlu1 %v2430_v50, %s5000_s17  ;;  %v2456_v7 = vmul.f32 %v6747_v26, %v2392_v5  ;;  %2765 = vst.msk [vmem:[#allocation3 + $0xd0] sm:$0xff] %vm1743_vm2, %v2464_v36  ;;  %v4843_v5 = vld [vmem:[%s7935_s4 + $0x8] sm:$0xff]  ;;  %v2449_v57 = vmul.f32 %v6747_v26, %v2385_v47 }
 0x324   :  { %2727 = vrot.lane.b32.xlu0 %v2431_v8, %s5003_s29  ;;  %2835 = vst.msk [vmem:[#allocation3 + $0xd8] sm:$0xff] %vm1743_vm2, %v2472_v62  ;;  %v7320_v45 = vmul.f32 %v6747_v26, %v2389_v41  ;;  %v2459_v25 = vmul.f32 %v6747_v26, %v2395_v24  ;;  %v2329_v62 = vadd.f32 %v6712_v22, %v6888_v42  ;;  %v4852_v42 = vld [vmem:[%s7935_s4 + $0x50] sm:$0xff] }
 0x325   :  { %2627 = vst.msk [vmem:[#allocation3 + $0xc8] sm:$0xff] %vm1743_vm2, %v2456_v7 }
 0x326   :  { %2832 = vst.msk [vmem:[#allocation3 + $0x78] sm:$0xff] %vm1743_vm2, %v2456_v7  ;;  %v4853_v7 = vld [vmem:[%s7935_s4 + $0x58] sm:$0xff]  ;;  %v2393_v33 = vmax.f32 %v2329_v62, 0.0  ;;  %v8052_v62 = vld [vmem:[#allocation31_spill] sm:$0xff]  ;;  %vm4161_vm2 = vcmask 25600  }
 0x32b   :  { %2643 = vrot.lane.b32.xlu2 %v7074_v51, %s5002_s28  ;;  %2729 = vrot.lane.b32.xlu1 %v2443_v6, %s5003_s29  ;;  %v2311_v51 = vadd.f32 %v6712_v22, %v6832_v12  ;;  %v2445_v12 = vmul.f32 %v6747_v26, %v2381_v29  ;;  %v2334_v29 = vadd.f32 %v6712_v22, %v6900_v21 }
 0x32c   :  { %2508 = vrot.lane.b32.xlu0 %v2437_v61, %s5002_s28 }
 0x32d   :  { %v2375_v40 = vmax.f32 %v2311_v51, 0.0  ;;  %v2398_v23 = vmax.f32 %v2334_v29, 0.0 }
 0x32f   :  { %v2439_v53 = vmul.f32 %v6747_v26, %v2375_v40 }
 0x333   :  { %2690 = vrot.lane.b32.xlu2 %v7065_v16, %s5000_s17  ;;  %2552 = vrot.lane.b32.xlu1 %v7070_v44, %s5000_s17  ;;  %v2374_v16 = vmax.f32 %v2310_v39, 0.0  ;;  %v4856_v44 = vld [vmem:[%s7935_s4 + $0x70] sm:$0xff] }
 0x334   :  { %2592 = vrot.lane.b32.xlu0 %v2437_v61, %s5003_s29  ;;  %3245 = vmatpush.bf16.msrb.mxu3 %v4856_v44  ;;  %v2326_v61 = vadd.f32 %v6712_v22, %v6879_v37  ;;  %v4851_v37 = vld [vmem:[%s7935_s4 + $0x48] sm:$0xff]  ;;  %v2462_v44 = vmul.f32 %v6747_v26, %v2398_v23 }
 0x335   :  { %v2438_v58 = vmul.f32 %v6747_v26, %v2374_v16  ;;  %v2335_v16 = vadd.f32 %v6712_v22, %v6903_v1 }
 0x336   :  { %v2390_v51 = vmax.f32 %v2326_v61, 0.0  ;;  %v8053_v61 = vld [vmem:[#allocation9_spill] sm:$0xff] }
 0x338   :  { %3246 = vmatpush.bf16.msrb.mxu3 %v4855_v20  ;;  %v2454_v40 = vmul.f32 %v6747_v26, %v2390_v51 }
 0x33b   :  { %2506 = vrot.lane.b32.xlu2 %v7157_v52, %s5002_s28  ;;  %2594 = vrot.lane.b32.xlu1 %v2439_v53, %s5003_s29  ;;  %v2319_v52 = vadd.f32 %v6712_v22, %v6859_v32  ;;  %v2318_v32 = vadd.f32 %v6712_v22, %v6852_v59  ;;  %v4845_v59 = vld [vmem:[%s7935_s4 + $0x18] sm:$0xff]  ;;  %v4850_v53 = vld [vmem:[%s7935_s4 + $0x40] sm:$0xff] }
 0x33c   :  { %2649 = vrot.lane.b32.xlu0 %v2445_v12, %s5002_s28 }
 0x33d   :  { %v2383_v4 = vmax.f32 %v2319_v52, 0.0  ;;  %v2382_v50 = vmax.f32 %v2318_v32, 0.0 }
 0x33f   :  { %v2447_v13 = vmul.f32 %v6747_v26, %v2383_v4  ;;  %v2446_v8 = vmul.f32 %v6747_v26, %v2382_v50 }
 0x343   :  { %2554 = vrot.lane.b32.xlu2 %v2438_v58, %s5000_s17  ;;  %2692 = vrot.lane.b32.xlu1 %v7085_v55, %s5000_s17  ;;  %v4846_v55 = vld [vmem:[%s7935_s4 + $0x20] sm:$0xff] }
 0x344   :  { %2731 = vrot.lane.b32.xlu0 %v2445_v12, %s5003_s29  ;;  %3214 = vmatpush.bf16.msrb.mxu2 %v4846_v55  ;;  %v2391_v12 = vmax.f32 %v2327_v54, 0.0  ;;  %v8048_v58 = vld [vmem:[#allocation26_spill] sm:$0xff] }
 0x345   :  { %v2339_v52 = vadd.f32 %v6712_v22, %v8048_v58  ;;  %v4865_v58 = vld [vmem:[%s7935_s4 + $0xb8] sm:$0xff] }
 0x346   :  { %v2455_v21 = vmul.f32 %v6747_v26, %v2391_v12 }
 0x348   :  { %3215 = vmatpush.bf16.msrb.mxu2 %v4845_v59 }
 0x34b   :  { %2647 = vrot.lane.b32.xlu2 %v2443_v6, %s5002_s28  ;;  %2733 = vrot.lane.b32.xlu1 %v2447_v13, %s5003_s29  ;;  %v2333_v6 = vadd.f32 %v6712_v22, %v6897_v63  ;;  %v2399_v13 = vmax.f32 %v2335_v16, 0.0 }
 0x34c   :  { %2512 = vrot.lane.b32.xlu0 %v2451_v34, %s5002_s28  ;;  %3216 = vmatpush.bf16.msrb.mxu2 %v4844_v31  ;;  %v2347_v31 = vadd.f32 %v6712_v22, %v8051_v3  ;;  %v4863_v3 = vld [vmem:[%s7935_s4 + $0xa8] sm:$0xff] }
 0x34d   :  { %v2397_v63 = vmax.f32 %v2333_v6, 0.0 }
 0x350   :  { %3217 = vmatpush.bf16.msrb.mxu2 %v4843_v5 }
 0x353   :  { %v2501_v9 = vpop.permute.xlu0 %2500  ;;  %2694 = vrot.lane.b32.xlu2 %v2446_v8, %s5000_s17  ;;  %2556 = vrot.lane.b32.xlu1 %v7113_v60, %s5000_s17  ;;  %v4854_v60 = vld [vmem:[%s7935_s4 + $0x60] sm:$0xff]  ;;  %v8049_v8 = vld [vmem:[#allocation25_spill] sm:$0xff] }
 0x354   :  { %2527 = vst.msk [vmem:[#allocation3 + $0x20] sm:$0xff] %vm2525_vm7, %v2501_v9  ;;  %2596 = vrot.lane.b32.xlu0 %v2451_v34, %s5003_s29  ;;  %3247 = vmatpush.bf16.msrb.mxu3 %v4854_v60  ;;  %v2403_v34 = vmax.f32 %v2339_v52, 0.0  ;;  %v2337_v18 = vadd.f32 %v6712_v22, %v8049_v8  ;;  %v2341_v9 = vadd.f32 %v6712_v22, %v8050_v0  ;;  %v4873_v52 = vld [vmem:[%s7935_s4 + $0xf8] sm:$0xff]  ;;  %v4872_v8 = vld [vmem:[%s7935_s4 + $0xf0] sm:$0xff] }
 0x355   :  { %v2499_v48 = vpop.permute.xlu2 %2498  ;;  %3218 = vmatpush.bf16.msrb.mxu2 %v4842_v11 }
 0x356   :  { %2526 = vst.msk [vmem:[#allocation3] sm:$0xff] %vm2525_vm7, %v2499_v48  ;;  %v2467_v55 = vmul.f32 %v6747_v26, %v2403_v34  ;;  %v2401_v41 = vmax.f32 %v2337_v18, 0.0  ;;  %v2405_v60 = vmax.f32 %v2341_v9, 0.0 }
 0x358   :  { %3248 = vmatpush.bf16.msrb.mxu3 %v4853_v7  ;;  %v2465_v22 = vmul.f32 %v6747_v26, %v2401_v41 }
 0x359   :  { %3277 = vmatpush.bf16.msra.mxu2 %v4865_v58  ;;  %v4866_v58 = vld [vmem:[%s7935_s4 + $0xc0] sm:$0xff] }
 0x35b   :  { %2510 = vrot.lane.b32.xlu2 %v2449_v57, %s5002_s28  ;;  %2598 = vrot.lane.b32.xlu1 %v7320_v45, %s5003_s29  ;;  %v2585_v56 = vpop.permute.xlu0 %2584 }
 0x35c   :  { %2653 = vrot.lane.b32.xlu0 %v2459_v25, %s5002_s28  ;;  %3249 = vmatpush.bf16.msrb.mxu3 %v4852_v42 }
 0x35d   :  { %v2547_v19 = vpop.permute.xlu2 %2546 }
 0x35e   :  { %2573 = vst.msk [vmem:[#allocation3 + $0x20] sm:$0xff] %vm2571_vm8, %v2547_v19 }
 0x35f   :  { %v2545_v36 = vpop.permute.xlu1 %2544 }
 0x360   :  { %2572 = vst.msk [vmem:[#allocation3] sm:$0xff] %vm2571_vm8, %v2545_v36  ;;  %3250 = vmatpush.bf16.msrb.mxu3 %v4851_v37  ;;  %v4973_v36 = vld [vmem:[%s7934_s3] ss:$0 sm:$0xff] }
 0x361   :  { %2612 = vst.msk [vmem:[#allocation3] sm:$0xff] %vm2611_vm9, %v2585_v56  ;;  %v2345_v6 = vadd.f32 %v4973_v36, %v8052_v62  ;;  %v2349_v42 = vadd.f32 %v4973_v36, %v8053_v61  ;;  %v4861_v61 = vld [vmem:[%s7935_s4 + $0x98] sm:$0xff] }
 0x363   :  { %2558 = vrot.lane.b32.xlu2 %v7122_v2, %s5000_s17  ;;  %2696 = vrot.lane.b32.xlu1 %v7141_v49, %s5000_s17  ;;  %v2457_v2 = vmul.f32 %v6747_v26, %v2393_v33  ;;  %v2461_v49 = vmul.f32 %v6747_v26, %v2397_v63  ;;  %v2409_v37 = vmax.f32 %v2345_v6, 0.0  ;;  %v2413_v54 = vmax.f32 %v2349_v42, 0.0  ;;  %v4869_v42 = vld [vmem:[%s7935_s4 + $0xd8] sm:$0xff] }
 0x364   :  { %2735 = vrot.lane.b32.xlu0 %v2459_v25, %s5003_s29  ;;  %3251 = vmatpush.bf16.msrb.mxu3 %v4850_v53  ;;  %v2411_v25 = vmax.f32 %v2347_v31, 0.0  ;;  %v4871_v31 = vld [vmem:[%s7935_s4 + $0xe8] sm:$0xff] }
 0x365   :  { %v2640_v35 = vpop.permute.xlu2 %2639 }
 0x366   :  { %2666 = vst.msk [vmem:[#allocation3 + $0x8] sm:$0xff] %vm2525_vm7, %v2640_v35  ;;  %v2475_v11 = vmul.f32 %v6747_v26, %v2411_v25  ;;  %v8054_v35 = vld [vmem:[#allocation28_spill] sm:$0xff] }
 0x367   :  { %v2342_v33 = vadd.f32 %v4973_v36, %v8054_v35 }
 0x368   :  { %v2899_v15 = vld [vmem:[#allocation3] sm:$0xff]  ;;  %3310 = vmatpush.bf16.msra.mxu3 %v4873_v52 }
 0x369   :  { %v2406_v53 = vmax.f32 %v2342_v33, 0.0 }
 0x36b   :  { %2651 = vrot.lane.b32.xlu2 %v2457_v2, %s5002_s28  ;;  %2737 = vrot.lane.b32.xlu1 %v2461_v49, %s5003_s29  ;;  %v2470_v12 = vmul.f32 %v6747_v26, %v2406_v53 }
 0x36c   :  { %2560 = vrot.lane.b32.xlu0 %v2454_v40, %s5000_s17  ;;  %v2587_v39 = vpop.permute.xlu1 %2586  ;;  %3311 = vmatpush.bf16.msra.mxu3 %v4872_v8 }
 0x36d   :  { %v2687_v30 = vpop.permute.xlu2 %2686  ;;  %2613 = vst.msk [vmem:[#allocation3 + $0x20] sm:$0xff] %vm2611_vm9, %v2587_v39  ;;  %v2642_v27 = vpop.permute.xlu0 %2641 }
 0x36e   :  { %2667 = vst.msk [vmem:[#allocation3 + $0x28] sm:$0xff] %vm2525_vm7, %v2642_v27  ;;  %v8056_v27 = vld [vmem:[#allocation10_spill] sm:$0xff] }
 0x36f   :  { %2712 = vst.msk [vmem:[#allocation3 + $0x28] sm:$0xff] %vm2571_vm8, %v2687_v30  ;;  %v8055_v30 = vld [vmem:[#allocation29_spill] sm:$0xff]  ;;  %v2350_v23 = vadd.f32 %v4973_v36, %v8056_v27 }
 0x370   :  { %v2343_v39 = vadd.f32 %v4973_v36, %v8055_v30  ;;  %3312 = vmatpush.bf16.msra.mxu3 %v4871_v31 }
 0x373   :  { %2698 = vrot.lane.b32.xlu2 %v7145_v17, %s5000_s17  ;;  %2600 = vrot.lane.b32.xlu1 %v2455_v21, %s5003_s29  ;;  %v2463_v17 = vmul.f32 %v6747_v26, %v2399_v13 }
 0x374   :  { %2700 = vrot.lane.b32.xlu0 %v2462_v44, %s5000_s17  ;;  %v2685_v28 = vpop.permute.xlu1 %2684  ;;  %v2903_v43 = vld [vmem:[#allocation3 + $0x20] sm:$0xff]  ;;  %v2407_v44 = vmax.f32 %v2343_v39, 0.0 }
 0x375   :  { %v2503_v4 = vpop.permute.xlu2 %2502  ;;  %v2935_v1 = vpack.c.bf16 %v2903_v43, %v2899_v15  ;;  %2711 = vst.msk [vmem:[#allocation3 + $0x8] sm:$0xff] %vm2571_vm8, %v2685_v28  ;;  %v8057_v43 = vld [vmem:[#allocation19_spill] sm:$0xff] }
 0x376   :  { %2528 = vst.msk [vmem:[#allocation3 + $0x40] sm:$0xff] %vm2525_vm7, %v2503_v4  ;;  %v2724_v32 = vpop.permute.xlu0 %2723  ;;  %v2414_v4 = vmax.f32 %v2350_v23, 0.0  ;;  %v2471_v28 = vmul.f32 %v6747_v26, %v2407_v44  ;;  %v2351_v13 = vadd.f32 %v4973_v36, %v8057_v43 }
 0x377   :  { %3219 = vmatmul.bf16.vlgmr.msrb.gmra.mxu2 %v2935_v1  ;;  %2750 = vst.msk [vmem:[#allocation3 + $0x8] sm:$0xff] %vm2611_vm9, %v2724_v32 }
 0x378   :  { %v2478_v1 = vmul.f32 %v6747_v26, %v2414_v4 }
 0x37b   :  { %2514 = vrot.lane.b32.xlu2 %v7320_v45, %s5002_s28  ;;  %2739 = vrot.lane.b32.xlu1 %v2463_v17, %s5003_s29 }
 0x37c   :  { %2773 = vrot.lane.b32.xlu0 %v2467_v55, %s5002_s28 }
 0x37d   :  { %v2551_v20 = vpop.permute.xlu2 %2550  ;;  %v2726_v50 = vpop.permute.xlu1 %2725 }
 0x37e   :  { %2751 = vst.msk [vmem:[#allocation3 + $0x28] sm:$0xff] %vm2611_vm9, %v2726_v50  ;;  %v2505_v59 = vpop.permute.xlu0 %2504  ;;  %v2900_v48 = vld [vmem:[#allocation3 + $0x8] sm:$0xff] }
 0x37f   :  { %2529 = vst.msk [vmem:[#allocation3 + $0x60] sm:$0xff] %vm2525_vm7, %v2505_v59 }
 0x380   :  { %2780 = vst.msk [vmem:[#allocation3 + $0x10] sm:$0xff] %vm2525_vm7, %v2505_v59 }
 0x381   :  { %2575 = vst.msk [vmem:[#allocation3 + $0x60] sm:$0xff] %vm2571_vm8, %v2551_v20 }
 0x382   :  { %2801 = vst.msk [vmem:[#allocation3 + $0x10] sm:$0xff] %vm2571_vm8, %v2551_v20  ;;  %v2415_v20 = vmax.f32 %v2351_v13, 0.0 }
 0x383   :  { %2655 = vrot.lane.b32.xlu2 %v2461_v49, %s5002_s28  ;;  %2792 = vrot.lane.b32.xlu1 %v7169_v46, %s5000_s17  ;;  %v7409_v46 = vmul.f32 %v6747_v26, %v2405_v60 }
 0x384   :  { %2811 = vrot.lane.b32.xlu0 %v2467_v55, %s5003_s29  ;;  %v2479_v18 = vmul.f32 %v6747_v26, %v2415_v20 }
 0x385   :  { %v2644_v47 = vpop.permute.xlu2 %2643  ;;  %v2549_v24 = vpop.permute.xlu1 %2548  ;;  %v2904_v5 = vld [vmem:[#allocation3 + $0x28] sm:$0xff] }
 0x386   :  { %2668 = vst.msk [vmem:[#allocation3 + $0x48] sm:$0xff] %vm2525_vm7, %v2644_v47  ;;  %v2936_v57 = vpack.c.bf16 %v2904_v5, %v2900_v48  ;;  %v2589_v45 = vpop.permute.xlu0 %2588 }
 0x387   :  { %2574 = vst.msk [vmem:[#allocation3 + $0x40] sm:$0xff] %vm2571_vm8, %v2549_v24 }
 0x388   :  { %3252 = vmatmul.bf16.vlgmr.msrb.gmra.mxu3 %v2936_v57  ;;  %2614 = vst.msk [vmem:[#allocation3 + $0x40] sm:$0xff] %vm2611_vm9, %v2589_v45  ;;  %v4862_v45 = vld [vmem:[%s7935_s4 + $0xa0] sm:$0xff] }
 0x38b   :  { %2771 = vrot.lane.b32.xlu2 %v2465_v22, %s5002_s28  ;;  %2813 = vrot.lane.b32.xlu1 %v7409_v46, %s5003_s29 }
 0x38c   :  { %2843 = vrot.lane.b32.xlu0 %v2475_v11, %s5002_s28 }
 0x38d   :  { %v2691_v19 = vpop.permute.xlu2 %2690  ;;  %v2591_v7 = vpop.permute.xlu1 %2590 }
 0x38e   :  { %2615 = vst.msk [vmem:[#allocation3 + $0x60] sm:$0xff] %vm2611_vm9, %v2591_v7  ;;  %v2646_v56 = vpop.permute.xlu0 %2645 }
 0x38f   :  { %2820 = vst.msk [vmem:[#allocation3 + $0x10] sm:$0xff] %vm2611_vm9, %v2591_v7  ;;  %v2907_v63 = vld [vmem:[#allocation3 + $0x40] sm:$0xff] }
 0x390   :  { %2669 = vst.msk [vmem:[#allocation3 + $0x68] sm:$0xff] %vm2525_vm7, %v2646_v56 }
 0x391   :  { %2850 = vst.msk [vmem:[#allocation3 + $0x18] sm:$0xff] %vm2525_vm7, %v2646_v56 }
 0x392   :  { %2714 = vst.msk [vmem:[#allocation3 + $0x68] sm:$0xff] %vm2571_vm8, %v2691_v19 }
 0x393   :  { %2794 = vrot.lane.b32.xlu2 %v7185_v14, %s5000_s17  ;;  %2862 = vrot.lane.b32.xlu1 %v7193_v10, %s5000_s17  ;;  %2871 = vst.msk [vmem:[#allocation3 + $0x18] sm:$0xff] %vm2571_vm8, %v2691_v19  ;;  %v2473_v14 = vmul.f32 %v6747_v26, %v2409_v37  ;;  %v2477_v10 = vmul.f32 %v6747_v26, %v2413_v54 }
 0x394   :  { %2881 = vrot.lane.b32.xlu0 %v2475_v11, %s5003_s29  ;;  %v4870_v11 = vld [vmem:[%s7935_s4 + $0xe0] sm:$0xff] }
 0x395   :  { %v2507_v51 = vpop.permute.xlu2 %2506  ;;  %v2689_v2 = vpop.permute.xlu1 %2688  ;;  %v2911_v49 = vld [vmem:[#allocation3 + $0x60] sm:$0xff]  ;;  %3313 = vmatpush.bf16.msra.mxu3 %v4870_v11 }
 0x396   :  { %2530 = vst.msk [vmem:[#allocation3 + $0x80] sm:$0xff] %vm2525_vm7, %v2507_v51  ;;  %v2939_v40 = vpack.c.bf16 %v2911_v49, %v2907_v63  ;;  %v2728_v29 = vpop.permute.xlu0 %2727  ;;  %v4860_v63 = vld [vmem:[%s7935_s4 + $0x90] sm:$0xff] }
 0x397   :  { %2781 = vst.msk [vmem:[#allocation3 + $0x30] sm:$0xff] %vm2525_vm7, %v2507_v51  ;;  %v4868_v51 = vld [vmem:[%s7935_s4 + $0xd0] sm:$0xff] }
 0x398   :  { %2713 = vst.msk [vmem:[#allocation3 + $0x48] sm:$0xff] %vm2571_vm8, %v2689_v2  ;;  %3224 = vmatmul.bf16.gmra.mxu2 %v2939_v40  ;;  %v2901_v8 = vld [vmem:[#allocation3 + $0x10] sm:$0xff] }
 0x399   :  { %2752 = vst.msk [vmem:[#allocation3 + $0x48] sm:$0xff] %vm2611_vm9, %v2728_v29  ;;  %3314 = vmatpush.bf16.msra.mxu3 %v4869_v42 }
 0x39b   :  { %2841 = vrot.lane.b32.xlu2 %v2473_v14, %s5002_s28  ;;  %2883 = vrot.lane.b32.xlu1 %v2477_v10, %s5003_s29  ;;  %v4859_v14 = vld [vmem:[%s7935_s4 + $0x88] sm:$0xff] }
 0x39c   :  { %2796 = vrot.lane.b32.xlu0 %v2470_v12, %s5000_s17  ;;  %v4858_v12 = vld [vmem:[%s7935_s4 + $0x80] sm:$0xff] }
 0x39d   :  { %v2555_v21 = vpop.permute.xlu2 %2554  ;;  %v2730_v16 = vpop.permute.xlu1 %2729  ;;  %3315 = vmatpush.bf16.msra.mxu3 %v4868_v51 }
 0x39e   :  { %2753 = vst.msk [vmem:[#allocation3 + $0x68] sm:$0xff] %vm2611_vm9, %v2730_v16  ;;  %v2509_v15 = vpop.permute.xlu0 %2508 }
 0x39f   :  { %2890 = vst.msk [vmem:[#allocation3 + $0x18] sm:$0xff] %vm2611_vm9, %v2730_v16 }
 0x3a0   :  { %2531 = vst.msk [vmem:[#allocation3 + $0xa0] sm:$0xff] %vm2525_vm7, %v2509_v15  ;;  %v2908_v32 = vld [vmem:[#allocation3 + $0x48] sm:$0xff] }
 0x3a1   :  { %2782 = vst.msk [vmem:[#allocation3 + $0x50] sm:$0xff] %vm2525_vm7, %v2509_v15 }
 0x3a2   :  { %2577 = vst.msk [vmem:[#allocation3 + $0xa0] sm:$0xff] %vm2571_vm8, %v2555_v21 }
 0x3a3   :  { %2864 = vrot.lane.b32.xlu2 %v7208_v38, %s5000_s17  ;;  %2815 = vrot.lane.b32.xlu1 %v2471_v28, %s5003_s29  ;;  %2803 = vst.msk [vmem:[#allocation3 + $0x50] sm:$0xff] %vm2571_vm8, %v2555_v21  ;;  %v4864_v38 = vld [vmem:[%s7935_s4 + $0xb0] sm:$0xff] }
 0x3a4   :  { %2866 = vrot.lane.b32.xlu0 %v2478_v1, %s5000_s17  ;;  %3278 = vmatpush.bf16.msra.mxu2 %v4864_v38 }
 0x3a5   :  { %v2648_v34 = vpop.permute.xlu2 %2647  ;;  %v2553_v17 = vpop.permute.xlu1 %2552  ;;  %v2912_v55 = vld [vmem:[#allocation3 + $0x68] sm:$0xff] }
 0x3a6   :  { %2670 = vst.msk [vmem:[#allocation3 + $0x88] sm:$0xff] %vm2525_vm7, %v2648_v34  ;;  %v2940_v50 = vpack.c.bf16 %v2912_v55, %v2908_v32  ;;  %v2593_v59 = vpop.permute.xlu0 %2592 }
 0x3a7   :  { %2851 = vst.msk [vmem:[#allocation3 + $0x38] sm:$0xff] %vm2525_vm7, %v2648_v34 }
 0x3a8   :  { %2576 = vst.msk [vmem:[#allocation3 + $0x80] sm:$0xff] %vm2571_vm8, %v2553_v17  ;;  %3257 = vmatmul.bf16.gmra.mxu3 %v2940_v50  ;;  %3279 = vmatpush.bf16.msra.mxu2 %v4863_v3 }
 0x3a9   :  { %2802 = vst.msk [vmem:[#allocation3 + $0x30] sm:$0xff] %vm2571_vm8, %v2553_v17 }
 0x3aa   :  { %2616 = vst.msk [vmem:[#allocation3 + $0x80] sm:$0xff] %vm2611_vm9, %v2593_v59 }
 0x3ab   :  { %2775 = vrot.lane.b32.xlu2 %v7409_v46, %s5002_s28  ;;  %2885 = vrot.lane.b32.xlu1 %v2479_v18, %s5003_s29  ;;  %2821 = vst.msk [vmem:[#allocation3 + $0x30] sm:$0xff] %vm2611_vm9, %v2593_v59 }
 0x3ac   :  { %3280 = vmatpush.bf16.msra.mxu2 %v4862_v45 }
 0x3ad   :  { %v2695_v0 = vpop.permute.xlu2 %2694  ;;  %v2595_v9 = vpop.permute.xlu1 %2594 }
 0x3ae   :  { %2617 = vst.msk [vmem:[#allocation3 + $0xa0] sm:$0xff] %vm2611_vm9, %v2595_v9  ;;  %v2650_v48 = vpop.permute.xlu0 %2649 }
 0x3af   :  { %2822 = vst.msk [vmem:[#allocation3 + $0x50] sm:$0xff] %vm2611_vm9, %v2595_v9 }
 0x3b0   :  { %2671 = vst.msk [vmem:[#allocation3 + $0xa8] sm:$0xff] %vm2525_vm7, %v2650_v48  ;;  %3281 = vmatpush.bf16.msra.mxu2 %v4861_v61 }
 0x3b1   :  { %2852 = vst.msk [vmem:[#allocation3 + $0x58] sm:$0xff] %vm2525_vm7, %v2650_v48  ;;  %v2915_v47 = vld [vmem:[#allocation3 + $0x80] sm:$0xff] }
 0x3b2   :  { %2716 = vst.msk [vmem:[#allocation3 + $0xa8] sm:$0xff] %vm2571_vm8, %v2695_v0  ;;  %v2905_v50 = vld [vmem:[#allocation3 + $0x30] sm:$0xff] }
 0x3b3   :  { %2845 = vrot.lane.b32.xlu2 %v2477_v10, %s5002_s28  ;;  %2873 = vst.msk [vmem:[#allocation3 + $0x58] sm:$0xff] %vm2571_vm8, %v2695_v0  ;;  %v4867_v10 = vld [vmem:[%s7935_s4 + $0xc8] sm:$0xff]  ;;  %v2937_v0 = vpack.c.bf16 %v2905_v50, %v2901_v8 }
 0x3b4   :  { %3282 = vmatpush.bf16.msra.mxu2 %v4860_v63  ;;  %3316 = vmatpush.bf16.msra.mxu3 %v4867_v10 }
 0x3b5   :  { %v2511_v41 = vpop.permute.xlu2 %2510  ;;  %v2693_v24 = vpop.permute.xlu1 %2692  ;;  %v2919_v5 = vld [vmem:[#allocation3 + $0xa0] sm:$0xff] }
 0x3b6   :  { %2532 = vst.msk [vmem:[#allocation3 + $0xc0] sm:$0xff] %vm2525_vm7, %v2511_v41  ;;  %v2943_v60 = vpack.c.bf16 %v2919_v5, %v2915_v47  ;;  %v2732_v57 = vpop.permute.xlu0 %2731  ;;  %v2902_v47 = vld [vmem:[#allocation3 + $0x18] sm:$0xff] }
 0x3b7   :  { %2783 = vst.msk [vmem:[#allocation3 + $0x70] sm:$0xff] %vm2525_vm7, %v2511_v41 }
 0x3b8   :  { %2715 = vst.msk [vmem:[#allocation3 + $0x88] sm:$0xff] %vm2571_vm8, %v2693_v24  ;;  %3229 = vmatmul.bf16.gmra.mxu2 %v2943_v60  ;;  %3317 = vmatpush.bf16.msra.mxu3 %v4866_v58 }
 0x3b9   :  { %2872 = vst.msk [vmem:[#allocation3 + $0x38] sm:$0xff] %vm2571_vm8, %v2693_v24  ;;  %3283 = vmatpush.bf16.msra.mxu2 %v4859_v14 }
 0x3ba   :  { %2754 = vst.msk [vmem:[#allocation3 + $0x88] sm:$0xff] %vm2611_vm9, %v2732_v57 }
 0x3bb   :  { %2891 = vst.msk [vmem:[#allocation3 + $0x38] sm:$0xff] %vm2611_vm9, %v2732_v57 }
 0x3bd   :  { %v2559_v25 = vpop.permute.xlu2 %2558  ;;  %v2734_v22 = vpop.permute.xlu1 %2733  ;;  %3284 = vmatpush.bf16.msra.mxu2 %v4858_v12 }
 0x3be   :  { %2755 = vst.msk [vmem:[#allocation3 + $0xa8] sm:$0xff] %vm2611_vm9, %v2734_v22  ;;  %v2513_v46 = vpop.permute.xlu0 %2512 }
 0x3bf   :  { %2892 = vst.msk [vmem:[#allocation3 + $0x58] sm:$0xff] %vm2611_vm9, %v2734_v22  ;;  %v2909_v22 = vld [vmem:[#allocation3 + $0x50] sm:$0xff] }
 0x3c0   :  { %2533 = vst.msk [vmem:[#allocation3 + $0xe0] sm:$0xff] %vm2525_vm7, %v2513_v46 }
 0x3c1   :  { %2784 = vst.msk [vmem:[#allocation3 + $0x90] sm:$0xff] %vm2525_vm7, %v2513_v46  ;;  %v2916_v19 = vld [vmem:[#allocation3 + $0x88] sm:$0xff] }
 0x3c2   :  { %2579 = vst.msk [vmem:[#allocation3 + $0xe0] sm:$0xff] %vm2571_vm8, %v2559_v25  ;;  %v2906_v31 = vld [vmem:[#allocation3 + $0x38] sm:$0xff] }
 0x3c3   :  { %2805 = vst.msk [vmem:[#allocation3 + $0x90] sm:$0xff] %vm2571_vm8, %v2559_v25  ;;  %v2938_v41 = vpack.c.bf16 %v2906_v31, %v2902_v47 }
 0x3c5   :  { %v2652_v7 = vpop.permute.xlu2 %2651  ;;  %v2557_v56 = vpop.permute.xlu1 %2556  ;;  %v2920_v36 = vld [vmem:[#allocation3 + $0xa8] sm:$0xff] }
 0x3c6   :  { %2672 = vst.msk [vmem:[#allocation3 + $0xc8] sm:$0xff] %vm2525_vm7, %v2652_v7  ;;  %v2944_v62 = vpack.c.bf16 %v2920_v36, %v2916_v19  ;;  %v2597_v6 = vpop.permute.xlu0 %2596  ;;  %v2910_v36 = vld [vmem:[#allocation3 + $0x58] sm:$0xff] }
 0x3c7   :  { %2853 = vst.msk [vmem:[#allocation3 + $0x78] sm:$0xff] %vm2525_vm7, %v2652_v7 }
 0x3c8   :  { %2578 = vst.msk [vmem:[#allocation3 + $0xc0] sm:$0xff] %vm2571_vm8, %v2557_v56  ;;  %3262 = vmatmul.bf16.gmra.mxu3 %v2944_v62 }
 0x3c9   :  { %2804 = vst.msk [vmem:[#allocation3 + $0x70] sm:$0xff] %vm2571_vm8, %v2557_v56 }
 0x3ca   :  { %2618 = vst.msk [vmem:[#allocation3 + $0xc0] sm:$0xff] %vm2611_vm9, %v2597_v6 }
 0x3cb   :  { %2823 = vst.msk [vmem:[#allocation3 + $0x70] sm:$0xff] %vm2611_vm9, %v2597_v6 }
 0x3cd   :  { %v2699_v35 = vpop.permute.xlu2 %2698  ;;  %v2599_v33 = vpop.permute.xlu1 %2598 }
 0x3ce   :  { %2619 = vst.msk [vmem:[#allocation3 + $0xe0] sm:$0xff] %vm2611_vm9, %v2599_v33  ;;  %v2654_v37 = vpop.permute.xlu0 %2653 }
 0x3cf   :  { %2824 = vst.msk [vmem:[#allocation3 + $0x90] sm:$0xff] %vm2611_vm9, %v2599_v33 }
 0x3d0   :  { %2673 = vst.msk [vmem:[#allocation3 + $0xe8] sm:$0xff] %vm2525_vm7, %v2654_v37 }
 0x3d1   :  { %2854 = vst.msk [vmem:[#allocation3 + $0x98] sm:$0xff] %vm2525_vm7, %v2654_v37  ;;  %v2923_v2 = vld [vmem:[#allocation3 + $0xc0] sm:$0xff] }
 0x3d2   :  { %2718 = vst.msk [vmem:[#allocation3 + $0xe8] sm:$0xff] %vm2571_vm8, %v2699_v35  ;;  %v2913_v57 = vld [vmem:[#allocation3 + $0x70] sm:$0xff] }
 0x3d3   :  { %2875 = vst.msk [vmem:[#allocation3 + $0x98] sm:$0xff] %vm2571_vm8, %v2699_v35  ;;  %v2941_v11 = vpack.c.bf16 %v2913_v57, %v2909_v22 }
 0x3d5   :  { %v2515_v49 = vpop.permute.xlu2 %2514  ;;  %v2697_v54 = vpop.permute.xlu1 %2696  ;;  %v2927_v40 = vld [vmem:[#allocation3 + $0xe0] sm:$0xff] }
 0x3d6   :  { %2534 = vst.msk [vmem:[#allocation3 + $0x100] sm:$0xff] %vm2525_vm7, %v2515_v49  ;;  %v2947_v29 = vpack.c.bf16 %v2927_v40, %v2923_v2  ;;  %v2736_v53 = vpop.permute.xlu0 %2735  ;;  %v2917_v42 = vld [vmem:[#allocation3 + $0x90] sm:$0xff] }
 0x3d7   :  { %2785 = vst.msk [vmem:[#allocation3 + $0xb0] sm:$0xff] %vm2525_vm7, %v2515_v49 }
 0x3d8   :  { %2717 = vst.msk [vmem:[#allocation3 + $0xc8] sm:$0xff] %vm2571_vm8, %v2697_v54  ;;  %3234 = vmatmul.bf16.gmra.mxu2 %v2947_v29 }
 0x3d9   :  { %2874 = vst.msk [vmem:[#allocation3 + $0x78] sm:$0xff] %vm2571_vm8, %v2697_v54 }
 0x3da   :  { %2756 = vst.msk [vmem:[#allocation3 + $0xc8] sm:$0xff] %vm2611_vm9, %v2736_v53 }
 0x3db   :  { %2893 = vst.msk [vmem:[#allocation3 + $0x78] sm:$0xff] %vm2611_vm9, %v2736_v53 }
 0x3dd   :  { %v2656_v30 = vpop.permute.xlu2 %2655  ;;  %v2738_v39 = vpop.permute.xlu1 %2737 }
 0x3de   :  { %2674 = vst.msk [vmem:[#allocation3 + $0x108] sm:$0xff] %vm2525_vm7, %v2656_v30  ;;  %v2561_v27 = vpop.permute.xlu0 %2560 }
 0x3df   :  { %2855 = vst.msk [vmem:[#allocation3 + $0xb8] sm:$0xff] %vm2525_vm7, %v2656_v30 }
 0x3e0   :  { %2757 = vst.msk [vmem:[#allocation3 + $0xe8] sm:$0xff] %vm2611_vm9, %v2738_v39 }
 0x3e1   :  { %2894 = vst.msk [vmem:[#allocation3 + $0x98] sm:$0xff] %vm2611_vm9, %v2738_v39  ;;  %v2924_v16 = vld [vmem:[#allocation3 + $0xc8] sm:$0xff] }
 0x3e2   :  { %2580 = vst.msk [vmem:[#allocation3 + $0x100] sm:$0xff] %vm2571_vm8, %v2561_v27  ;;  %v2914_v7 = vld [vmem:[#allocation3 + $0x78] sm:$0xff] }
 0x3e3   :  { %2806 = vst.msk [vmem:[#allocation3 + $0xb0] sm:$0xff] %vm2571_vm8, %v2561_v27  ;;  %v2942_v62 = vpack.c.bf16 %v2914_v7, %v2910_v36 }
 0x3e5   :  { %v2772_v23 = vpop.permute.xlu2 %2771  ;;  %v2601_v21 = vpop.permute.xlu1 %2600 }
 0x3e6   :  { %2786 = vst.msk [vmem:[#allocation3 + $0xd0] sm:$0xff] %vm2525_vm7, %v2772_v23  ;;  %v2701_v44 = vpop.permute.xlu0 %2700 }
 0x3e7   :  { %2620 = vst.msk [vmem:[#allocation3 + $0x100] sm:$0xff] %vm2611_vm9, %v2601_v21  ;;  %v2928_v52 = vld [vmem:[#allocation3 + $0xe8] sm:$0xff] }
 0x3e8   :  { %2825 = vst.msk [vmem:[#allocation3 + $0xb0] sm:$0xff] %vm2611_vm9, %v2601_v21  ;;  %v2948_v15 = vpack.c.bf16 %v2928_v52, %v2924_v16  ;;  %v2918_v37 = vld [vmem:[#allocation3 + $0x98] sm:$0xff] }
 0x3e9   :  { %2719 = vst.msk [vmem:[#allocation3 + $0x108] sm:$0xff] %vm2571_vm8, %v2701_v44 }
 0x3ea   :  { %3267 = vmatmul.bf16.gmra.mxu3 %v2948_v15  ;;  %2876 = vst.msk [vmem:[#allocation3 + $0xb8] sm:$0xff] %vm2571_vm8, %v2701_v44 }
 0x3ed   :  { %v2795_v4 = vpop.permute.xlu2 %2794  ;;  %v2740_v28 = vpop.permute.xlu1 %2739 }
 0x3ee   :  { %2758 = vst.msk [vmem:[#allocation3 + $0x108] sm:$0xff] %vm2611_vm9, %v2740_v28  ;;  %v2931_v43 = vld [vmem:[#allocation3 + $0x100] sm:$0xff]  ;;  %v2774_v13 = vpop.permute.xlu0 %2773 }
 0x3ef   :  { %2895 = vst.msk [vmem:[#allocation3 + $0xb8] sm:$0xff] %vm2611_vm9, %v2740_v28  ;;  %v2951_v1 = vpack.c.bf16 %v2931_v43, %v2931_v43  ;;  %v2921_v6 = vld [vmem:[#allocation3 + $0xb0] sm:$0xff] }
 0x3f0   :  { %2787 = vst.msk [vmem:[#allocation3 + $0xf0] sm:$0xff] %vm2525_vm7, %v2774_v13  ;;  %v2945_v35 = vpack.c.bf16 %v2921_v6, %v2917_v42 }
 0x3f1   :  { %3239 = vmatmul.bf16.gmra.mxu2 %v2951_v1  ;;  %2808 = vst.msk [vmem:[#allocation3 + $0xf0] sm:$0xff] %vm2571_vm8, %v2795_v4 }
 0x3f5   :  { %v2842_v32 = vpop.permute.xlu2 %2841  ;;  %v2793_v34 = vpop.permute.xlu1 %2792  ;;  %v2932_v17 = vld [vmem:[#allocation3 + $0x108] sm:$0xff] }
 0x3f6   :  { %2856 = vst.msk [vmem:[#allocation3 + $0xd8] sm:$0xff] %vm2525_vm7, %v2842_v32  ;;  %v2952_v55 = vpack.c.bf16 %v2932_v17, %v2932_v17  ;;  %v2812_v20 = vpop.permute.xlu0 %2811  ;;  %v2922_v51 = vld [vmem:[#allocation3 + $0xb8] sm:$0xff] }
 0x3f7   :  { %2807 = vst.msk [vmem:[#allocation3 + $0xd0] sm:$0xff] %vm2571_vm8, %v2793_v34  ;;  %v2946_v2 = vpack.c.bf16 %v2922_v51, %v2918_v37 }
 0x3f8   :  { %2826 = vst.msk [vmem:[#allocation3 + $0xd0] sm:$0xff] %vm2611_vm9, %v2812_v20 }
 0x3fa   :  { %3272 = vmatmul.bf16.gmra.mxu3 %v2952_v55  ;;  %v3220_v24 = vpop.f32.mrf.mxu2 }
 0x3fd   :  { %v2865_v59 = vpop.permute.xlu2 %2864  ;;  %v2814_v38 = vpop.permute.xlu1 %2813 }
 0x3fe   :  { %2827 = vst.msk [vmem:[#allocation3 + $0xf0] sm:$0xff] %vm2611_vm9, %v2814_v38  ;;  %v2844_v18 = vpop.permute.xlu0 %2843 }
 0x3ff   :  { %2857 = vst.msk [vmem:[#allocation3 + $0xf8] sm:$0xff] %vm2525_vm7, %v2844_v18  ;;  %v2925_v29 = vld [vmem:[#allocation3 + $0xd0] sm:$0xff] }
 0x400   :  { %2878 = vst.msk [vmem:[#allocation3 + $0xf8] sm:$0xff] %vm2571_vm8, %v2865_v59 }
 0x401   :  { %3285 = vmatmul.bf16.vlgmr.msra.gmra.mxu2 %v2937_v0 }
 0x402   :  { %v3222_v33 = vpop.f32.mrf.mxu2 }
 0x405   :  { %v2776_v9 = vpop.permute.xlu2 %2775  ;;  %v2863_v3 = vpop.permute.xlu1 %2862  ;;  %v2929_v53 = vld [vmem:[#allocation3 + $0xf0] sm:$0xff] }
 0x406   :  { %2788 = vst.msk [vmem:[#allocation3 + $0x110] sm:$0xff] %vm2525_vm7, %v2776_v9  ;;  %v2882_v48 = vpop.permute.xlu0 %2881  ;;  %v2949_v14 = vpack.c.bf16 %v2929_v53, %v2925_v29 }
 0x407   :  { %2877 = vst.msk [vmem:[#allocation3 + $0xd8] sm:$0xff] %vm2571_vm8, %v2863_v3 }
 0x408   :  { %2896 = vst.msk [vmem:[#allocation3 + $0xd8] sm:$0xff] %vm2611_vm9, %v2882_v48 }
 0x40a   :  { %3318 = vmatmul.bf16.vlgmr.msra.gmra.mxu3 %v2938_v41 }
 0x40b   :  { %v3253_v5 = vpop.f32.mrf.mxu3 }
 0x40c   :  { %v7577_v60 = vadd.f32 %v3253_v5, %v3220_v24 }
 0x40d   :  { %v2846_v45 = vpop.permute.xlu2 %2845  ;;  %v2884_v25 = vpop.permute.xlu1 %2883 }
 0x40e   :  { %2858 = vst.msk [vmem:[#allocation3 + $0x118] sm:$0xff] %vm2525_vm7, %v2846_v45  ;;  %v2797_v46 = vpop.permute.xlu0 %2796 }
 0x40f   :  { %2897 = vst.msk [vmem:[#allocation3 + $0xf8] sm:$0xff] %vm2611_vm9, %v2884_v25  ;;  %v2926_v10 = vld [vmem:[#allocation3 + $0xd8] sm:$0xff] }
 0x410   :  { %2809 = vst.msk [vmem:[#allocation3 + $0x110] sm:$0xff] %vm2571_vm8, %v2797_v46 }
 0x411   :  { %3290 = vmatmul.bf16.gmra.mxu2 %v2941_v11 }
 0x413   :  { %v3255_v63 = vpop.f32.mrf.mxu3 }
 0x414   :  { %v3256_v24 = vadd.f32 %v3255_v63, %v3222_v33 }
 0x415   :  { %v2816_v19 = vpop.permute.xlu1 %2815 }
 0x416   :  { %2828 = vst.msk [vmem:[#allocation3 + $0x110] sm:$0xff] %vm2611_vm9, %v2816_v19  ;;  %v2867_v56 = vpop.permute.xlu0 %2866  ;;  %v2930_v30 = vld [vmem:[#allocation3 + $0xf8] sm:$0xff] }
 0x417   :  { %2879 = vst.msk [vmem:[#allocation3 + $0x118] sm:$0xff] %vm2571_vm8, %v2867_v56  ;;  %v2950_v39 = vpack.c.bf16 %v2930_v30, %v2926_v10 }
 0x41a   :  { %3323 = vmatmul.bf16.gmra.mxu3 %v2942_v62 }
 0x41b   :  { %v3225_v49 = vpop.f32.mrf.mxu2 }
 0x41d   :  { %v2886_v61 = vpop.permute.xlu1 %2885  ;;  %v2933_v12 = vld [vmem:[#allocation3 + $0x110] sm:$0xff] }
 0x41e   :  { %2898 = vst.msk [vmem:[#allocation3 + $0x118] sm:$0xff] %vm2611_vm9, %v2886_v61  ;;  %v2953_v27 = vpack.c.bf16 %v2933_v12, %v2933_v12 }
 0x421   :  { %3295 = vmatmul.bf16.gmra.mxu2 %v2945_v35 }
 0x423   :  { %v3227_v23 = vpop.f32.mrf.mxu2 }
 0x425   :  { %v2934_v16 = vld [vmem:[#allocation3 + $0x118] sm:$0xff] }
 0x426   :  { %v2954_v44 = vpack.c.bf16 %v2934_v16, %v2934_v16 }
 0x42a   :  { %3328 = vmatmul.bf16.gmra.mxu3 %v2946_v2 }
 0x42b   :  { %v3258_v54 = vpop.f32.mrf.mxu3 }
 0x42c   :  { %v3259_v40 = vadd.f32 %v3258_v54, %v3225_v49 }
 0x431   :  { %3300 = vmatmul.bf16.gmra.mxu2 %v2949_v14 }
 0x433   :  { %v3260_v21 = vpop.f32.mrf.mxu3 }
 0x434   :  { %v3261_v22 = vadd.f32 %v3260_v21, %v3227_v23 }
 0x43a   :  { %3333 = vmatmul.bf16.gmra.mxu3 %v2950_v39 }
 0x43b   :  { %v3230_v58 = vpop.f32.mrf.mxu2 }
 0x441   :  { %3305 = vmatmul.bf16.gmra.mxu2 %v2953_v27 }
 0x443   :  { %v3232_v4 = vpop.f32.mrf.mxu2 }
 0x44a   :  { %3338 = vmatmul.bf16.gmra.mxu3 %v2954_v44 }
 0x44b   :  { %v3263_v52 = vpop.f32.mrf.mxu3 }
 0x44c   :  { %v3264_v15 = vadd.f32 %v3263_v52, %v3230_v58 }
 0x453   :  { %v3265_v43 = vpop.f32.mrf.mxu3 }
 0x454   :  { %v3266_v36 = vadd.f32 %v3265_v43, %v3232_v4 }
 0x45b   :  { %v3235_v28 = vpop.f32.mrf.mxu2 }
 0x463   :  { %v3237_v13 = vpop.f32.mrf.mxu2 }
 0x46d   :  { %v3268_v1 = vpop.f32.mrf.mxu3 }
 0x46e   :  { %v3269_v32 = vadd.f32 %v3268_v1, %v3235_v28 }
 0x474   :  { %v3240_v34 = vpop.f32.mrf.mxu2 }
 0x475   :  { %v3270_v17 = vpop.f32.mrf.mxu3 }
 0x476   :  { %v7585_v55 = vadd.f32 %v3270_v17, %v3237_v13 }
 0x47c   :  { %v3242_v20 = vpop.f32.mrf.mxu2 }
 0x47d   :  { %v3273_v50 = vpop.f32.mrf.mxu3 }
 0x47e   :  { %v7587_v59 = vadd.f32 %v3273_v50, %v3240_v34 }
 0x484   :  { %v3286_v38 = vpop.f32.mrf.mxu2 }
 0x485   :  { %v3275_v8 = vpop.f32.mrf.mxu3  ;;  %v3287_v45 = vadd.f32 %v3286_v38, %v7577_v60 }
 0x48c   :  { %v3288_v18 = vpop.f32.mrf.mxu2 }
 0x48d   :  { %v3319_v0 = vpop.f32.mrf.mxu3  ;;  %v3289_v5 = vadd.f32 %v3288_v18, %v3256_v24 }
 0x48e   :  { %v7592_v19 = vadd.f32 %v3319_v0, %v3287_v45 }
 0x490   :  { %v3368_v60 = vmul.f32 %v7592_v19, %v7592_v19  ;;  %v3345_v37 = vsel %vm118_vm0, %v7592_v19, 0.0 }
 0x492   :  { %v3377_v14 = vsel %vm118_vm0, %v3368_v60, 0.0 }
 0x494   :  { %v3291_v9 = vpop.f32.mrf.mxu2 }
 0x495   :  { %v3321_v3 = vpop.f32.mrf.mxu3  ;;  %v3292_v46 = vadd.f32 %v3291_v9, %v3259_v40 }
 0x496   :  { %v7590_v11 = vadd.f32 %v3321_v3, %v3289_v5 }
 0x498   :  { %v3369_v62 = vmul.f32 %v7590_v11, %v7590_v11  ;;  %v3346_v42 = vsel %vm118_vm0, %v7590_v11, 0.0 }
 0x499   :  { %v3347_v53 = vadd.f32 %v3346_v42, %v3345_v37 }
 0x49a   :  { %v3378_v49 = vsel %vm118_vm0, %v3369_v62, 0.0 }
 0x49b   :  { %v3379_v12 = vadd.f32 %v3378_v49, %v3377_v14 }
 0x49c   :  { %v3293_v31 = vpop.f32.mrf.mxu2 }
 0x49d   :  { %v3324_v48 = vpop.f32.mrf.mxu3  ;;  %v3294_v7 = vadd.f32 %v3293_v31, %v3261_v22 }
 0x49e   :  { %v7594_v56 = vadd.f32 %v3324_v48, %v3292_v46 }
 0x4a0   :  { %v3370_v35 = vmul.f32 %v7594_v56, %v7594_v56  ;;  %v3348_v54 = vsel %vm118_vm0, %v7594_v56, 0.0 }
 0x4a1   :  { %v3349_v27 = vadd.f32 %v3348_v54, %v3347_v53 }
 0x4a2   :  { %v3380_v10 = vsel %vm118_vm0, %v3370_v35, 0.0 }
 0x4a3   :  { %v3381_v44 = vadd.f32 %v3380_v10, %v3379_v12 }
 0x4a4   :  { %v3296_v47 = vpop.f32.mrf.mxu2 }
 0x4a5   :  { %v3326_v41 = vpop.f32.mrf.mxu3  ;;  %v3297_v6 = vadd.f32 %v3296_v47, %v3264_v15 }
 0x4a6   :  { %v7598_v61 = vadd.f32 %v3326_v41, %v3294_v7 }
 0x4a8   :  { %v3371_v40 = vmul.f32 %v7598_v61, %v7598_v61  ;;  %v3350_v30 = vsel %vm118_vm0, %v7598_v61, 0.0 }
 0x4a9   :  { %v3351_v58 = vadd.f32 %v3350_v30, %v3349_v27 }
 0x4aa   :  { %v3382_v23 = vsel %vm118_vm0, %v3371_v40, 0.0 }
 0x4ab   :  { %v3383_v43 = vadd.f32 %v3382_v23, %v3381_v44 }
 0x4ac   :  { %v3298_v57 = vpop.f32.mrf.mxu2 }
 0x4ad   :  { %v3329_v25 = vpop.f32.mrf.mxu3  ;;  %v3299_v33 = vadd.f32 %v3298_v57, %v3266_v36 }
 0x4ae   :  { %v7606_v63 = vadd.f32 %v3329_v25, %v3297_v6 }
 0x4b0   :  { %v3372_v39 = vmul.f32 %v7606_v63, %v7606_v63  ;;  %v3352_v21 = vsel %vm118_vm0, %v7606_v63, 0.0 }
 0x4b1   :  { %v3353_v13 = vadd.f32 %v3352_v21, %v3351_v58 }
 0x4b2   :  { %v3384_v52 = vsel %vm118_vm0, %v3372_v39, 0.0 }
 0x4b3   :  { %v3385_v20 = vadd.f32 %v3384_v52, %v3383_v43  ;;  %v4881_v52 = vld [vmem:[%s7938_s7 + $0x38] sm:$0xff]  ;;  %v4888_v43 = vld [vmem:[%s7938_s7 + $0x70] sm:$0xff] }
 0x4b4   :  { %v3301_v51 = vpop.f32.mrf.mxu2  ;;  %3802 = vmatpush.bf16.msrb.mxu2 %v4881_v52 }
 0x4b5   :  { %v3331_v2 = vpop.f32.mrf.mxu3  ;;  %v3302_v15 = vadd.f32 %v3301_v51, %v3269_v32 }
 0x4b6   :  { %v7615_v29 = vadd.f32 %v3331_v2, %v3299_v33 }
 0x4b8   :  { %v3373_v16 = vmul.f32 %v7615_v29, %v7615_v29  ;;  %v3354_v4 = vsel %vm118_vm0, %v7615_v29, 0.0 }
 0x4b9   :  { %v3355_v50 = vadd.f32 %v3354_v4, %v3353_v13 }
 0x4ba   :  { %v3386_v34 = vsel %vm118_vm0, %v3373_v16, 0.0 }
 0x4bb   :  { %v3387_v32 = vadd.f32 %v3386_v34, %v3385_v20  ;;  %v4879_v34 = vld [vmem:[%s7938_s7 + $0x28] sm:$0xff] }
 0x4bc   :  { %v3303_v28 = vpop.f32.mrf.mxu2  ;;  %v4887_v20 = vld [vmem:[%s7938_s7 + $0x68] sm:$0xff] }
 0x4bd   :  { %v3334_v1 = vpop.f32.mrf.mxu3  ;;  %v3304_v3 = vadd.f32 %v3303_v28, %v7585_v55 }
 0x4be   :  { %v7632_v17 = vadd.f32 %v3334_v1, %v3302_v15  ;;  %v4889_v15 = vld [vmem:[%s7938_s7 + $0x78] sm:$0xff] }
 0x4bf   :  { %3815 = vmatpush.bf16.msrb.mxu3 %v4889_v15 }
 0x4c0   :  { %v3356_v38 = vsel %vm118_vm0, %v7632_v17, 0.0  ;;  %v3374_v8 = vmul.f32 %v7632_v17, %v7632_v17 }
 0x4c1   :  { %v3357_v18 = vadd.f32 %v3356_v38, %v3355_v50 }
 0x4c2   :  { %v3388_v0 = vsel %vm118_vm0, %v3374_v8, 0.0  ;;  %v4878_v8 = vld [vmem:[%s7938_s7 + $0x20] sm:$0xff] }
 0x4c3   :  { %v3389_v9 = vadd.f32 %v3388_v0, %v3387_v32  ;;  %3816 = vmatpush.bf16.msrb.mxu3 %v4888_v43  ;;  %v4886_v32 = vld [vmem:[%s7938_s7 + $0x60] sm:$0xff] }
 0x4c4   :  { %v3306_v31 = vpop.f32.mrf.mxu2 }
 0x4c5   :  { %v3336_v48 = vpop.f32.mrf.mxu3  ;;  %v3307_v25 = vadd.f32 %v3306_v31, %v7587_v59 }
 0x4c6   :  { %v7640_v47 = vadd.f32 %v3336_v48, %v3304_v3 }
 0x4c7   :  { %3817 = vmatpush.bf16.msrb.mxu3 %v4887_v20  ;;  %v4874_v20 = vld [vmem:[%s7938_s7] sm:$0xff] }
 0x4c8   :  { %v3358_v41 = vsel %vm118_vm0, %v7640_v47, 0.0  ;;  %v3375_v24 = vmul.f32 %v7640_v47, %v7640_v47 }
 0x4c9   :  { %v3359_v5 = vadd.f32 %v3358_v41, %v3357_v18  ;;  %v4962_v18 = vld [vmem:[%s7936_s5] ss:$0 sm:$0xff] }
 0x4ca   :  { %v3390_v57 = vsel %vm118_vm0, %v3375_v24, 0.0 }
 0x4cb   :  { %v3391_v45 = vadd.f32 %v3390_v57, %v3389_v9  ;;  %3818 = vmatpush.bf16.msrb.mxu3 %v4886_v32  ;;  %v4883_v32 = vld [vmem:[%s7938_s7 + $0x48] sm:$0xff] }
 0x4cc   :  { %v3308_v22 = vpop.f32.mrf.mxu2 }
 0x4cd   :  { %v3339_v46 = vpop.f32.mrf.mxu3 }
 0x4ce   :  { %v3340_v7 = vadd.f32 %v3339_v46, %v3307_v25 }
 0x4d0   :  { %v3360_v55 = vsel %vm118_vm0, %v3340_v7, 0.0  ;;  %v3376_v36 = vmul.f32 %v3340_v7, %v3340_v7 }
 0x4d1   :  { %v3361_v62 = vadd.f32 %v3360_v55, %v3359_v5 }
 0x4d2   :  { %v3392_v6 = vsel %vm118_vm0, %v3376_v36, 0.0 }
 0x4d3   :  { %v3362_v60 = vrot.slane %v3361_v62, 4  ;;  %v3393_v42 = vadd.f32 %v3392_v6, %v3391_v45  ;;  %v4876_v6 = vld [vmem:[%s7938_s7 + $0x10] sm:$0xff] }
 0x4d5   :  { %v3363_v35 = vadd.f32 %v3362_v60, %v3361_v62  ;;  %v3394_v33 = vrot.slane %v3393_v42, 4  ;;  %v3341_v51 = vpop.f32.mrf.mxu3 }
 0x4d7   :  { %v3364_v37 = vrot.slane %v3363_v35, 2  ;;  %v3395_v2 = vadd.f32 %v3394_v33, %v3393_v42 }
 0x4d9   :  { %v3365_v49 = vadd.f32 %v3364_v37, %v3363_v35  ;;  %v3396_v54 = vrot.slane %v3395_v2, 2 }
 0x4db   :  { %v3366_v40 = vrot.slane %v3365_v49, 1  ;;  %v3397_v59 = vadd.f32 %v3396_v54, %v3395_v2 }
 0x4dd   :  { %v3367_v53 = vadd.f32 %v3366_v40, %v3365_v49  ;;  %v3398_v14 = vrot.slane %v3397_v59, 1  ;;  %v4875_v40 = vld [vmem:[%s7938_s7 + $0x8] sm:$0xff] }
 0x4df   :  { %v3399_v10 = vadd.f32 %v3398_v14, %v3397_v59  ;;  %v7650_v30 = vmul.f32 0.055555556, %v3367_v53 }
 0x4e1   :  { %v3401_v39 = vmul.f32 0.055555556, %v3399_v10  ;;  %v3402_v12 = vmul.f32 %v7650_v30, %v7650_v30  ;;  %v3413_v27 = vsub.f32 %v3340_v7, %v7650_v30  ;;  %v3410_v16 = vsub.f32 %v7615_v29, %v7650_v30  ;;  %v4880_v29 = vld [vmem:[%s7938_s7 + $0x30] sm:$0xff] }
 0x4e2   :  { %v3412_v44 = vsub.f32 %v7640_v47, %v7650_v30  ;;  %3803 = vmatpush.bf16.msrb.mxu2 %v4880_v29  ;;  %v3408_v0 = vsub.f32 %v7598_v61, %v7650_v30  ;;  %v3406_v9 = vsub.f32 %v7590_v11, %v7650_v30  ;;  %v3411_v3 = vsub.f32 %v7632_v17, %v7650_v30  ;;  %v4963_v47 = vld [vmem:[%s7937_s6] ss:$0 sm:$0xff]  ;;  %v4877_v61 = vld [vmem:[%s7938_s7 + $0x18] sm:$0xff] }
 0x4e3   :  { %v3403_v23 = vsub.f32 %v3401_v39, %v3402_v12  ;;  %v4885_v11 = vld [vmem:[%s7938_s7 + $0x58] sm:$0xff]  ;;  %v3405_v14 = vsub.f32 %v7592_v19, %v7650_v30  ;;  %v3409_v10 = vsub.f32 %v7606_v63, %v7650_v30  ;;  %v3407_v39 = vsub.f32 %v7594_v56, %v7650_v30 }
 0x4e4   :  { %3819 = vmatpush.bf16.msrb.mxu3 %v4885_v11  ;;  %v4900_v11 = vld [vmem:[%s7938_s7 + $0xd0] sm:$0xff] }
 0x4e5   :  { %v3404_v21 = vmax.f32 %v3403_v23, 0.0 }
 0x4e6   :  { %3804 = vmatpush.bf16.msrb.mxu2 %v4879_v34 }
 0x4e7   :  { %v3414_v58 = vadd.f32 1e-05, %v3404_v21 }
 0x4e9   :  { %4969 = vrsqrt.f32 %v3414_v58  ;;  %vm3421_vm11 = vweird.f32 %v3414_v58 }
 0x4ea   :  { %3805 = vmatpush.bf16.msrb.mxu2 %v4878_v8  ;;  %v4895_v8 = vld [vmem:[%s7938_s7 + $0xa8] sm:$0xff] }
 0x4ee   :  { %3806 = vmatpush.bf16.msrb.mxu2 %v4877_v61  ;;  %v4901_v61 = vld [vmem:[%s7938_s7 + $0xd8] sm:$0xff] }
 0x4ef   :  { %v4970_v4 = vpop.eup %4969 }
 0x4f0   :  { %v3416_v28 = vmul.f32 %v4970_v4, %v3414_v58  ;;  %vm3422_vm10 = vweird.f32 %v4970_v4 }
 0x4f1   :  { %vm3423_vm12 = vmor %vm3421_vm11, %vm3422_vm10 }
 0x4f2   :  { %v3417_v13 = vmul.f32 %v4970_v4, %v3416_v28  ;;  %3807 = vmatpush.bf16.msrb.mxu2 %v4876_v6 }
 0x4f4   :  { %v3418_v1 = vmul.f32 0.5, %v3417_v13 }
 0x4f6   :  { %v3419_v50 = vsub.f32 1.5, %v3418_v1  ;;  %3808 = vmatpush.bf16.msrb.mxu2 %v4875_v40 }
 0x4f8   :  { %v3420_v38 = vmul.f32 %v4970_v4, %v3419_v50  ;;  %v4897_v50 = vld [vmem:[%s7938_s7 + $0xb8] sm:$0xff] }
 0x4fa   :  { %v3424_v31 = vsel %vm3423_vm12, %v4970_v4, %v3420_v38  ;;  %3809 = vmatpush.bf16.msrb.mxu2 %v4874_v20  ;;  %v4896_v38 = vld [vmem:[%s7938_s7 + $0xb0] sm:$0xff] }
 0x4fb   :  { %v3433_v48 = vmul.f32 %v3424_v31, %v3413_v27  ;;  %v3430_v41 = vmul.f32 %v3424_v31, %v3410_v16  ;;  %v3428_v24 = vmul.f32 %v3424_v31, %v3408_v0  ;;  %v3426_v5 = vmul.f32 %v3424_v31, %v3406_v9  ;;  %v4882_v0 = vld [vmem:[%s7938_s7 + $0x40] sm:$0xff]  ;;  %v4905_v9 = vld [vmem:[%s7938_s7 + $0xf8] sm:$0xff] }
 0x4fc   :  { %v3432_v57 = vmul.f32 %v3424_v31, %v3412_v44  ;;  %v3425_v12 = vmul.f32 %v3424_v31, %v3405_v14  ;;  %v3431_v27 = vmul.f32 %v3424_v31, %v3411_v3  ;;  %v3429_v23 = vmul.f32 %v3424_v31, %v3409_v10  ;;  %v4893_v3 = vld [vmem:[%s7938_s7 + $0x98] sm:$0xff] }
 0x4fd   :  { %v3445_v17 = vmul.f32 %v4962_v18, %v3433_v48  ;;  %v3442_v45 = vmul.f32 %v4962_v18, %v3430_v41  ;;  %v3440_v25 = vmul.f32 %v4962_v18, %v3428_v24  ;;  %v3438_v22 = vmul.f32 %v4962_v18, %v3426_v5  ;;  %v4892_v48 = vld [vmem:[%s7938_s7 + $0x90] sm:$0xff]  ;;  %v4903_v41 = vld [vmem:[%s7938_s7 + $0xe8] sm:$0xff]  ;;  %v4902_v24 = vld [vmem:[%s7938_s7 + $0xe0] sm:$0xff] }
 0x4fe   :  { %v3444_v62 = vmul.f32 %v4962_v18, %v3432_v57  ;;  %v3427_v21 = vmul.f32 %v3424_v31, %v3407_v39  ;;  %v3437_v16 = vmul.f32 %v4962_v18, %v3425_v12  ;;  %v3443_v44 = vmul.f32 %v4962_v18, %v3431_v27  ;;  %3828 = vmatpush.bf16.msra.mxu2 %v4897_v50  ;;  %v4904_v31 = vld [vmem:[%s7938_s7 + $0xf0] sm:$0xff]  ;;  %v4890_v5 = vld [vmem:[%s7938_s7 + $0x80] sm:$0xff] }
 0x4ff   :  { %v3457_v46 = vadd.f32 %v4963_v47, %v3445_v17  ;;  %v3454_v7 = vadd.f32 %v4963_v47, %v3442_v45  ;;  %v3452_v55 = vadd.f32 %v4963_v47, %v3440_v25  ;;  %v3450_v36 = vadd.f32 %v4963_v47, %v3438_v22  ;;  %v4909_v25 = vld [vmem:[%s7938_s7 + $0x118] sm:$0xff] }
 0x500   :  { %v3456_v54 = vadd.f32 %v4963_v47, %v3444_v62  ;;  %v3441_v58 = vmul.f32 %v4962_v18, %v3429_v23  ;;  %v3439_v52 = vmul.f32 %v4962_v18, %v3427_v21  ;;  %v3449_v15 = vadd.f32 %v4963_v47, %v3437_v16  ;;  %v4894_v18 = vld [vmem:[%s7938_s7 + $0xa0] sm:$0xff] }
 0x501   :  { %v3466_v60 = vmax.f32 %v3457_v46, 0.0  ;;  %v3463_v42 = vmax.f32 %v3454_v7, 0.0  ;;  %v3461_v35 = vmax.f32 %v3452_v55, 0.0  ;;  %v3459_v33 = vmax.f32 %v3450_v36, 0.0  ;;  %v4899_v46 = vld [vmem:[%s7938_s7 + $0xc8] sm:$0xff]  ;;  %v4908_v7 = vld [vmem:[%s7938_s7 + $0x110] sm:$0xff] }
 0x502   :  { %v3465_v59 = vmax.f32 %v3456_v54, 0.0  ;;  %v3455_v4 = vadd.f32 %v4963_v47, %v3443_v44  ;;  %v3453_v28 = vadd.f32 %v4963_v47, %v3441_v58  ;;  %v3451_v29 = vadd.f32 %v4963_v47, %v3439_v52  ;;  %3829 = vmatpush.bf16.msra.mxu2 %v4896_v38  ;;  %v4891_v47 = vld [vmem:[%s7938_s7 + $0x88] sm:$0xff]  ;;  %v4898_v55 = vld [vmem:[%s7938_s7 + $0xc0] sm:$0xff] }
 0x503   :  { %v3475_v51 = vmul.f32 %v6747_v26, %v3466_v60  ;;  %v3472_v37 = vmul.f32 %v6747_v26, %v3463_v42  ;;  %v3470_v2 = vmul.f32 %v6747_v26, %v3461_v35  ;;  %v3468_v49 = vmul.f32 %v6747_v26, %v3459_v33  ;;  %v4907_v36 = vld [vmem:[%s7938_s7 + $0x108] sm:$0xff]  ;;  %v4906_v62 = vld [vmem:[%s7938_s7 + $0x100] sm:$0xff] }
 0x504   :  { %v3474_v53 = vmul.f32 %v6747_v26, %v3465_v59  ;;  %v3458_v43 = vmax.f32 %v3449_v15, 0.0  ;;  %v3464_v19 = vmax.f32 %v3455_v4, 0.0  ;;  %v3462_v13 = vmax.f32 %v3453_v28, 0.0 }
 0x505   :  { %3500 = vst.msk [vmem:[#allocation4 + $0x20] sm:$0xff] %vm118_vm0, %v3475_v51  ;;  %3490 = vrot.lane.b32.xlu1 %v3472_v37, %s5000_s17  ;;  %3484 = vrot.lane.b32.xlu0 %v3470_v2, %s5000_s17  ;;  %v3460_v1 = vmax.f32 %v3451_v29, 0.0 }
 0x506   :  { %3478 = vrot.lane.b32.xlu2 %v3468_v49, %s5000_s17  ;;  %v3467_v63 = vmul.f32 %v6747_v26, %v3458_v43  ;;  %v3473_v56 = vmul.f32 %v6747_v26, %v3464_v19  ;;  %v3471_v30 = vmul.f32 %v6747_v26, %v3462_v13  ;;  %3830 = vmatpush.bf16.msra.mxu2 %v4895_v8 }
 0x507   :  { %v3469_v34 = vmul.f32 %v6747_v26, %v3460_v1  ;;  %v4884_v26 = vld [vmem:[%s7938_s7 + $0x50] sm:$0xff] }
 0x508   :  { %3476 = vst.msk [vmem:[#allocation4] sm:$0xff] %vm118_vm0, %v3467_v63  ;;  %3820 = vmatpush.bf16.msrb.mxu3 %v4884_v26 }
 0x509   :  { %3494 = vst.msk [vmem:[#allocation4 + $0x18] sm:$0xff] %vm118_vm0, %v3473_v56 }
 0x50a   :  { %3488 = vst.msk [vmem:[#allocation4 + $0x10] sm:$0xff] %vm118_vm0, %v3471_v30  ;;  %3831 = vmatpush.bf16.msra.mxu2 %v4894_v18 }
 0x50b   :  { %3482 = vst.msk [vmem:[#allocation4 + $0x8] sm:$0xff] %vm118_vm0, %v3469_v34 }
 0x50c   :  { %3821 = vmatpush.bf16.msrb.mxu3 %v4883_v32  ;;  %v3505_v37 = vld [vmem:[#allocation4 + $0x20] sm:$0xff] }
 0x50d   :  { %v3510_v49 = vpack.c.bf16 %v3505_v37, %v3505_v37  ;;  %v4925_v37 = vld [vmem:[%s7943_s12 + $0x38] sm:$0xff] }
 0x50e   :  { %3496 = vrot.lane.b32.xlu2 %v3474_v53, %s5000_s17  ;;  %3832 = vmatpush.bf16.msra.mxu2 %v4893_v3  ;;  %v4916_v3 = vld [vmem:[%s7941_s10 + $0x34] sm:$0xf] }
 0x510   :  { %3822 = vmatpush.bf16.msrb.mxu3 %v4882_v0  ;;  %v4754_v0 = vld [vmem:[%s7941_s10 + $0x30] sm:$0xf] }
 0x512   :  { %3833 = vmatpush.bf16.msra.mxu2 %v4892_v48  ;;  %v4756_v48 = vld [vmem:[%s7941_s10 + $0x38] sm:$0xf0] }
 0x514   :  { %3841 = vmatpush.bf16.msra.mxu3 %v4905_v9  ;;  %v4917_v9 = vld [vmem:[%s7941_s10 + $0x34] sm:$0xf0] }
 0x516   :  { %3834 = vmatpush.bf16.msra.mxu2 %v4891_v47  ;;  %v4746_v47 = vld [vmem:[%s7941_s10 + $0x20] sm:$0xf] }
 0x518   :  { %3842 = vmatpush.bf16.msra.mxu3 %v4904_v31  ;;  %v4755_v31 = vor.u32 %v4917_v9, %v4754_v0 }
 0x51a   :  { %3835 = vmatpush.bf16.msra.mxu2 %v4890_v5  ;;  %v4759_v5 = vor.u32 %v4916_v3, %v4756_v48 }
 0x51c   :  { %3843 = vmatpush.bf16.msra.mxu3 %v4903_v41  ;;  %v4915_v41 = vld [vmem:[%s7941_s10 + $0x24] sm:$0xf0] }
 0x520   :  { %3844 = vmatpush.bf16.msra.mxu3 %v4902_v24 }
 0x524   :  { %3845 = vmatpush.bf16.msra.mxu3 %v4901_v61  ;;  %v4748_v61 = vld [vmem:[%s7941_s10 + $0x28] sm:$0xf0] }
 0x528   :  { %3846 = vmatpush.bf16.msra.mxu3 %v4900_v11  ;;  %v4747_v11 = vor.u32 %v4915_v41, %v4746_v47 }
 0x52c   :  { %3847 = vmatpush.bf16.msra.mxu3 %v4899_v46  ;;  %v4912_v46 = vld [vmem:[%s7941_s10 + $0x14] sm:$0xf] }
 0x530   :  { %3848 = vmatpush.bf16.msra.mxu3 %v4898_v55 }
 0x560   :  { %v3479_v57 = vpop.permute.xlu2 %3478 }
 0x561   :  { %3481 = vst.msk [vmem:[#allocation4] sm:$0xff] %vm504_vm1, %v3479_v57  ;;  %v4914_v57 = vld [vmem:[%s7941_s10 + $0x24] sm:$0xf] }
 0x568   :  { %v3497_v17 = vpop.permute.xlu2 %3496  ;;  %v3501_v45 = vld [vmem:[#allocation4] sm:$0xff] }
 0x569   :  { %3499 = vst.msk [vmem:[#allocation4 + $0x18] sm:$0xff] %vm504_vm1, %v3497_v17  ;;  %v3506_v22 = vpack.c.bf16 %v3501_v45, %v3501_v45  ;;  %v4751_v45 = vor.u32 %v4914_v57, %v4748_v61  ;;  %v4966_v57 = vld [vmem:[%s7944_s13] ss:$0 sm:$0xff] }
 0x56b   :  { %3810 = vmatmul.bf16.vlgmr.msrb.gmra.mxu2 %v3506_v22  ;;  %v4913_v22 = vld [vmem:[%s7941_s10 + $0x14] sm:$0xf0] }
 0x56c   :  { %3858 = vmatpush.bf16.msrb.mxu2 %v4909_v25  ;;  %v4738_v25 = vld [vmem:[%s7941_s10 + $0x10] sm:$0xf] }
 0x56d   :  { %v4739_v55 = vor.u32 %v4913_v22, %v4738_v25 }
 0x570   :  { %3859 = vmatpush.bf16.msrb.mxu2 %v4908_v7  ;;  %v3504_v2 = vld [vmem:[#allocation4 + $0x18] sm:$0xff] }
 0x571   :  { %v3509_v54 = vpack.c.bf16 %v3504_v2, %v3504_v2  ;;  %v4740_v7 = vld [vmem:[%s7941_s10 + $0x18] sm:$0xf0] }
 0x574   :  { %3860 = vmatpush.bf16.msrb.mxu2 %v4907_v36  ;;  %v4743_v36 = vor.u32 %v4912_v46, %v4740_v7 }
 0x577   :  { %v3491_v6 = vpop.permute.xlu1 %3490  ;;  %v3485_v60 = vpop.permute.xlu0 %3484 }
 0x578   :  { %3493 = vst.msk [vmem:[#allocation4 + $0x10] sm:$0xff] %vm504_vm1, %v3491_v6  ;;  %3861 = vmatpush.bf16.msrb.mxu2 %v4906_v62  ;;  %v4730_v62 = vld [vmem:[%s7941_s10] sm:$0xf]  ;;  %v4911_v6 = vld [vmem:[%s7941_s10 + $0x4] sm:$0xf0] }
 0x579   :  { %3487 = vst.msk [vmem:[#allocation4 + $0x8] sm:$0xff] %vm504_vm1, %v3485_v60  ;;  %v4910_v60 = vld [vmem:[%s7941_s10 + $0x4] sm:$0xf] }
 0x57f   :  { %v3503_v42 = vld [vmem:[#allocation4 + $0x10] sm:$0xff] }
 0x580   :  { %v3502_v35 = vld [vmem:[#allocation4 + $0x8] sm:$0xff]  ;;  %v3508_v33 = vpack.c.bf16 %v3503_v42, %v3503_v42 }
 0x581   :  { %v3507_v51 = vpack.c.bf16 %v3502_v35, %v3502_v35  ;;  %v4732_v42 = vld [vmem:[%s7941_s10 + $0x8] sm:$0xf0]  ;;  %v4731_v35 = vor.u32 %v4911_v6, %v4730_v62 }
 0x582   :  { %3836 = vmatmul.bf16.vlgmr.msra.gmra.mxu2 %v3508_v33 }
 0x583   :  { %3823 = vmatmul.bf16.vlgmr.msrb.gmra.mxu3 %v3507_v51  ;;  %3986 = vmatpush.bf16.msra.mxu2 %v4759_v5  ;;  %v4735_v51 = vor.u32 %v4910_v60, %v4732_v42  ;;  %v5004_v5 = vmov 4  }
 0x584   :  { %3973 = vmatpush.bf16.msrb.mxu3 %v4755_v31  ;;  %4958 = vset.pattern.permute.xlu1 %v5004_v5 }
 0x585   :  { %4959 = vset.pattern.permute.xlu0 %v5004_v5 }
 0x587   :  { %3987 = vmatpush.bf16.msra.mxu2 %v4751_v45 }
 0x588   :  { %3974 = vmatpush.bf16.msrb.mxu3 %v4747_v11 }
 0x58b   :  { %3988 = vmatpush.bf16.msra.mxu2 %v4743_v36 }
 0x58c   :  { %3975 = vmatpush.bf16.msrb.mxu3 %v4739_v55 }
 0x58f   :  { %3989 = vmatpush.bf16.msra.mxu2 %v4735_v51 }
 0x590   :  { %3976 = vmatpush.bf16.msrb.mxu3 %v4731_v35 }
 0x592   :  { %4727 = vmatmul.msk.bf16.vlgmr.msrb.gmra.mxu2 %vm118_vm0, %v3510_v49  ;;  %v4933_v49 = vld [vmem:[%s7943_s12 + $0x78] sm:$0xff] }
 0x593   :  { %3849 = vmatmul.bf16.vlgmr.msra.gmra.mxu3 %v3509_v54  ;;  %4148 = vmatpush.bf16.msrb.mxu2 %v4933_v49 }
 0x594   :  { %4135 = vmatpush.bf16.msra.mxu3 %v4925_v37 }
 0x5ee   :  { %v3811_v40 = vpop.f32.mrf.mxu2 }
 0x5f6   :  { %v3813_v59 = vpop.f32.mrf.mxu2 }
 0x605   :  { %v3837_v53 = vpop.f32.mrf.mxu2 }
 0x606   :  { %v3824_v14 = vpop.f32.mrf.mxu3 }
 0x607   :  { %v3825_v12 = vadd.f32 %v3824_v14, %v3811_v40  ;;  %v4924_v40 = vld [vmem:[%s7943_s12 + $0x30] sm:$0xff] }
 0x608   :  { %4136 = vmatpush.bf16.msra.mxu3 %v4924_v40 }
 0x609   :  { %v3838_v27 = vadd.f32 %v3837_v53, %v3825_v12  ;;  %v4932_v53 = vld [vmem:[%s7943_s12 + $0x70] sm:$0xff]  ;;  %v4931_v12 = vld [vmem:[%s7943_s12 + $0x68] sm:$0xff] }
 0x60a   :  { %4149 = vmatpush.bf16.msrb.mxu2 %v4932_v53 }
 0x60d   :  { %v3839_v10 = vpop.f32.mrf.mxu2 }
 0x60e   :  { %v3826_v39 = vpop.f32.mrf.mxu3  ;;  %v4923_v10 = vld [vmem:[%s7943_s12 + $0x28] sm:$0xff]  ;;  %4150 = vmatpush.bf16.msrb.mxu2 %v4931_v12 }
 0x60f   :  { %4137 = vmatpush.bf16.msra.mxu3 %v4923_v10 }
 0x615   :  { %v3863_v23 = vpop.f32.mrf.mxu2 }
 0x616   :  { %v3850_v21 = vpop.f32.mrf.mxu3 }
 0x617   :  { %v3851_v16 = vadd.f32 %v3850_v21, %v3838_v27 }
 0x619   :  { %v7808_v44 = vadd.f32 %v3863_v23, %v3851_v16  ;;  %v4964_v23 = vld [vmem:[%s7939_s8] ss:$0 sm:$0xff] }
 0x61b   :  { %v3869_v58 = vsel %vm118_vm0, %v7808_v44, 0.0  ;;  %v3876_v52 = vmul.f32 %v7808_v44, %v7808_v44 }
 0x61c   :  { %v3870_v15 = vrot.slane %v3869_v58, 4 }
 0x61d   :  { %v3877_v4 = vsel %vm118_vm0, %v3876_v52, 0.0  ;;  %v3865_v28 = vpop.f32.mrf.mxu2  ;;  %v4922_v52 = vld [vmem:[%s7943_s12 + $0x20] sm:$0xff] }
 0x61e   :  { %v3871_v29 = vadd.f32 %v3870_v15, %v3869_v58  ;;  %v3878_v43 = vrot.slane %v3877_v4, 4  ;;  %v3852_v19 = vpop.f32.mrf.mxu3  ;;  %v4965_v58 = vld [vmem:[%s7940_s9] ss:$0 sm:$0xff]  ;;  %4138 = vmatpush.bf16.msra.mxu3 %v4922_v52  ;;  %v4921_v28 = vld [vmem:[%s7943_s12 + $0x18] sm:$0xff] }
 0x620   :  { %v3872_v13 = vrot.slane %v3871_v29, 2  ;;  %v3879_v1 = vadd.f32 %v3878_v43, %v3877_v4 }
 0x622   :  { %v3873_v63 = vadd.f32 %v3872_v13, %v3871_v29  ;;  %v3880_v56 = vrot.slane %v3879_v1, 2  ;;  %v4929_v29 = vld [vmem:[%s7943_s12 + $0x58] sm:$0xff]  ;;  %4139 = vmatpush.bf16.msra.mxu3 %v4921_v28  ;;  %v4920_v13 = vld [vmem:[%s7943_s12 + $0x10] sm:$0xff] }
 0x624   :  { %v3874_v30 = vrot.slane %v3873_v63, 1  ;;  %v3881_v34 = vadd.f32 %v3880_v56, %v3879_v1  ;;  %v4928_v1 = vld [vmem:[%s7943_s12 + $0x50] sm:$0xff]  ;;  %v4927_v56 = vld [vmem:[%s7943_s12 + $0x48] sm:$0xff] }
 0x626   :  { %v3875_v20 = vadd.f32 %v3874_v30, %v3873_v63  ;;  %v3882_v50 = vrot.slane %v3881_v34, 1  ;;  %4140 = vmatpush.bf16.msra.mxu3 %v4920_v13  ;;  %v4919_v63 = vld [vmem:[%s7943_s12 + $0x8] sm:$0xff]  ;;  %v4918_v30 = vld [vmem:[%s7943_s12] sm:$0xff] }
 0x628   :  { %v3883_v26 = vadd.f32 %v3882_v50, %v3881_v34  ;;  %v3884_v38 = vmul.f32 0.5, %v3875_v20  ;;  %v4926_v34 = vld [vmem:[%s7943_s12 + $0x40] sm:$0xff] }
 0x629   :  { %v3920_v20 = vld [vmem:[%s7942_s11] sm:$0x3] }
 0x62a   :  { %v3885_v8 = vmul.f32 0.5, %v3883_v26  ;;  %v3886_v32 = vmul.f32 %v3884_v38, %v3884_v38  ;;  %v3889_v27 = vsub.f32 %v7808_v44, %v3884_v38  ;;  %v4930_v44 = vld [vmem:[%s7943_s12 + $0x60] sm:$0xff]  ;;  %4141 = vmatpush.bf16.msra.mxu3 %v4919_v63  ;;  %v3922_v50 = vperm.slane %v3920_v20, 0 }
 0x62b   :  { %4151 = vmatpush.bf16.msrb.mxu2 %v4930_v44  ;;  %v3923_v26 = vperm.slane %v3920_v20, 1 }
 0x62c   :  { %v3887_v18 = vsub.f32 %v3885_v8, %v3886_v32 }
 0x62e   :  { %v3888_v24 = vmax.f32 %v3887_v18, 0.0  ;;  %4142 = vmatpush.bf16.msra.mxu3 %v4918_v30 }
 0x62f   :  { %4152 = vmatpush.bf16.msrb.mxu2 %v4929_v29 }
 0x630   :  { %v3890_v17 = vadd.f32 1e-05, %v3888_v24 }
 0x632   :  { %4971 = vrsqrt.f32 %v3890_v17  ;;  %vm3897_vm14 = vweird.f32 %v3890_v17 }
 0x633   :  { %4153 = vmatpush.bf16.msrb.mxu2 %v4928_v1 }
 0x637   :  { %4154 = vmatpush.bf16.msrb.mxu2 %v4927_v56 }
 0x638   :  { %v4972_v33 = vpop.eup %4971 }
 0x639   :  { %v3892_v2 = vmul.f32 %v4972_v33, %v3890_v17  ;;  %vm3898_vm13 = vweird.f32 %v4972_v33 }
 0x63a   :  { %vm3899_vm15 = vmor %vm3897_vm14, %vm3898_vm13 }
 0x63b   :  { %v3893_v54 = vmul.f32 %v4972_v33, %v3892_v2  ;;  %4155 = vmatpush.bf16.msrb.mxu2 %v4926_v34 }
 0x63d   :  { %v3894_v59 = vmul.f32 0.5, %v3893_v54 }
 0x63f   :  { %v3895_v14 = vsub.f32 1.5, %v3894_v59 }
 0x641   :  { %v3896_v39 = vmul.f32 %v4972_v33, %v3895_v14 }
 0x643   :  { %v3900_v21 = vsel %vm3899_vm15, %v4972_v33, %v3896_v39 }
 0x644   :  { %v3901_v16 = vmul.f32 %v3900_v21, %v3889_v27 }
 0x646   :  { %v3905_v15 = vmul.f32 %v4964_v23, %v3901_v16 }
 0x648   :  { %v3909_v4 = vadd.f32 %v4965_v58, %v3905_v15 }
 0x64a   :  { %v3910_v43 = vmax.f32 %v3909_v4, 0.0 }
 0x64c   :  { %v3911_v19 = vpack.c.bf16 %v3910_v43, %v3910_v43 }
 0x64e   :  { %4760 = vmatmul.msk.bf16.vlgmr.msrb.gmra.mxu3 %vm118_vm0, %v3911_v19  ;;  %4761 = vmatmul.msk.bf16.vlgmr.msra.gmra.mxu2 %vm118_vm0, %v3911_v19 }
 0x6d1   :  { %v3978_v38 = vpop.f32.mrf.mxu3  ;;  %v3991_v8 = vpop.f32.mrf.mxu2 }
 0x6d2   :  { %v3979_v32 = vadd.f32 %v3978_v38, %v3922_v50  ;;  %v3992_v18 = vadd.f32 %v3991_v8, %v3923_v26 }
 0x6d4   :  { %vm3995_vm0 = vcmp.gt.f32.partialorder %v3979_v32, 0.0  ;;  %v3997_v0 = vmul.f32 0.01, %v3979_v32  ;;  %vm3996_vm1 = vcmp.gt.f32.partialorder %v3992_v18, 0.0  ;;  %v3998_v9 = vmul.f32 0.01, %v3992_v18 }
 0x6d6   :  { %v3999_v3 = vsel %vm3995_vm0, %v3979_v32, %v3997_v0  ;;  %v4000_v31 = vsel %vm3996_vm1, %v3992_v18, %v3998_v9 }
 0x6d7   :  { %v4001_v48 = vpack.c.bf16 %v3999_v3, %v3999_v3  ;;  %v4002_v47 = vpack.c.bf16 %v4000_v31, %v4000_v31 }
 0x6d9   :  { %v3980_v41 = vpop.f32.mrf.mxu3  ;;  %v3993_v24 = vpop.f32.mrf.mxu2  ;;  %4143 = vmatmul.bf16.vlgmr.msra.gmra.mxu3 %v4001_v48  ;;  %4156 = vmatmul.bf16.vlgmr.msrb.gmra.mxu2 %v4002_v47 }
 0x75c   :  { %v4144_v61 = vpop.f32.mrf.mxu3  ;;  %v4157_v11 = vpop.f32.mrf.mxu2 }
 0x75d   :  { %v4145_v17 = vadd.f32 %v4966_v57, %v4144_v61 }
 0x75f   :  { %v4158_v45 = vadd.f32 %v4157_v11, %v4145_v17 }
 0x761   :  { %4177 = vperm.xlu1 %4958, %v4158_v45   ;;  %v4162_v25 = vsel %vm4161_vm2, %v4158_v45, 0.0 }
 0x762   :  { %4163 = vadd.xlane.f32.xlu0 %v4162_v25 }
 0x764   :  { %v4146_v22 = vpop.f32.mrf.mxu3  ;;  %v4159_v46 = vpop.f32.mrf.mxu2 }
 0x7d3   :  { %v4178_v51 = vpop.permute.xlu1 %4177 }
 0x7d5   :  { %v4164_v7 = vpop.xlane.xlu0 %4163 }
 0x7d6   :  { %v4165_v55 = vrot.slane %v4164_v7, 4 }
 0x7d8   :  { %v4166_v36 = vadd.f32 %v4165_v55, %v4164_v7 }
 0x7da   :  { %v4167_v62 = vrot.slane %v4166_v36, 2 }
 0x7dc   :  { %v4168_v6 = vadd.f32 %v4167_v62, %v4166_v36 }
 0x7de   :  { %v4169_v60 = vrot.slane %v4168_v6, 1 }
 0x7e0   :  { %v4170_v42 = vadd.f32 %v4169_v60, %v4168_v6 }
 0x7e2   :  { %4950 = vpush %v4170_v42 }
 0x813   :  { %s4951_s13 = spop %4950 }
 0x814   :  { %s4172_s6 = smul.f32 0.125, %s4951_s13 }
 0x816   :  { %v4173_v35 = vstv %s4172_s6 }
 0x817   :  { %v4174_v33 = vsub.f32 %v4158_v45, %v4173_v35 }
 0x819   :  { %v4180_v37 = vadd.f32 %v4178_v51, %v4174_v33 }
 0x81b   :  { %4181 = vst.msk [vmem:[#allocation5] sm:$0x3] %vm4161_vm2, %v4180_v37 }
 0x81c   :  { %4192 = dma.vmem_to_hbm [thread:$0]  %s4188_s27, 32, %s4190_s15, [#allocation6]  }
 0x81d   :  { %4998 = dma.done.wait [#allocation6], 32  }
 0x81e   :  { %4999 = vsyncadd [#allocation6], 4294967264 }
 0x81f   :  { %4197 = vsyncpa [#allocation6], 1 }

</bundles_post_ra>
